<compile_context>
chip_gen: v6e
topology: v6e:2x2x1
jax: 0.10.0
libtpu: 0.0.40
codegen_flags: <defaults>
</compile_context>

<pallas_src>
import functools
import math

import jax
import jax.numpy as jnp
from jax.experimental import pallas as pl
from jax.experimental.pallas import tpu as pltpu


def _mha_kernel(x_ref, wqkv_ref, bqkv_ref, wo_ref, bo_ref,
                out_ref, attn_ref, *, num_heads, head_dim, scale_inv):
    Bblk, S, E = x_ref.shape
    H, D = num_heads, head_dim
    M = Bblk * S

    # Fused Q/K/V projection: one (M, E) @ (E, 3E) matmul, f32 accumulation.
    x2 = x_ref[...].reshape(M, E)                       # native dtype, no upcast
    qkv = jnp.dot(x2, wqkv_ref[...],
                  preferred_element_type=jnp.float32) + bqkv_ref[...]
    qkv = qkv.reshape(Bblk, S, 3 * E)                   # (Bblk, S, 3E), f32

    out_acc = jnp.zeros((Bblk, S, E), jnp.float32)
    for h in range(H):                                  # H is small and static
        lo = h * D
        q_h = qkv[:, :, lo:lo + D]                      # (Bblk, S, D)
        k_h = qkv[:, :, E + lo:E + lo + D]              # (Bblk, S, D)
        v_h = qkv[:, :, 2 * E + lo:2 * E + lo + D]      # (Bblk, S, D)

        # attention_scores = Q @ K^T / sqrt(D)          -> (Bblk, S, S)
        scores = jnp.einsum('bqd,bkd->bqk', q_h, k_h,
                            preferred_element_type=jnp.float32) * scale_inv

        # numerically-stable softmax (kept in f32).
        m = jnp.max(scores, axis=-1, keepdims=True)
        p = jnp.exp(scores - m)
        denom = jnp.sum(p, axis=-1, keepdims=True)
        attn = p * pl.reciprocal(denom, approx=False)   # exact: keeps 1e-5 attn tol

        # attention-weights slab: head h occupies rows [h*S, (h+1)*S) of the
        # (H*S, S) plane; reshaped back to (H, S, S) in the wrapper.
        attn_ref[:, h * S:(h + 1) * S, :] = attn.astype(attn_ref.dtype)

        # attention_output = attn @ V                   -> (Bblk, S, D)
        o_h = jnp.einsum('bqk,bkd->bqd', attn, v_h,
                         preferred_element_type=jnp.float32)

        # Fold head-concat + final projection: out += o_h @ Wo[h*D:(h+1)*D, :]
        out_acc = out_acc + jnp.einsum(
            'bqd,de->bqe', o_h, wo_ref[lo:lo + D, :],
            preferred_element_type=jnp.float32)

    out_ref[...] = (out_acc + bo_ref[...]).astype(out_ref.dtype)


def _pick_block_b(B, S):
    """Smallest divisor of B whose row count fills the 128-sublane MXU tile."""
    for d in range(1, B + 1):
        if B % d == 0 and d * S >= 128:
            return d
    return B


def multi_head_attention(x, params, num_heads, block_b=None):
    """x: (B, S, E).  params: dict of weights (E, E) and biases (1, E)."""
    B, S, E = x.shape
    assert E % num_heads == 0
    head_dim = E // num_heads
    if block_b is None:
        block_b = _pick_block_b(B, S)
    assert B % block_b == 0

    # Pack Q/K/V weights & biases into one fused projection operand.
    wqkv = jnp.concatenate([params["wq"], params["wk"], params["wv"]], axis=1)
    bqkv = jnp.concatenate([params["bq"], params["bk"], params["bv"]], axis=1)

    kernel = functools.partial(
        _mha_kernel, num_heads=num_heads, head_dim=head_dim,
        scale_inv=1.0 / math.sqrt(head_dim))

    # Weights/biases have constant index_maps; at these sizes their VMEM cost
    # is negligible (single-buffering them via pipeline_mode matters at big E).
    out, attn_flat = pl.pallas_call(
        kernel,
        out_shape=(
            jax.ShapeDtypeStruct((B, S, E), x.dtype),
            jax.ShapeDtypeStruct((B, num_heads * S, S), jnp.float32),
        ),
        grid=(B // block_b,),
        in_specs=[
            pl.BlockSpec((block_b, S, E), lambda i: (i, 0, 0)),       # x
            pl.BlockSpec((E, 3 * E), lambda i: (0, 0)),               # wqkv
            pl.BlockSpec((1, 3 * E), lambda i: (0, 0)),               # bqkv
            pl.BlockSpec((E, E), lambda i: (0, 0)),                   # wo
            pl.BlockSpec((1, E), lambda i: (0, 0)),                   # bo
        ],
        out_specs=(
            pl.BlockSpec((block_b, S, E), lambda i: (i, 0, 0)),
            pl.BlockSpec((block_b, num_heads * S, S), lambda i: (i, 0, 0)),
        ),
        compiler_params=pltpu.CompilerParams(
            dimension_semantics=("parallel",)),
    )(x, wqkv, bqkv, params["wo"], params["bo"])

    attn = attn_flat.reshape(B, num_heads, S, S)
    return out, attn


def _reference(x, params, num_heads):
    """Pure-JAX reference mirroring the PyTorch forward."""
    B, S, E = x.shape
    D = E // num_heads
    scale = math.sqrt(D)
    q = x @ params["wq"] + params["bq"]
    k = x @ params["wk"] + params["bk"]
    v = x @ params["wv"] + params["bv"]
    q = q.reshape(B, S, num_heads, D).transpose(0, 2, 1, 3)
    k = k.reshape(B, S, num_heads, D).transpose(0, 2, 1, 3)
    v = v.reshape(B, S, num_heads, D).transpose(0, 2, 1, 3)
    scores = jnp.einsum('bhqd,bhkd->bhqk', q, k) / scale
    attn = jax.nn.softmax(scores, axis=-1)
    o = jnp.einsum('bhqk,bhkd->bhqd', attn, v)
    o = o.transpose(0, 2, 1, 3).reshape(B, S, E)
    out = o @ params["wo"] + params["bo"]
    return out, attn


if __name__ == "__main__":
    # Small shapes consistent with the module (embed_dim divisible by heads).
    # block_b is chosen automatically: 8 batch rows * S=16 => 128 MXU rows/step.
    B, S, E, H = 16, 16, 64, 4

    key = jax.random.PRNGKey(0)
    keys = jax.random.split(key, 9)
    bound = 1.0 / math.sqrt(E)  # mimic nn.Linear uniform init scale

    params = {
        "wq": jax.random.uniform(keys[0], (E, E), jnp.float32, -bound, bound),
        "wk": jax.random.uniform(keys[1], (E, E), jnp.float32, -bound, bound),
        "wv": jax.random.uniform(keys[2], (E, E), jnp.float32, -bound, bound),
        "wo": jax.random.uniform(keys[3], (E, E), jnp.float32, -bound, bound),
        "bq": jax.random.uniform(keys[4], (1, E), jnp.float32, -bound, bound),
        "bk": jax.random.uniform(keys[5], (1, E), jnp.float32, -bound, bound),
        "bv": jax.random.uniform(keys[6], (1, E), jnp.float32, -bound, bound),
        "bo": jax.random.uniform(keys[7], (1, E), jnp.float32, -bound, bound),
    }
    x = jax.random.normal(keys[8], (B, S, E), jnp.float32)

    out, attn = multi_head_attention(x, params, num_heads=H)
    out, attn = jax.block_until_ready((out, attn))

    ref_out, ref_attn = _reference(x, params, num_heads=H)
    assert out.shape == (B, S, E) and attn.shape == (B, H, S, S)
    assert jnp.allclose(out, ref_out, atol=1e-4, rtol=1e-4)
    assert jnp.allclose(attn, ref_attn, atol=1e-5, rtol=1e-5)

    print("KERNEL_OK")
</pallas_src>

<mosaic_0001>
module attributes {stable_mosaic.version = 11 : i64} {
  func.func @_mha_kernel(%arg0: i32, %arg1: memref<8x16x64xf32, #tpu.memory_space<vmem>>, %arg2: memref<64x192xf32, #tpu.memory_space<vmem>>, %arg3: memref<1x192xf32, #tpu.memory_space<vmem>>, %arg4: memref<64x64xf32, #tpu.memory_space<vmem>>, %arg5: memref<1x64xf32, #tpu.memory_space<vmem>>, %arg6: memref<8x16x64xf32, #tpu.memory_space<vmem>>, %arg7: memref<8x64x16xf32, #tpu.memory_space<vmem>>) attributes {dimension_semantics = [#tpu.dimension_semantics<parallel>], iteration_bounds = array<i64: 2>, scalar_prefetch = 0 : i64, scratch_operands = 0 : i64, tpu.core_type = #tpu.core_type<tc>, window_params = [{transform_indices = @transform_0, window_bounds = array<i64: 8, 16, 64>}, {pipeline_mode = #tpu.pipeline_mode<synchronous>, transform_indices = @transform_1, window_bounds = array<i64: 64, 192>}, {pipeline_mode = #tpu.pipeline_mode<synchronous>, transform_indices = @transform_2, window_bounds = array<i64: 1, 192>}, {pipeline_mode = #tpu.pipeline_mode<synchronous>, transform_indices = @transform_3, window_bounds = array<i64: 64, 64>}, {pipeline_mode = #tpu.pipeline_mode<synchronous>, transform_indices = @transform_4, window_bounds = array<i64: 1, 64>}, {transform_indices = @transform_5, window_bounds = array<i64: 8, 16, 64>}, {transform_indices = @transform_6, window_bounds = array<i64: 8, 64, 16>}]} {
    %c0 = arith.constant 0 : index
    %c0_0 = arith.constant 0 : index
    %c0_1 = arith.constant 0 : index
    %0 = vector.load %arg1[%c0, %c0_0, %c0_1] : memref<8x16x64xf32, #tpu.memory_space<vmem>>, vector<8x16x64xf32>
    %1 = vector.shape_cast %0 : vector<8x16x64xf32> to vector<128x64xf32>
    %c0_2 = arith.constant 0 : index
    %c0_3 = arith.constant 0 : index
    %2 = vector.load %arg2[%c0_2, %c0_3] : memref<64x192xf32, #tpu.memory_space<vmem>>, vector<64x192xf32>
    %cst = arith.constant dense<0.000000e+00> : vector<128x192xf32>
    %3 = tpu.matmul %1, %2, %cst {dimension_numbers = #tpu.dot_dimension_numbers<[1], [0], [0], [1], [0, 0, 1, 1], [], []>} : vector<128x64xf32>, vector<64x192xf32>, vector<128x192xf32> -> vector<128x192xf32>
    %c0_4 = arith.constant 0 : index
    %c0_5 = arith.constant 0 : index
    %4 = vector.load %arg3[%c0_4, %c0_5] : memref<1x192xf32, #tpu.memory_space<vmem>>, vector<1x192xf32>
    %5 = vector.broadcast %4 : vector<1x192xf32> to vector<128x192xf32>
    %6 = arith.addf %3, %5 : vector<128x192xf32>
    %7 = vector.shape_cast %6 : vector<128x192xf32> to vector<8x16x192xf32>
    %cst_6 = arith.constant 0.000000e+00 : f32
    %8 = vector.broadcast %cst_6 : f32 to vector<8x16x64xf32>
    %9 = vector.extract_strided_slice %7 {offsets = [0, 0, 0], sizes = [8, 16, 16], strides = [1, 1, 1]} : vector<8x16x192xf32> to vector<8x16x16xf32>
    %10 = vector.extract_strided_slice %7 {offsets = [0, 0, 64], sizes = [8, 16, 16], strides = [1, 1, 1]} : vector<8x16x192xf32> to vector<8x16x16xf32>
    %11 = vector.extract_strided_slice %7 {offsets = [0, 0, 128], sizes = [8, 16, 16], strides = [1, 1, 1]} : vector<8x16x192xf32> to vector<8x16x16xf32>
    "tpu.trace_start"() <{level = 10 : i32, message = "bqd,bkd->bqk"}> : () -> ()
    %cst_7 = arith.constant dense<0.000000e+00> : vector<8x16x16xf32>
    %12 = tpu.matmul %9, %10, %cst_7 {dimension_numbers = #tpu.dot_dimension_numbers<[2], [2], [1], [1], [0, 0, 0, 1, 1, 1], [0], [0]>} : vector<8x16x16xf32>, vector<8x16x16xf32>, vector<8x16x16xf32> -> vector<8x16x16xf32>
    "tpu.trace_stop"() : () -> ()
    %cst_8 = arith.constant 2.500000e-01 : f32
    %13 = vector.broadcast %cst_8 : f32 to vector<8x16x16xf32>
    %14 = arith.mulf %12, %13 : vector<8x16x16xf32>
    %cst_9 = arith.constant dense<0xFF800000> : vector<8x16xf32>
    %15 = vector.multi_reduction <maximumf>, %14, %cst_9 [2] : vector<8x16x16xf32> to vector<8x16xf32>
    %16 = vector.shape_cast %15 : vector<8x16xf32> to vector<8x16x1xf32>
    %17 = vector.broadcast %16 : vector<8x16x1xf32> to vector<8x16x16xf32>
    %18 = arith.subf %14, %17 : vector<8x16x16xf32>
    %19 = math.exp %18 : vector<8x16x16xf32>
    %cst_10 = arith.constant dense<0.000000e+00> : vector<8x16xf32>
    %20 = vector.multi_reduction <add>, %19, %cst_10 [2] : vector<8x16x16xf32> to vector<8x16xf32>
    %21 = vector.shape_cast %20 : vector<8x16xf32> to vector<8x16x1xf32>
    %22 = tpu.reciprocal %21 : vector<8x16x1xf32> -> vector<8x16x1xf32>
    %23 = vector.broadcast %22 : vector<8x16x1xf32> to vector<8x16x16xf32>
    %24 = arith.mulf %19, %23 : vector<8x16x16xf32>
    %c0_11 = arith.constant 0 : index
    %c0_12 = arith.constant 0 : index
    %c0_13 = arith.constant 0 : index
    %25 = vector.load %arg7[%c0_11, %c0_12, %c0_13] : memref<8x64x16xf32, #tpu.memory_space<vmem>>, vector<8x16x16xf32>
    tpu.vector_store %arg7[%c0_11, %c0_12, %c0_13], %24 {strides = array<i32>} : memref<8x64x16xf32, #tpu.memory_space<vmem>>, vector<8x16x16xf32>,
    "tpu.trace_start"() <{level = 10 : i32, message = "bqk,bkd->bqd"}> : () -> ()
    %cst_14 = arith.constant dense<0.000000e+00> : vector<8x16x16xf32>
    %26 = tpu.matmul %24, %11, %cst_14 {dimension_numbers = #tpu.dot_dimension_numbers<[2], [1], [1], [2], [0, 0, 0, 1, 1, 2], [0], [0]>} : vector<8x16x16xf32>, vector<8x16x16xf32>, vector<8x16x16xf32> -> vector<8x16x16xf32>
    "tpu.trace_stop"() : () -> ()
    %c0_15 = arith.constant 0 : index
    %c0_16 = arith.constant 0 : index
    %27 = vector.load %arg4[%c0_15, %c0_16] : memref<64x64xf32, #tpu.memory_space<vmem>>, vector<16x64xf32>
    "tpu.trace_start"() <{level = 10 : i32, message = "bqd,de->bqe"}> : () -> ()
    %cst_17 = arith.constant dense<0.000000e+00> : vector<8x16x64xf32>
    %28 = tpu.matmul %26, %27, %cst_17 {dimension_numbers = #tpu.dot_dimension_numbers<[2], [0], [0, 1], [1], [0, 0, 0, 1, 1, 1], [], []>} : vector<8x16x16xf32>, vector<16x64xf32>, vector<8x16x64xf32> -> vector<8x16x64xf32>
    "tpu.trace_stop"() : () -> ()
    %29 = arith.addf %8, %28 : vector<8x16x64xf32>
    %30 = vector.extract_strided_slice %7 {offsets = [0, 0, 16], sizes = [8, 16, 16], strides = [1, 1, 1]} : vector<8x16x192xf32> to vector<8x16x16xf32>
    %31 = vector.extract_strided_slice %7 {offsets = [0, 0, 80], sizes = [8, 16, 16], strides = [1, 1, 1]} : vector<8x16x192xf32> to vector<8x16x16xf32>
    %32 = vector.extract_strided_slice %7 {offsets = [0, 0, 144], sizes = [8, 16, 16], strides = [1, 1, 1]} : vector<8x16x192xf32> to vector<8x16x16xf32>
    "tpu.trace_start"() <{level = 10 : i32, message = "bqd,bkd->bqk"}> : () -> ()
    %cst_18 = arith.constant dense<0.000000e+00> : vector<8x16x16xf32>
    %33 = tpu.matmul %30, %31, %cst_18 {dimension_numbers = #tpu.dot_dimension_numbers<[2], [2], [1], [1], [0, 0, 0, 1, 1, 1], [0], [0]>} : vector<8x16x16xf32>, vector<8x16x16xf32>, vector<8x16x16xf32> -> vector<8x16x16xf32>
    "tpu.trace_stop"() : () -> ()
    %cst_19 = arith.constant 2.500000e-01 : f32
    %34 = vector.broadcast %cst_19 : f32 to vector<8x16x16xf32>
    %35 = arith.mulf %33, %34 : vector<8x16x16xf32>
    %cst_20 = arith.constant dense<0xFF800000> : vector<8x16xf32>
    %36 = vector.multi_reduction <maximumf>, %35, %cst_20 [2] : vector<8x16x16xf32> to vector<8x16xf32>
    %37 = vector.shape_cast %36 : vector<8x16xf32> to vector<8x16x1xf32>
    %38 = vector.broadcast %37 : vector<8x16x1xf32> to vector<8x16x16xf32>
    %39 = arith.subf %35, %38 : vector<8x16x16xf32>
    %40 = math.exp %39 : vector<8x16x16xf32>
    %cst_21 = arith.constant dense<0.000000e+00> : vector<8x16xf32>
    %41 = vector.multi_reduction <add>, %40, %cst_21 [2] : vector<8x16x16xf32> to vector<8x16xf32>
    %42 = vector.shape_cast %41 : vector<8x16xf32> to vector<8x16x1xf32>
    %43 = tpu.reciprocal %42 : vector<8x16x1xf32> -> vector<8x16x1xf32>
    %44 = vector.broadcast %43 : vector<8x16x1xf32> to vector<8x16x16xf32>
    %45 = arith.mulf %40, %44 : vector<8x16x16xf32>
    %c0_22 = arith.constant 0 : index
    %c16 = arith.constant 16 : index
    %c0_23 = arith.constant 0 : index
    %46 = vector.load %arg7[%c0_22, %c16, %c0_23] : memref<8x64x16xf32, #tpu.memory_space<vmem>>, vector<8x16x16xf32>
    tpu.vector_store %arg7[%c0_22, %c16, %c0_23], %45 {strides = array<i32>} : memref<8x64x16xf32, #tpu.memory_space<vmem>>, vector<8x16x16xf32>,
    "tpu.trace_start"() <{level = 10 : i32, message = "bqk,bkd->bqd"}> : () -> ()
    %cst_24 = arith.constant dense<0.000000e+00> : vector<8x16x16xf32>
    %47 = tpu.matmul %45, %32, %cst_24 {dimension_numbers = #tpu.dot_dimension_numbers<[2], [1], [1], [2], [0, 0, 0, 1, 1, 2], [0], [0]>} : vector<8x16x16xf32>, vector<8x16x16xf32>, vector<8x16x16xf32> -> vector<8x16x16xf32>
    "tpu.trace_stop"() : () -> ()
    %c16_25 = arith.constant 16 : index
    %c0_26 = arith.constant 0 : index
    %48 = vector.load %arg4[%c16_25, %c0_26] : memref<64x64xf32, #tpu.memory_space<vmem>>, vector<16x64xf32>
    "tpu.trace_start"() <{level = 10 : i32, message = "bqd,de->bqe"}> : () -> ()
    %cst_27 = arith.constant dense<0.000000e+00> : vector<8x16x64xf32>
    %49 = tpu.matmul %47, %48, %cst_27 {dimension_numbers = #tpu.dot_dimension_numbers<[2], [0], [0, 1], [1], [0, 0, 0, 1, 1, 1], [], []>} : vector<8x16x16xf32>, vector<16x64xf32>, vector<8x16x64xf32> -> vector<8x16x64xf32>
    "tpu.trace_stop"() : () -> ()
    %50 = arith.addf %29, %49 : vector<8x16x64xf32>
    %51 = vector.extract_strided_slice %7 {offsets = [0, 0, 32], sizes = [8, 16, 16], strides = [1, 1, 1]} : vector<8x16x192xf32> to vector<8x16x16xf32>
    %52 = vector.extract_strided_slice %7 {offsets = [0, 0, 96], sizes = [8, 16, 16], strides = [1, 1, 1]} : vector<8x16x192xf32> to vector<8x16x16xf32>
    %53 = vector.extract_strided_slice %7 {offsets = [0, 0, 160], sizes = [8, 16, 16], strides = [1, 1, 1]} : vector<8x16x192xf32> to vector<8x16x16xf32>
    "tpu.trace_start"() <{level = 10 : i32, message = "bqd,bkd->bqk"}> : () -> ()
    %cst_28 = arith.constant dense<0.000000e+00> : vector<8x16x16xf32>
    %54 = tpu.matmul %51, %52, %cst_28 {dimension_numbers = #tpu.dot_dimension_numbers<[2], [2], [1], [1], [0, 0, 0, 1, 1, 1], [0], [0]>} : vector<8x16x16xf32>, vector<8x16x16xf32>, vector<8x16x16xf32> -> vector<8x16x16xf32>
    "tpu.trace_stop"() : () -> ()
    %cst_29 = arith.constant 2.500000e-01 : f32
    %55 = vector.broadcast %cst_29 : f32 to vector<8x16x16xf32>
    %56 = arith.mulf %54, %55 : vector<8x16x16xf32>
    %cst_30 = arith.constant dense<0xFF800000> : vector<8x16xf32>
    %57 = vector.multi_reduction <maximumf>, %56, %cst_30 [2] : vector<8x16x16xf32> to vector<8x16xf32>
    %58 = vector.shape_cast %57 : vector<8x16xf32> to vector<8x16x1xf32>
    %59 = vector.broadcast %58 : vector<8x16x1xf32> to vector<8x16x16xf32>
    %60 = arith.subf %56, %59 : vector<8x16x16xf32>
    %61 = math.exp %60 : vector<8x16x16xf32>
    %cst_31 = arith.constant dense<0.000000e+00> : vector<8x16xf32>
    %62 = vector.multi_reduction <add>, %61, %cst_31 [2] : vector<8x16x16xf32> to vector<8x16xf32>
    %63 = vector.shape_cast %62 : vector<8x16xf32> to vector<8x16x1xf32>
    %64 = tpu.reciprocal %63 : vector<8x16x1xf32> -> vector<8x16x1xf32>
    %65 = vector.broadcast %64 : vector<8x16x1xf32> to vector<8x16x16xf32>
    %66 = arith.mulf %61, %65 : vector<8x16x16xf32>
    %c0_32 = arith.constant 0 : index
    %c32 = arith.constant 32 : index
    %c0_33 = arith.constant 0 : index
    %67 = vector.load %arg7[%c0_32, %c32, %c0_33] : memref<8x64x16xf32, #tpu.memory_space<vmem>>, vector<8x16x16xf32>
    tpu.vector_store %arg7[%c0_32, %c32, %c0_33], %66 {strides = array<i32>} : memref<8x64x16xf32, #tpu.memory_space<vmem>>, vector<8x16x16xf32>,
    "tpu.trace_start"() <{level = 10 : i32, message = "bqk,bkd->bqd"}> : () -> ()
    %cst_34 = arith.constant dense<0.000000e+00> : vector<8x16x16xf32>
    %68 = tpu.matmul %66, %53, %cst_34 {dimension_numbers = #tpu.dot_dimension_numbers<[2], [1], [1], [2], [0, 0, 0, 1, 1, 2], [0], [0]>} : vector<8x16x16xf32>, vector<8x16x16xf32>, vector<8x16x16xf32> -> vector<8x16x16xf32>
    "tpu.trace_stop"() : () -> ()
    %c32_35 = arith.constant 32 : index
    %c0_36 = arith.constant 0 : index
    %69 = vector.load %arg4[%c32_35, %c0_36] : memref<64x64xf32, #tpu.memory_space<vmem>>, vector<16x64xf32>
    "tpu.trace_start"() <{level = 10 : i32, message = "bqd,de->bqe"}> : () -> ()
    %cst_37 = arith.constant dense<0.000000e+00> : vector<8x16x64xf32>
    %70 = tpu.matmul %68, %69, %cst_37 {dimension_numbers = #tpu.dot_dimension_numbers<[2], [0], [0, 1], [1], [0, 0, 0, 1, 1, 1], [], []>} : vector<8x16x16xf32>, vector<16x64xf32>, vector<8x16x64xf32> -> vector<8x16x64xf32>
    "tpu.trace_stop"() : () -> ()
    %71 = arith.addf %50, %70 : vector<8x16x64xf32>
    %72 = vector.extract_strided_slice %7 {offsets = [0, 0, 48], sizes = [8, 16, 16], strides = [1, 1, 1]} : vector<8x16x192xf32> to vector<8x16x16xf32>
    %73 = vector.extract_strided_slice %7 {offsets = [0, 0, 112], sizes = [8, 16, 16], strides = [1, 1, 1]} : vector<8x16x192xf32> to vector<8x16x16xf32>
    %74 = vector.extract_strided_slice %7 {offsets = [0, 0, 176], sizes = [8, 16, 16], strides = [1, 1, 1]} : vector<8x16x192xf32> to vector<8x16x16xf32>
    "tpu.trace_start"() <{level = 10 : i32, message = "bqd,bkd->bqk"}> : () -> ()
    %cst_38 = arith.constant dense<0.000000e+00> : vector<8x16x16xf32>
    %75 = tpu.matmul %72, %73, %cst_38 {dimension_numbers = #tpu.dot_dimension_numbers<[2], [2], [1], [1], [0, 0, 0, 1, 1, 1], [0], [0]>} : vector<8x16x16xf32>, vector<8x16x16xf32>, vector<8x16x16xf32> -> vector<8x16x16xf32>
    "tpu.trace_stop"() : () -> ()
    %cst_39 = arith.constant 2.500000e-01 : f32
    %76 = vector.broadcast %cst_39 : f32 to vector<8x16x16xf32>
    %77 = arith.mulf %75, %76 : vector<8x16x16xf32>
    %cst_40 = arith.constant dense<0xFF800000> : vector<8x16xf32>
    %78 = vector.multi_reduction <maximumf>, %77, %cst_40 [2] : vector<8x16x16xf32> to vector<8x16xf32>
    %79 = vector.shape_cast %78 : vector<8x16xf32> to vector<8x16x1xf32>
    %80 = vector.broadcast %79 : vector<8x16x1xf32> to vector<8x16x16xf32>
    %81 = arith.subf %77, %80 : vector<8x16x16xf32>
    %82 = math.exp %81 : vector<8x16x16xf32>
    %cst_41 = arith.constant dense<0.000000e+00> : vector<8x16xf32>
    %83 = vector.multi_reduction <add>, %82, %cst_41 [2] : vector<8x16x16xf32> to vector<8x16xf32>
    %84 = vector.shape_cast %83 : vector<8x16xf32> to vector<8x16x1xf32>
    %85 = tpu.reciprocal %84 : vector<8x16x1xf32> -> vector<8x16x1xf32>
    %86 = vector.broadcast %85 : vector<8x16x1xf32> to vector<8x16x16xf32>
    %87 = arith.mulf %82, %86 : vector<8x16x16xf32>
    %c0_42 = arith.constant 0 : index
    %c48 = arith.constant 48 : index
    %c0_43 = arith.constant 0 : index
    %88 = vector.load %arg7[%c0_42, %c48, %c0_43] : memref<8x64x16xf32, #tpu.memory_space<vmem>>, vector<8x16x16xf32>
    tpu.vector_store %arg7[%c0_42, %c48, %c0_43], %87 {strides = array<i32>} : memref<8x64x16xf32, #tpu.memory_space<vmem>>, vector<8x16x16xf32>,
    "tpu.trace_start"() <{level = 10 : i32, message = "bqk,bkd->bqd"}> : () -> ()
    %cst_44 = arith.constant dense<0.000000e+00> : vector<8x16x16xf32>
    %89 = tpu.matmul %87, %74, %cst_44 {dimension_numbers = #tpu.dot_dimension_numbers<[2], [1], [1], [2], [0, 0, 0, 1, 1, 2], [0], [0]>} : vector<8x16x16xf32>, vector<8x16x16xf32>, vector<8x16x16xf32> -> vector<8x16x16xf32>
    "tpu.trace_stop"() : () -> ()
    %c48_45 = arith.constant 48 : index
    %c0_46 = arith.constant 0 : index
    %90 = vector.load %arg4[%c48_45, %c0_46] : memref<64x64xf32, #tpu.memory_space<vmem>>, vector<16x64xf32>
    "tpu.trace_start"() <{level = 10 : i32, message = "bqd,de->bqe"}> : () -> ()
    %cst_47 = arith.constant dense<0.000000e+00> : vector<8x16x64xf32>
    %91 = tpu.matmul %89, %90, %cst_47 {dimension_numbers = #tpu.dot_dimension_numbers<[2], [0], [0, 1], [1], [0, 0, 0, 1, 1, 1], [], []>} : vector<8x16x16xf32>, vector<16x64xf32>, vector<8x16x64xf32> -> vector<8x16x64xf32>
    "tpu.trace_stop"() : () -> ()
    %92 = arith.addf %71, %91 : vector<8x16x64xf32>
    %c0_48 = arith.constant 0 : index
    %c0_49 = arith.constant 0 : index
    %93 = vector.load %arg5[%c0_48, %c0_49] : memref<1x64xf32, #tpu.memory_space<vmem>>, vector<1x64xf32>
    %94 = vector.shape_cast %93 : vector<1x64xf32> to vector<1x1x64xf32>
    %95 = vector.broadcast %94 : vector<1x1x64xf32> to vector<8x16x64xf32>
    %96 = arith.addf %92, %95 : vector<8x16x64xf32>
    %c0_50 = arith.constant 0 : index
    %c0_51 = arith.constant 0 : index
    %c0_52 = arith.constant 0 : index
    %97 = vector.load %arg6[%c0_50, %c0_51, %c0_52] : memref<8x16x64xf32, #tpu.memory_space<vmem>>, vector<8x16x64xf32>
    tpu.vector_store %arg6[%c0_50, %c0_51, %c0_52], %96 {strides = array<i32>} : memref<8x16x64xf32, #tpu.memory_space<vmem>>, vector<8x16x64xf32>,
    return
  }
  func.func @transform_0(%arg0: i32) -> (i32, i32, i32) {
    %c0_i32 = arith.constant 0 : i32
    %c0_i32_0 = arith.constant 0 : i32
    %c0_i32_1 = arith.constant 0 : i32
    return %arg0, %c0_i32, %c0_i32_0 : i32, i32, i32
  }
  func.func @transform_1(%arg0: i32) -> (i32, i32) {
    %c0_i32 = arith.constant 0 : i32
    %c0_i32_0 = arith.constant 0 : i32
    %c0_i32_1 = arith.constant 0 : i32
    return %c0_i32, %c0_i32_0 : i32, i32
  }
  func.func @transform_2(%arg0: i32) -> (i32, i32) {
    %c0_i32 = arith.constant 0 : i32
    %c0_i32_0 = arith.constant 0 : i32
    %c0_i32_1 = arith.constant 0 : i32
    return %c0_i32, %c0_i32_0 : i32, i32
  }
  func.func @transform_3(%arg0: i32) -> (i32, i32) {
    %c0_i32 = arith.constant 0 : i32
    %c0_i32_0 = arith.constant 0 : i32
    %c0_i32_1 = arith.constant 0 : i32
    return %c0_i32, %c0_i32_0 : i32, i32
  }
  func.func @transform_4(%arg0: i32) -> (i32, i32) {
    %c0_i32 = arith.constant 0 : i32
    %c0_i32_0 = arith.constant 0 : i32
    %c0_i32_1 = arith.constant 0 : i32
    return %c0_i32, %c0_i32_0 : i32, i32
  }
  func.func @transform_5(%arg0: i32) -> (i32, i32, i32) {
    %c0_i32 = arith.constant 0 : i32
    %c0_i32_0 = arith.constant 0 : i32
    %c0_i32_1 = arith.constant 0 : i32
    return %arg0, %c0_i32, %c0_i32_0 : i32, i32, i32
  }
  func.func @transform_6(%arg0: i32) -> (i32, i32, i32) {
    %c0_i32 = arith.constant 0 : i32
    %c0_i32_0 = arith.constant 0 : i32
    %c0_i32_1 = arith.constant 0 : i32
    return %arg0, %c0_i32, %c0_i32_0 : i32, i32, i32
  }
}

</mosaic_0001>

<bundles_post_ra>
// kernel: tpu_custom_call.1
= control target key start
LH: loop header
LB: loop body
LE: loop exit
PB: predicated region body
PF: predicated region fallthrough
CT: control target
= control target key end

     0   :  { %12 = vsyncpa [#allocation3], 0  ;;  %s12042_s0 = inlined_call_operand.hbm [shape: f32[16,16,64], index: 0, kind: input, shape index: {}]   ;;  %s12043_s1 = inlined_call_operand.hbm [shape: f32[64,192], index: 1, kind: input, shape index: {}]   ;;  %s12044_s2 = inlined_call_operand.vmem [shape: f32[1,192], index: 2, kind: input, shape index: {}]   ;;  %s12045_s3 = inlined_call_operand.hbm [shape: f32[64,64], index: 3, kind: input, shape index: {}]   ;;  %s12046_s4 = inlined_call_operand.vmem [shape: f32[1,64], index: 4, kind: input, shape index: {}]   ;;  %s12047_s5 = inlined_call_operand.hbm [shape: f32[16,16,64], index: 5, kind: output, shape index: {0}]   ;;  %s12048_s6 = inlined_call_operand.vmem [shape: f32[16,64,16], index: 6, kind: output, shape index: {1}]  }
   0x1   :  { %14 = vsyncpa [#allocation3 + $0x1], 0 }
   0x2   :  { %15 = vsyncpa [#allocation6], 0 }
   0x3   :  { %16 = vsyncpa [#allocation4], 0 }
   0x4   :  { %18 = vsyncpa [#allocation4 + $0x1], 0  ;;  %s9780_s21 = smov 0   ;;  %s9782_s22 = smov 0  }
   0x5   :  { %s9784_s23 = smov 0   ;;  %s9786_s24 = smov 0  }
   0x6 LB: > { %s9801_s25 = sadd.s32 4294967295, %s9725_s24   ;;  %s8047_s26 = sadd.s32 4294967294, %s9725_s24   ;;  %s9725_s24 = sphi %s9786_s24, %s12186_s24   ;;  %s9721_s23 = sphi %s9784_s23, %s12185_s23   ;;  %s9717_s22 = sphi %s9782_s22, %s12184_s22   ;;  %s9713_s21 = sphi %s9780_s21, %s12183_s21  }
   0x7   : > { %p44_p0 = scmp.ne.s32.totalorder %s9717_s22, %s9713_s21  ;;  %p12049_p1 = scmp.eq.s32.totalorder %s9801_s25, 0 }
   0x8   : > { %p158_p3 = scmp.eq.s32.totalorder %s8047_s26, 1  ;;  %p8048_p5 = scmp.ge.s32.totalorder %s9725_s24, 1 }
   0x9   : > { %p9810_p4 = por %p12049_p1, %p44_p0  ;;  %p191_p7 = scmp.lt.s32.totalorder %s9725_s24, 3 }
   0xa   : > { %p9815_p6 = por %p158_p3, %p44_p0  ;;  %s9727_s30 = smov [#allocation5]  }
   0xb   : > { %s12088_s27 = scalar_select %p9810_p4, 1, 0 }
   0xc   : > { %s12089_s28 = scalar_select %p9815_p6, 1, 0 }
   0xd   : > { %p9820_p8 = pnand %p8048_p5, %p191_p7  ;;  %s203_s7 = sshll.u32 %s9727_s30, 4  ;;  %s204_s7 = int_to_ptr.vmem [resolvable:$true] %s203_s7 }
   0xe   : > { %s9728_s9 = smov [#allocation7]   ;;  %s9588_s11 = scalar_lea.vmem %s204_s7, 2048 }
   0xf   : > { %s12090_s29 = scalar_select %p9820_p8, 1, 0 }
  0x10   : > { %p9252_p9 = pneg %p9820_p8  ;;  %s219_s10 = sshll.u32 %s9728_s9, 4  ;;  %s220_s10 = int_to_ptr.vmem [resolvable:$true] %s219_s10 }
  0x11   : > { %p9589_p13 = scmp.ne.s32.totalorder %s204_s7, %s9588_s11  ;;  %p9596_p5 = scmp.lt.s32.totalorder %s204_s7, %s204_s7 }
  0x12   : > { %p9829_p11 = pnand %p9252_p9, %p12049_p1  ;;  %p9597_p7 = scmp.lt.s32.totalorder %s9588_s11, %s9588_s11 }
  0x14   : > { %p9579_p12 = pneg %p9829_p11  ;;  %p9598_p10 = por %p9597_p7, %p9596_p5 }
  0x16   : > { %p9591_p0 = pnand %p9589_p13, %p9579_p12 }
  0x18   : > { %p9592_p3 = pneg %p9591_p0 }
  0x1a   : > { %p9599_p9 = pnand %p9598_p10, %p9592_p3 }
  0x1c   : > { %9602 = shalt.err (!%p9599_p9)
}
  0x1d   : > { %s9729_s12 = smov 256   ;;  %s9730_s13 = smov 16  }
  0x1e   : > { %9255 = dma.hbm_to_vmem [thread:$0]  (!%p9829_p11), %s12043_s1, 2048, %s204_s7, [#allocation6], %s9729_s12, %s9729_s12, %s9730_s13  }
  0x1f   : > { %s9614_s16 = scalar_lea.vmem %s220_s10, 1024  ;;  %p9622_p2 = scmp.lt.s32.totalorder %s220_s10, %s220_s10 }
  0x20   : > { %p9615_p1 = scmp.ne.s32.totalorder %s220_s10, %s9614_s16  ;;  %p9623_p6 = scmp.lt.s32.totalorder %s9614_s16, %s9614_s16 }
  0x22   : > { %p9617_p13 = pnand %p9615_p1, %p9579_p12  ;;  %p9624_p5 = por %p9623_p6, %p9622_p2 }
  0x24   : > { %p9618_p0 = pneg %p9617_p13 }
  0x26   : > { %p9625_p10 = pnand %p9624_p5, %p9618_p0 }
  0x28   : > { %9628 = shalt.err (!%p9625_p10)
}
  0x29   : > { %s12050_s17 = smov 128   ;;  %s12051_s18 = smov 8  }
  0x2a   : > { %9258 = dma.hbm_to_vmem [thread:$0]  (!%p9829_p11), %s12045_s3, 1024, %s220_s10, [#allocation6], %s12050_s17, %s12050_s17, %s12051_s18  }
  0x2b   : > { %s9855_s26 = sadd.s32 1, %s9725_s24   ;;  %s31_s7 = sadd.s32 1, %s9721_s23 }
  0x2c   : > { %s28_s30 = ssub.s32 %s9725_s24, %s9855_s26  ;;  %p38_p2 = scmp.ne.s32.totalorder %s9721_s23, %s9717_s22 }
  0x2d   : > { %p29_p1 = scmp.eq.s32.totalorder %s28_s30, 0  ;;  %p39_p6 = scmp.eq.s32.totalorder %s9725_s24, 0 }
  0x2e   : > { %p12092_p3 = scmp.eq.s32.totalorder %s9801_s25, 1  ;;  %p9269_p9 = scmp.lt.s32.totalorder %s9725_s24, 2 }
  0x2f   : > { %s9864_s9 = scalar_select %p29_p1, %s9721_s23, %s31_s7  }
  0x30   : > { %p40_p12 = por %p39_p6, %p38_p2  ;;  %p9868_p7 = por %p12092_p3, %p38_p2 }
  0x31   : > { %s236_s11 = sand.u32 1, %s9721_s23   ;;  %s8344_s10 = sshll.u32 %s9725_s24, 11 }
  0x32   : > { %s12093_s8 = scalar_select %p9868_p7, 1, 0 }
  0x33   : > { %s8052_s12 = sshll.u32 %s236_s11, 7  ;;  %s9878_s15 = scalar_lea.hbm %s12042_s0, %s8344_s10 }
  0x34   : > { %s240_s16 = scalar_lea.vmem [#allocation2], %s8052_s12  ;;  %p9882_p11 = pnand %p9269_p9, %p40_p12 }
  0x35   : > { %s248_s19 = sshll.u32 %s240_s16, 4  ;;  %s9886_s30 = scalar_lea.sflag [#allocation3], %s236_s11  ;;  %s9880_s19 = int_to_ptr.vmem [resolvable:$true] %s248_s19 }
  0x36   : > { %s9629_s7 = scalar_lea.hbm %s9878_s15, 2048  ;;  %p9631_p0 = pneg %p9882_p11 }
  0x37   : > { %p9630_p13 = scmp.ne.s32.totalorder %s9878_s15, %s9629_s7  ;;  %s9634_s12 = scalar_lea.hbm %s12042_s0, 4096 }
  0x38   : > { %p9635_p1 = scmp.lt.s32.totalorder %s9878_s15, %s12042_s0  ;;  %p9636_p2 = scmp.lt.s32.totalorder %s9634_s12, %s9629_s7 }
  0x39   : > { %p9632_p5 = pnand %p9631_p0, %p9630_p13 }
  0x3a   : > { %p9637_p6 = por %p9636_p2, %p9635_p1 }
  0x3b   : > { %p9633_p10 = pneg %p9632_p5 }
  0x3d   : > { %p9638_p12 = pnand %p9637_p6, %p9633_p10 }
  0x3f   : > { %9641 = shalt.err (!%p9638_p12)
}
  0x40   : > { %s9642_s11 = scalar_lea.vmem %s9880_s19, 2048  ;;  %s9733_s17 = smov [#allocation2]  }
  0x41   : > { %p9643_p3 = scmp.ne.s32.totalorder %s9880_s19, %s9642_s11  ;;  %s9647_s18 = sshll.u32 %s9733_s17, 4  ;;  %s9648_s18 = int_to_ptr.vmem [resolvable:$false] %s9647_s18 }
  0x42   : > { %s9649_s10 = scalar_lea.vmem %s9648_s18, 4096  ;;  %p9650_p5 = scmp.lt.s32.totalorder %s9880_s19, %s9648_s18 }
  0x43   : > { %p9645_p9 = pnand %p9643_p3, %p9631_p0  ;;  %p9651_p7 = scmp.lt.s32.totalorder %s9649_s10, %s9642_s11 }
  0x45   : > { %p9646_p13 = pneg %p9645_p9  ;;  %p9652_p4 = por %p9651_p7, %p9650_p5 }
  0x47   : > { %p9653_p8 = pnand %p9652_p4, %p9646_p13 }
  0x49   : > { %9656 = shalt.err (!%p9653_p8)
}
  0x4a   : > { %s12095_s7 = smov 8   ;;  %s12096_s13 = smov 128  }
  0x4b   : > { %9262 = dma.hbm_to_vmem [thread:$0]  (!%p9882_p11), %s9878_s15, 2048, %s9880_s19, %s9886_s30, %s12096_s13, %s12096_s13, %s12095_s7  }
  0x4c   : > { %p12097_p0 = scmp.ne.s32.totalorder %s12090_s29, 0 }
  0x4e   : > { %260 = sbr.rel (%p12097_p0) target bundleno = 3605 (0xe15), region = 40 }
  0x53   : > { %s9913_s17 = sand.u32 1, %s9717_s22   ;;  %p12098_p4 = scmp.ne.s32.totalorder %s12088_s27, 0 }
  0x54   : > { %s8057_s18 = sshll.u32 %s9913_s17, 7  ;;  %s263_s12 = scalar_lea.sflag [#allocation3], %s9913_s17 }
  0x55   : > { %s9919_s20 = scalar_lea.vmem [#allocation2], %s8057_s18 }
  0x56   : > { %9700 = dma.done.wait (%p12098_p4), %s263_s12, 2048  }
  0x57   : > { %9702 = vsyncadd (%p12098_p4), %s263_s12, 4294965248  ;;  %p12099_p8 = scmp.eq.s32.totalorder %s9801_s25, 0 }
  0x59   : > { %9704 = dma.done.wait (%p12099_p8), [#allocation6], 3072   ;;  %p12100_p7 = pmov %p12099_p8 }
  0x5a   : > { %v9734_v0 = vmov 0.0   ;;  %v349_v1 = vld [vmem:[#allocation5 + $0x78] sm:$0xff]  ;;  %v348_v2 = vld [vmem:[#allocation5 + $0x70] sm:$0xff]  ;;  %v347_v3 = vld [vmem:[#allocation5 + $0x68] sm:$0xff]  ;;  %vm362_vm0 = vcmask 523264   ;;  %v352_v33 = vlaneseq  ;;  %vm578_vm1 = vcmask 130048  }
  0x5b   : > { %9706 = vsyncadd (%p12100_p7), [#allocation6], 4294964224  ;;  %475 = vmatprep.mubr.f32.mxu0 %v9734_v0  ;;  %427 = vmatprep.subr.mxu0 %v349_v1  ;;  %v346_v4 = vld [vmem:[#allocation5 + $0x60] sm:$0xff]  ;;  %v345_v5 = vld [vmem:[#allocation5 + $0x58] sm:$0xff]  ;;  %s9735_s15 = smov 64   ;;  %s9736_s19 = smov 48  }
  0x5c   : > { %428 = vmatpush1.msra.mxu0 %v348_v2  ;;  %v344_v6 = vld [vmem:[#allocation5 + $0x50] sm:$0xff]  ;;  %v343_v7 = vld [vmem:[#allocation5 + $0x48] sm:$0xff]  ;;  %v342_v8 = vld [vmem:[#allocation5 + $0x40] sm:$0xff]  ;;  %v353_v34 = vshrl.u32 %v352_v33, 7  ;;  %s9737_s30 = smov 112   ;;  %s8061_s14 = sshll.u32 %s9801_s25, 3 }
  0x5d   : > { %429 = vmatprep.subr.mxu0 %v347_v3  ;;  %v341_v9 = vld [vmem:[#allocation5 + $0x38] sm:$0xff]  ;;  %v340_v10 = vld [vmem:[#allocation5 + $0x30] sm:$0xff]  ;;  %v339_v11 = vld [vmem:[#allocation5 + $0x28] sm:$0xff]  ;;  %p312_p11 = scmp.lt.s32.totalorder %s8061_s14, 15  ;;  %s9738_s13 = smov 32  }
  0x5e   : > { %430 = vmatpush1.msra.mxu0 %v346_v4  ;;  %v338_v12 = vld [vmem:[#allocation5 + $0x20] sm:$0xff]  ;;  %v337_v13 = vld [vmem:[#allocation5 + $0x18] sm:$0xff]  ;;  %v336_v14 = vld [vmem:[#allocation5 + $0x10] sm:$0xff]  ;;  %v354_v35 = vsub.s32 0, %v353_v34  ;;  %v358_v37 = vsub.s32 1, %v353_v34  ;;  %s9739_s12 = smov 96  }
  0x5f   : > { %431 = vmatprep.subr.mxu0 %v345_v5  ;;  %v335_v15 = vld [vmem:[#allocation5 + $0x8] sm:$0xff]  ;;  %v334_v16 = vld [vmem:[#allocation5] sm:$0xff]  ;;  %v320_v19 = vld [vmem:[%s9919_s20 + $0x10] sm:$0xff]  ;;  %s12188_s14 = smov (!%p312_p11, %s8061_s14), 15  ;;  %s9741_s27 = smov 80  }
  0x60   : > { %432 = vmatpush1.msra.mxu0 %v344_v6  ;;  %v318_v17 = vld [vmem:[%s9919_s20] sm:$0xff]  ;;  %v319_v18 = vld [vmem:[%s9919_s20 + $0x8] sm:$0xff]  ;;  %v321_v20 = vld [vmem:[%s9919_s20 + $0x18] sm:$0xff]  ;;  %s8345_s16 = sshll.u32 %s12188_s14, 6  ;;  %p12180_p1 = scmp.ne.s32.totalorder %s12093_s8, 0 }
  0x61   : > { %433 = vmatprep.subr.mxu0 %v343_v7  ;;  %v322_v21 = vld [vmem:[%s9919_s20 + $0x20] sm:$0xff]  ;;  %v323_v22 = vld [vmem:[%s9919_s20 + $0x28] sm:$0xff]  ;;  %v324_v23 = vld [vmem:[%s9919_s20 + $0x30] sm:$0xff]  ;;  %s10437_s7 = scalar_lea.vmem %s12048_s6, %s8345_s16 }
  0x62   : > { %434 = vmatpush1.msra.mxu0 %v342_v8  ;;  %v325_v24 = vld [vmem:[%s9919_s20 + $0x38] sm:$0xff]  ;;  %v326_v25 = vld [vmem:[%s9919_s20 + $0x40] sm:$0xff]  ;;  %v327_v26 = vld [vmem:[%s9919_s20 + $0x48] sm:$0xff] }
  0x63   : > { %435 = vmatprep.subr.mxu0 %v341_v9  ;;  %v328_v27 = vld [vmem:[%s9919_s20 + $0x50] sm:$0xff]  ;;  %v329_v28 = vld [vmem:[%s9919_s20 + $0x58] sm:$0xff]  ;;  %v330_v29 = vld [vmem:[%s9919_s20 + $0x60] sm:$0xff] }
  0x64   : > { %436 = vmatpush1.msra.mxu0 %v340_v10  ;;  %v331_v30 = vld [vmem:[%s9919_s20 + $0x68] sm:$0xff]  ;;  %v332_v31 = vld [vmem:[%s9919_s20 + $0x70] sm:$0xff]  ;;  %v333_v32 = vld [vmem:[%s9919_s20 + $0x78] sm:$0xff]  ;;  %s9740_s20 = smov 16  }
  0x65   : > { %437 = vmatprep.subr.mxu0 %v339_v11  ;;  %v350_v36 = vld [vmem:[%s12044_s2] sm:$0x3] }
  0x66   : > { %438 = vmatpush1.msra.mxu0 %v338_v12  ;;  %v9980_v38 = vrot.slane %v350_v36, %v354_v35  ;;  %v9982_v39 = vrot.slane %v350_v36, %v358_v37 }
  0x67   : > { %439 = vmatprep.subr.mxu0 %v337_v13 }
  0x68   : > { %440 = vmatpush1.msra.mxu0 %v336_v14 }
  0x69   : > { %441 = vmatprep.subr.mxu0 %v335_v15 }
  0x6a   : > { %442 = vmatpush1.msra.mxu0 %v334_v16 }
  0x6b   : > { %8064 = vmatmul.mubr.msk.f32.vlgmr.msra.gmra.mxu0 %vm362_vm0, %v318_v17 }
  0x6c   : > { %481 = vmatprep.mubr.f32.mxu0 %v9734_v0 }
  0x6f   : > { %8065 = vmatmul.mubr.msk.f32.gmra.mxu0 %vm362_vm0, %v319_v18 }
  0x70   : > { %487 = vmatprep.mubr.f32.mxu0 %v9734_v0 }
  0x73   : > { %8066 = vmatmul.mubr.msk.f32.gmra.mxu0 %vm362_vm0, %v320_v19 }
  0x74   : > { %493 = vmatprep.mubr.f32.mxu0 %v9734_v0 }
  0x77   : > { %8067 = vmatmul.mubr.msk.f32.gmra.mxu0 %vm362_vm0, %v321_v20 }
  0x78   : > { %499 = vmatprep.mubr.f32.mxu0 %v9734_v0 }
  0x7b   : > { %8068 = vmatmul.mubr.msk.f32.gmra.mxu0 %vm362_vm0, %v322_v21 }
  0x7c   : > { %505 = vmatprep.mubr.f32.mxu0 %v9734_v0 }
  0x7f   : > { %8069 = vmatmul.mubr.msk.f32.gmra.mxu0 %vm362_vm0, %v323_v22 }
  0x80   : > { %511 = vmatprep.mubr.f32.mxu0 %v9734_v0 }
  0x83   : > { %8070 = vmatmul.mubr.msk.f32.gmra.mxu0 %vm362_vm0, %v324_v23 }
  0x84   : > { %517 = vmatprep.mubr.f32.mxu0 %v9734_v0 }
  0x87   : > { %8071 = vmatmul.mubr.msk.f32.gmra.mxu0 %vm362_vm0, %v325_v24 }
  0x88   : > { %523 = vmatprep.mubr.f32.mxu0 %v9734_v0 }
  0x8b   : > { %8072 = vmatmul.mubr.msk.f32.gmra.mxu0 %vm362_vm0, %v326_v25 }
  0x8c   : > { %529 = vmatprep.mubr.f32.mxu0 %v9734_v0 }
  0x8f   : > { %8073 = vmatmul.mubr.msk.f32.gmra.mxu0 %vm362_vm0, %v327_v26 }
  0x90   : > { %535 = vmatprep.mubr.f32.mxu0 %v9734_v0 }
  0x93   : > { %8074 = vmatmul.mubr.msk.f32.gmra.mxu0 %vm362_vm0, %v328_v27 }
  0x94   : > { %541 = vmatprep.mubr.f32.mxu0 %v9734_v0 }
  0x97   : > { %8075 = vmatmul.mubr.msk.f32.gmra.mxu0 %vm362_vm0, %v329_v28 }
  0x98   : > { %547 = vmatprep.mubr.f32.mxu0 %v9734_v0 }
  0x9b   : > { %8076 = vmatmul.mubr.msk.f32.gmra.mxu0 %vm362_vm0, %v330_v29 }
  0x9c   : > { %553 = vmatprep.mubr.f32.mxu0 %v9734_v0 }
  0x9f   : > { %8077 = vmatmul.mubr.msk.f32.gmra.mxu0 %vm362_vm0, %v331_v30 }
  0xa0   : > { %559 = vmatprep.mubr.f32.mxu0 %v9734_v0 }
  0xa3   : > { %8078 = vmatmul.mubr.msk.f32.gmra.mxu0 %vm362_vm0, %v332_v31 }
  0xa4   : > { %565 = vmatprep.mubr.f32.mxu0 %v9734_v0 }
  0xa7   : > { %8079 = vmatmul.mubr.msk.f32.gmra.mxu0 %vm362_vm0, %v333_v32 }
 0x12b   : > { %v477_v40 = vpop.f32.mrf.mxu0 }
 0x12c   : > { %v9985_v41 = vadd.f32 %v477_v40, %v9980_v38 }
 0x12d   : > { %v479_v42 = vpop.f32.mrf.mxu0 }
 0x12e   : > { %12101 = vst [vmem:[#allocation12_spill] sm:$0xff] %v9985_v41  ;;  %v9988_v43 = vadd.f32 %v479_v42, %v9982_v39  ;;  %8680 = vmatprep.mubr.msk.f32.mxu1 %vm578_vm1, %v9985_v41 }
 0x12f   : > { %v483_v44 = vpop.f32.mrf.mxu0 }
 0x130   : > { %12102 = vst [vmem:[#allocation13_spill] sm:$0xff] %v9988_v43  ;;  %v9993_v45 = vadd.f32 %v483_v44, %v9980_v38 }
 0x131   : > { %v485_v46 = vpop.f32.mrf.mxu0 }
 0x132   : > { %12103 = vst [vmem:[#allocation14_spill] sm:$0xff] %v9993_v45  ;;  %v9996_v47 = vadd.f32 %v485_v46, %v9982_v39  ;;  %576 = vrot.lane.b32.xlu0 %v9993_v45, %s9735_s15 }
 0x133   : > { %v489_v48 = vpop.f32.mrf.mxu0 }
 0x134   : > { %12104 = vst [vmem:[#allocation15_spill] sm:$0xff] %v9996_v47  ;;  %v10014_v56 = vadd.f32 %v489_v48, %v9980_v38 }
 0x135   : > { %v491_v49 = vpop.f32.mrf.mxu0 }
 0x136   : > { %v10001_v50 = vadd.f32 %v491_v49, %v9982_v39  ;;  %574 = vrot.lane.b32.xlu0 %v9985_v41, %s9735_s15  ;;  %12108 = vst [vmem:[#allocation19_spill] sm:$0xff] %v10014_v56 }
 0x137   : > { %v495_v51 = vpop.f32.mrf.mxu0 }
 0x138   : > { %12105 = vst [vmem:[#allocation16_spill] sm:$0xff] %v10001_v50  ;;  %v10006_v52 = vadd.f32 %v495_v51, %v9980_v38 }
 0x139   : > { %v497_v53 = vpop.f32.mrf.mxu0 }
 0x13a   : > { %12106 = vst [vmem:[#allocation17_spill] sm:$0xff] %v10006_v52  ;;  %v10009_v54 = vadd.f32 %v497_v53, %v9982_v39  ;;  %666 = vrot.lane.b32.xlu1 %v10006_v52, %s9735_s15 }
 0x13b   : > { %v501_v55 = vpop.f32.mrf.mxu0 }
 0x13c   : > { %12107 = vst [vmem:[#allocation18_spill] sm:$0xff] %v10009_v54  ;;  %v10022_v60 = vadd.f32 %v501_v55, %v9980_v38 }
 0x13d   : > { %v503_v57 = vpop.f32.mrf.mxu0 }
 0x13e   : > { %v10017_v58 = vadd.f32 %v503_v57, %v9982_v39  ;;  %664 = vrot.lane.b32.xlu1 %v10014_v56, %s9735_s15  ;;  %12110 = vst [vmem:[#allocation21_spill] sm:$0xff] %v10022_v60 }
 0x13f   : > { %v507_v59 = vpop.f32.mrf.mxu0 }
 0x140   : > { %12109 = vst [vmem:[#allocation20_spill] sm:$0xff] %v10017_v58  ;;  %v10025_v61 = vadd.f32 %v507_v59, %v9980_v38 }
 0x141   : > { %v509_v62 = vpop.f32.mrf.mxu0 }
 0x142   : > { %12111 = vst [vmem:[#allocation22_spill] sm:$0xff] %v10025_v61  ;;  %v10028_v63 = vadd.f32 %v509_v62, %v9982_v39  ;;  %753 = vrot.lane.b32.xlu1 %v10022_v60, %s9735_s15  ;;  %755 = vrot.lane.b32.xlu0 %v10025_v61, %s9735_s15 }
 0x143   : > { %v513_v0 = vpop.f32.mrf.mxu0 }
 0x144   : > { %12112 = vst [vmem:[#allocation23_spill] sm:$0xff] %v10028_v63  ;;  %v10035_v1 = vadd.f32 %v513_v0, %v9980_v38 }
 0x145   : > { %v515_v2 = vpop.f32.mrf.mxu0 }
 0x146   : > { %12113 = vst [vmem:[#allocation24_spill] sm:$0xff] %v10035_v1  ;;  %842 = vrot.lane.b32.xlu1 %v10035_v1, %s9735_s15  ;;  %v10048_v8 = vadd.f32 %v515_v2, %v9982_v39 }
 0x147   : > { %v519_v3 = vpop.f32.mrf.mxu0 }
 0x148   : > { %v10040_v4 = vadd.f32 %v519_v3, %v9980_v38  ;;  %12115 = vst [vmem:[#allocation26_spill] sm:$0xff] %v10048_v8 }
 0x149   : > { %v521_v5 = vpop.f32.mrf.mxu0 }
 0x14a   : > { %v10043_v6 = vadd.f32 %v521_v5, %v9982_v39  ;;  %844 = vrot.lane.b32.xlu0 %v10040_v4, %s9735_s15 }
 0x14b   : > { %v525_v7 = vpop.f32.mrf.mxu0 }
 0x14c   : > { %12114 = vst [vmem:[#allocation25_spill] sm:$0xff] %v10043_v6  ;;  %v10051_v9 = vadd.f32 %v525_v7, %v9980_v38  ;;  %8753 = vmatprep.subr.mxu0 %v10043_v6 }
 0x14d   : > { %v527_v10 = vpop.f32.mrf.mxu0  ;;  %8754 = vmatpush3.msra.mxu0 %v10043_v6 }
 0x14e   : > { %v10056_v11 = vadd.f32 %v527_v10, %v9982_v39  ;;  %8755 = vmatprep.subr.mxu0 %v10048_v8  ;;  %931 = vrot.lane.b32.xlu1 %v10051_v9, %s9735_s15 }
 0x14f   : > { %v531_v12 = vpop.f32.mrf.mxu0  ;;  %8756 = vmatpush3.msra.mxu0 %v10048_v8 }
 0x150   : > { %12116 = vst [vmem:[#allocation27_spill] sm:$0xff] %v10056_v11  ;;  %v10063_v13 = vadd.f32 %v531_v12, %v9980_v38 }
 0x151   : > { %v533_v14 = vpop.f32.mrf.mxu0 }
 0x152   : > { %v10066_v15 = vadd.f32 %v533_v14, %v9982_v39  ;;  %933 = vrot.lane.b32.xlu0 %v10063_v13, %s9735_s15 }
 0x153   : > { %v537_v16 = vpop.f32.mrf.mxu0 }
 0x154   : > { %12117 = vst [vmem:[#allocation28_spill] sm:$0xff] %v10066_v15  ;;  %v10071_v17 = vadd.f32 %v537_v16, %v9980_v38 }
 0x155   : > { %v539_v18 = vpop.f32.mrf.mxu0 }
 0x156   : > { %v10074_v19 = vadd.f32 %v539_v18, %v9982_v39  ;;  %1020 = vrot.lane.b32.xlu1 %v10071_v17, %s9735_s15 }
 0x157   : > { %v543_v20 = vpop.f32.mrf.mxu0 }
 0x158   : > { %12118 = vst [vmem:[#allocation29_spill] sm:$0xff] %v10074_v19  ;;  %v10079_v21 = vadd.f32 %v543_v20, %v9980_v38 }
 0x159   : > { %v545_v22 = vpop.f32.mrf.mxu0 }
 0x15a   : > { %v10082_v23 = vadd.f32 %v545_v22, %v9982_v39  ;;  %1022 = vrot.lane.b32.xlu0 %v10079_v21, %s9735_s15 }
 0x15b   : > { %v549_v24 = vpop.f32.mrf.mxu0 }
 0x15c   : > { %12119 = vst [vmem:[#allocation30_spill] sm:$0xff] %v10082_v23  ;;  %v10087_v25 = vadd.f32 %v549_v24, %v9980_v38  ;;  %8767 = vmatprep.subr.mxu0 %v10082_v23 }
 0x15d   : > { %v551_v26 = vpop.f32.mrf.mxu0 }
 0x15e   : > { %v10091_v27 = vadd.f32 %v551_v26, %v9982_v39  ;;  %1109 = vrot.lane.b32.xlu1 %v10087_v25, %s9735_s15 }
 0x15f   : > { %v555_v28 = vpop.f32.mrf.mxu0 }
 0x160   : > { %12120 = vst [vmem:[#allocation31_spill] sm:$0xff] %v10091_v27  ;;  %v10096_v29 = vadd.f32 %v555_v28, %v9980_v38 }
 0x161   : > { %v557_v30 = vpop.f32.mrf.mxu0 }
 0x162   : > { %v10099_v31 = vadd.f32 %v557_v30, %v9982_v39  ;;  %1111 = vrot.lane.b32.xlu0 %v10096_v29, %s9735_s15 }
 0x163   : > { %v561_v32 = vpop.f32.mrf.mxu0 }
 0x164   : > { %12121 = vst [vmem:[#allocation32_spill] sm:$0xff] %v10099_v31  ;;  %v10104_v33 = vadd.f32 %v561_v32, %v9980_v38 }
 0x165   : > { %v563_v34 = vpop.f32.mrf.mxu0 }
 0x166   : > { %v10107_v35 = vadd.f32 %v563_v34, %v9982_v39  ;;  %1198 = vrot.lane.b32.xlu1 %v10104_v33, %s9735_s15 }
 0x167   : > { %v567_v36 = vpop.f32.mrf.mxu0 }
 0x168   : > { %v10112_v37 = vadd.f32 %v567_v36, %v9980_v38 }
 0x16a   : > { %2149 = vrot.lane.b32.xlu1 %v9993_v45, %s9736_s19  ;;  %1200 = vrot.lane.b32.xlu0 %v10112_v37, %s9735_s15 }
 0x16e   : > { %2240 = vrot.lane.b32.xlu1 %v10006_v52, %s9736_s19  ;;  %2147 = vrot.lane.b32.xlu0 %v9985_v41, %s9736_s19 }
 0x172   : > { %2143 = vrot.lane.b32.xlu1 %v9985_v41, %s9737_s30  ;;  %2145 = vrot.lane.b32.xlu0 %v9993_v45, %s9737_s30 }
 0x176   : > { %2238 = vrot.lane.b32.xlu1 %v10014_v56, %s9736_s19  ;;  %2331 = vrot.lane.b32.xlu0 %v10025_v61, %s9736_s19 }
 0x17a   : > { %2234 = vrot.lane.b32.xlu1 %v10014_v56, %s9737_s30  ;;  %2236 = vrot.lane.b32.xlu0 %v10006_v52, %s9737_s30 }
 0x17e   : > { %2329 = vrot.lane.b32.xlu1 %v10022_v60, %s9736_s19 }
 0x1a4   : > { %v577_v38 = vpop.permute.xlu0 %576 }
 0x1a5   : > { %8676 = vmatprep.subr.msk.mxu1 %vm578_vm1, %v577_v38 }
 0x1a6   : > { %8677 = vmatpush3.xpose.msk.msra.mxu1 %vm578_vm1, %v577_v38 }
 0x1a8   : > { %v575_v40 = vpop.permute.xlu0 %574 }
 0x1a9   : > { %8678 = vmatprep.subr.msk.mxu1 %vm578_vm1, %v575_v40 }
 0x1aa   : > { %8679 = vmatpush3.xpose.msk.msra.mxu1 %vm578_vm1, %v575_v40 }
 0x1ac   : > { %v667_v42 = vpop.permute.xlu1 %666 }
 0x1ad   : > { %8681 = vmatmul.mubr.msk.f32.vlgmr.msra.gmra.mxu1 %vm578_vm1, %v9993_v45  ;;  %8683 = vmatprep.subr.msk.mxu1 %vm578_vm1, %v667_v42 }
 0x1ae   : > { %8684 = vmatpush3.xpose.msk.msra.mxu1 %vm578_vm1, %v667_v42  ;;  %8687 = vmatprep.mubr.msk.f32.mxu1 %vm578_vm1, %v10014_v56 }
 0x1b0   : > { %v665_v44 = vpop.permute.xlu1 %664 }
 0x1b1   : > { %8685 = vmatprep.subr.msk.mxu1 %vm578_vm1, %v665_v44 }
 0x1b2   : > { %8686 = vmatpush3.xpose.msk.msra.mxu1 %vm578_vm1, %v665_v44 }
 0x1b4   : > { %v756_v46 = vpop.permute.xlu0 %755  ;;  %v754_v48 = vpop.permute.xlu1 %753 }
 0x1b5   : > { %8688 = vmatmul.mubr.msk.f32.vlgmr.msra.gmra.mxu1 %vm578_vm1, %v10006_v52  ;;  %8690 = vmatprep.subr.msk.mxu1 %vm578_vm1, %v756_v46 }
 0x1b6   : > { %8691 = vmatpush3.xpose.msk.msra.mxu1 %vm578_vm1, %v756_v46  ;;  %8694 = vmatprep.mubr.msk.f32.mxu1 %vm578_vm1, %v10022_v60 }
 0x1b7   : > { %8692 = vmatprep.subr.msk.mxu1 %vm578_vm1, %v754_v48 }
 0x1b8   : > { %v843_v51 = vpop.permute.xlu1 %842 }
 0x1ba   : > { %8693 = vmatpush3.xpose.msk.msra.mxu1 %vm578_vm1, %v754_v48 }
 0x1bc   : > { %v845_v49 = vpop.permute.xlu0 %844 }
 0x1bd   : > { %8695 = vmatmul.mubr.msk.f32.vlgmr.msra.gmra.mxu1 %vm578_vm1, %v10025_v61  ;;  %8697 = vmatprep.subr.msk.mxu1 %vm578_vm1, %v845_v49 }
 0x1be   : > { %8698 = vmatpush3.xpose.msk.msra.mxu1 %vm578_vm1, %v845_v49  ;;  %8701 = vmatprep.mubr.msk.f32.mxu1 %vm578_vm1, %v10035_v1 }
 0x1bf   : > { %8699 = vmatprep.subr.msk.mxu1 %vm578_vm1, %v843_v51 }
 0x1c0   : > { %v932_v55 = vpop.permute.xlu1 %931 }
 0x1c2   : > { %8700 = vmatpush3.xpose.msk.msra.mxu1 %vm578_vm1, %v843_v51 }
 0x1c4   : > { %v934_v53 = vpop.permute.xlu0 %933 }
 0x1c5   : > { %8702 = vmatmul.mubr.msk.f32.vlgmr.msra.gmra.mxu1 %vm578_vm1, %v10040_v4  ;;  %8704 = vmatprep.subr.msk.mxu1 %vm578_vm1, %v934_v53 }
 0x1c6   : > { %8705 = vmatpush3.xpose.msk.msra.mxu1 %vm578_vm1, %v934_v53  ;;  %8708 = vmatprep.mubr.msk.f32.mxu1 %vm578_vm1, %v10051_v9 }
 0x1c7   : > { %8706 = vmatprep.subr.msk.mxu1 %vm578_vm1, %v932_v55 }
 0x1c8   : > { %v1021_v59 = vpop.permute.xlu1 %1020 }
 0x1ca   : > { %8707 = vmatpush3.xpose.msk.msra.mxu1 %vm578_vm1, %v932_v55 }
 0x1cc   : > { %v1023_v57 = vpop.permute.xlu0 %1022 }
 0x1cd   : > { %8709 = vmatmul.mubr.msk.f32.vlgmr.msra.gmra.mxu1 %vm578_vm1, %v10063_v13  ;;  %8711 = vmatprep.subr.msk.mxu1 %vm578_vm1, %v1023_v57 }
 0x1ce   : > { %8712 = vmatpush3.xpose.msk.msra.mxu1 %vm578_vm1, %v1023_v57  ;;  %8715 = vmatprep.mubr.msk.f32.mxu1 %vm578_vm1, %v10071_v17 }
 0x1cf   : > { %8713 = vmatprep.subr.msk.mxu1 %vm578_vm1, %v1021_v59 }
 0x1d0   : > { %v1110_v0 = vpop.permute.xlu1 %1109 }
 0x1d2   : > { %8714 = vmatpush3.xpose.msk.msra.mxu1 %vm578_vm1, %v1021_v59 }
 0x1d4   : > { %v1112_v62 = vpop.permute.xlu0 %1111 }
 0x1d5   : > { %8716 = vmatmul.mubr.msk.f32.vlgmr.msra.gmra.mxu1 %vm578_vm1, %v10079_v21  ;;  %8718 = vmatprep.subr.msk.mxu1 %vm578_vm1, %v1112_v62 }
 0x1d6   : > { %8719 = vmatpush3.xpose.msk.msra.mxu1 %vm578_vm1, %v1112_v62  ;;  %8722 = vmatprep.mubr.msk.f32.mxu1 %vm578_vm1, %v10087_v25 }
 0x1d7   : > { %8720 = vmatprep.subr.msk.mxu1 %vm578_vm1, %v1110_v0 }
 0x1d8   : > { %v1199_v3 = vpop.permute.xlu1 %1198 }
 0x1da   : > { %8721 = vmatpush3.xpose.msk.msra.mxu1 %vm578_vm1, %v1110_v0 }
 0x1dc   : > { %v1201_v2 = vpop.permute.xlu0 %1200 }
 0x1dd   : > { %8723 = vmatmul.mubr.msk.f32.vlgmr.msra.gmra.mxu1 %vm578_vm1, %v10096_v29  ;;  %8725 = vmatprep.subr.msk.mxu1 %vm578_vm1, %v1201_v2 }
 0x1de   : > { %8726 = vmatpush3.xpose.msk.msra.mxu1 %vm578_vm1, %v1201_v2  ;;  %8729 = vmatprep.mubr.msk.f32.mxu1 %vm578_vm1, %v10104_v33 }
 0x1df   : > { %8727 = vmatprep.subr.msk.mxu1 %vm578_vm1, %v1199_v3 }
 0x1e2   : > { %8728 = vmatpush3.xpose.msk.msra.mxu1 %vm578_vm1, %v1199_v3 }
 0x1e3   : > { %8732 = vmatprep.subr.mxu1 %v9996_v47 }
 0x1e5   : > { %8730 = vmatmul.mubr.msk.f32.vlgmr.msra.gmra.mxu1 %vm578_vm1, %v10112_v37 }
 0x1e6   : > { %8733 = vmatpush3.msra.mxu1 %v9996_v47 }
 0x1e7   : > { %8734 = vmatprep.subr.mxu1 %v9988_v43 }
 0x1e8   : > { %8735 = vmatpush3.msra.mxu1 %v9988_v43 }
 0x1e9   : > { %8739 = vmatprep.subr.mxu1 %v10009_v54 }
 0x26d   : > { %v8682_v5 = vpop.f32.mrf.mxu1 }
 0x26e   : > { %v10203_v7 = vmul.f32 0.25, %v8682_v5 }
 0x26f   : > { %v653_v10 = vpop.f32.mrf.mxu1 }
 0x270   : > { %v10205_v12 = vmul.f32 0.25, %v653_v10  ;;  %v1304_v14 = vsel %vm578_vm1, %v10203_v7, -inf }
 0x271   : > { %1305 = vmax.xlane.f32.xlu1 %v1304_v14 }
 0x272   : > { %v1301_v16 = vsel %vm578_vm1, %v10205_v12, -inf }
 0x273   : > { %1302 = vmax.xlane.f32.xlu0 %v1301_v16 }
 0x275   : > { %v8689_v18 = vpop.f32.mrf.mxu1 }
 0x276   : > { %v10211_v20 = vmul.f32 0.25, %v8689_v18 }
 0x277   : > { %v742_v22 = vpop.f32.mrf.mxu1 }
 0x278   : > { %v10213_v24 = vmul.f32 0.25, %v742_v22  ;;  %v1310_v26 = vsel %vm578_vm1, %v10211_v20, -inf }
 0x279   : > { %1311 = vmax.xlane.f32.xlu0 %v1310_v26 }
 0x27a   : > { %v1307_v28 = vsel %vm578_vm1, %v10213_v24, -inf }
 0x27d   : > { %1308 = vmax.xlane.f32.xlu0 %v1307_v28  ;;  %v8696_v30 = vpop.f32.mrf.mxu1 }
 0x27e   : > { %v10219_v32 = vmul.f32 0.25, %v8696_v30 }
 0x27f   : > { %v831_v34 = vpop.f32.mrf.mxu1 }
 0x280   : > { %v10221_v36 = vmul.f32 0.25, %v831_v34  ;;  %v1316_v38 = vsel %vm578_vm1, %v10219_v32, -inf }
 0x281   : > { %1317 = vmax.xlane.f32.xlu0 %v1316_v38 }
 0x282   : > { %v1313_v40 = vsel %vm578_vm1, %v10221_v36, -inf }
 0x283   : > { %1314 = vmax.xlane.f32.xlu1 %v1313_v40 }
 0x285   : > { %v8703_v42 = vpop.f32.mrf.mxu1 }
 0x286   : > { %v10227_v44 = vmul.f32 0.25, %v8703_v42 }
 0x287   : > { %v920_v46 = vpop.f32.mrf.mxu1 }
 0x288   : > { %v10229_v48 = vmul.f32 0.25, %v920_v46  ;;  %v1322_v49 = vsel %vm578_vm1, %v10227_v44, -inf }
 0x289   : > { %1323 = vmax.xlane.f32.xlu1 %v1322_v49 }
 0x28a   : > { %v1319_v51 = vsel %vm578_vm1, %v10229_v48, -inf }
 0x28d   : > { %1320 = vmax.xlane.f32.xlu1 %v1319_v51  ;;  %v8710_v53 = vpop.f32.mrf.mxu1 }
 0x28e   : > { %v10235_v55 = vmul.f32 0.25, %v8710_v53  ;;  %v10277_v53 = vpop.permute.xlu1 %2149 }
 0x28f   : > { %v1009_v57 = vpop.f32.mrf.mxu1 }
 0x290   : > { %v10237_v59 = vmul.f32 0.25, %v1009_v57  ;;  %v1328_v62 = vsel %vm578_vm1, %v10235_v55, -inf }
 0x291   : > { %1329 = vmax.xlane.f32.xlu0 %v1328_v62 }
 0x292   : > { %v1325_v0 = vsel %vm578_vm1, %v10237_v59, -inf  ;;  %v10279_v57 = vpop.permute.xlu1 %2240 }
 0x295   : > { %1326 = vmax.xlane.f32.xlu0 %v1325_v0  ;;  %v8717_v2 = vpop.f32.mrf.mxu1  ;;  %v10283_v0 = vpop.permute.xlu0 %2147 }
 0x296   : > { %v10243_v3 = vmul.f32 0.25, %v8717_v2  ;;  %v10281_v62 = vpop.permute.xlu1 %2143 }
 0x297   : > { %v1098_v5 = vpop.f32.mrf.mxu1 }
 0x298   : > { %v10245_v10 = vmul.f32 0.25, %v1098_v5  ;;  %v1334_v14 = vsel %vm578_vm1, %v10243_v3, -inf }
 0x299   : > { %1335 = vmax.xlane.f32.xlu1 %v1334_v14  ;;  %v10289_v5 = vpop.permute.xlu0 %2145 }
 0x29a   : > { %v1331_v16 = vsel %vm578_vm1, %v10245_v10, -inf  ;;  %v10287_v2 = vpop.permute.xlu1 %2238 }
 0x29d   : > { %1332 = vmax.xlane.f32.xlu1 %v1331_v16  ;;  %v8724_v18 = vpop.f32.mrf.mxu1  ;;  %v10293_v16 = vpop.permute.xlu0 %2331 }
 0x29e   : > { %v10251_v22 = vmul.f32 0.25, %v8724_v18  ;;  %v10291_v14 = vpop.permute.xlu1 %2234 }
 0x29f   : > { %v1187_v26 = vpop.f32.mrf.mxu1 }
 0x2a0   : > { %v10253_v28 = vmul.f32 0.25, %v1187_v26  ;;  %v1340_v30 = vsel %vm578_vm1, %v10251_v22, -inf }
 0x2a1   : > { %1341 = vmax.xlane.f32.xlu0 %v1340_v30  ;;  %v10297_v26 = vpop.permute.xlu0 %2236 }
 0x2a2   : > { %v1337_v34 = vsel %vm578_vm1, %v10253_v28, -inf  ;;  %v10295_v18 = vpop.permute.xlu1 %2329 }
 0x2a5   : > { %1338 = vmax.xlane.f32.xlu0 %v1337_v34  ;;  %v8731_v38 = vpop.f32.mrf.mxu1 }
 0x2a6   : > { %v10259_v40 = vmul.f32 0.25, %v8731_v38 }
 0x2a7   : > { %v1276_v46 = vpop.f32.mrf.mxu1 }
 0x2a8   : > { %v1346_v42 = vsel %vm578_vm1, %v10259_v40, -inf  ;;  %v10273_v49 = vmul.f32 0.25, %v1276_v46 }
 0x2a9   : > { %1347 = vmax.xlane.f32.xlu0 %v1346_v42 }
 0x2aa   : > { %v1343_v51 = vsel %vm578_vm1, %v10273_v49, -inf }
 0x2ae   : > { %2325 = vrot.lane.b32.xlu1 %v10022_v60, %s9737_s30 }
 0x2b2   : > { %2420 = vrot.lane.b32.xlu1 %v10035_v1, %s9736_s19 }
 0x2bf   : > { %2422 = vrot.lane.b32.xlu0 %v10040_v4, %s9736_s19 }
 0x2c3   : > { %2327 = vrot.lane.b32.xlu0 %v10025_v61, %s9737_s30 }
 0x2c7   : > { %2513 = vrot.lane.b32.xlu0 %v10063_v13, %s9736_s19 }
 0x2d6   : > { %1344 = vmax.xlane.f32.xlu1 %v1343_v51 }
 0x2e7   : > { %2416 = vrot.lane.b32.xlu1 %v10035_v1, %s9737_s30 }
 0x2fa   : > { %v1306_v30 = vpop.xlane.xlu1 %1305 }
 0x2fb   : > { %v1350_v34 = vsub.f32 %v10203_v7, %v1306_v30 }
 0x2fc   : > { %v1303_v38 = vpop.xlane.xlu0 %1302 }
 0x2fd   : > { %v1367_v42 = vmul.f32 1.442695, %v1350_v34  ;;  %v1349_v46 = vsub.f32 %v10205_v12, %v1303_v38 }
 0x2ff   : > { %9321 = vpow2.f32 %v1367_v42  ;;  %v1365_v51 = vmul.f32 1.442695, %v1349_v46 }
 0x301   : > { %9323 = vpow2.f32 %v1365_v51 }
 0x302   : > { %v1312_v1 = vpop.xlane.xlu0 %1311 }
 0x303   : > { %v1352_v61 = vsub.f32 %v10211_v20, %v1312_v1 }
 0x305   : > { %v1371_v60 = vmul.f32 1.442695, %v1352_v61 }
 0x306   : > { %v1309_v52 = vpop.xlane.xlu0 %1308 }
 0x307   : > { %9325 = vpow2.f32 %v1371_v60  ;;  %v1351_v56 = vsub.f32 %v10213_v24, %v1309_v52 }
 0x309   : > { %v1369_v45 = vmul.f32 1.442695, %v1351_v56 }
 0x30a   : > { %v1318_v41 = vpop.xlane.xlu0 %1317 }
 0x30b   : > { %9327 = vpow2.f32 %v1369_v45  ;;  %v1354_v7 = vsub.f32 %v10219_v32, %v1318_v41 }
 0x30c   : > { %v10304_v30 = vpop.eup %9321  ;;  %v1315_v34 = vpop.xlane.xlu1 %1314 }
 0x30d   : > { %v1375_v12 = vmul.f32 1.442695, %v1354_v7  ;;  %v1353_v38 = vsub.f32 %v10221_v36, %v1315_v34  ;;  %v1400_v42 = vsel %vm578_vm1, %v10304_v30, 0.0 }
 0x30e   : > { %v10309_v1 = vpop.eup %9323  ;;  %1401 = vadd.xlane.f32.xlu0 %v1400_v42 }
 0x30f   : > { %9329 = vpow2.f32 %v1375_v12  ;;  %v1373_v60 = vmul.f32 1.442695, %v1353_v38  ;;  %v1397_v52 = vsel %vm578_vm1, %v10309_v1, 0.0 }
 0x310   : > { %1398 = vadd.xlane.f32.xlu1 %v1397_v52 }
 0x311   : > { %9331 = vpow2.f32 %v1373_v60 }
 0x312   : > { %v1324_v41 = vpop.xlane.xlu1 %1323 }
 0x313   : > { %v1356_v45 = vsub.f32 %v10227_v44, %v1324_v41 }
 0x314   : > { %v10314_v56 = vpop.eup %9325 }
 0x315   : > { %v1379_v61 = vmul.f32 1.442695, %v1356_v45  ;;  %v1406_v20 = vsel %vm578_vm1, %v10314_v56, 0.0 }
 0x316   : > { %v1321_v24 = vpop.xlane.xlu1 %1320  ;;  %1407 = vadd.xlane.f32.xlu0 %v1406_v20 }
 0x317   : > { %9333 = vpow2.f32 %v1379_v61  ;;  %v1355_v32 = vsub.f32 %v10229_v48, %v1321_v24 }
 0x318   : > { %v10319_v36 = vpop.eup %9327 }
 0x319   : > { %v1377_v46 = vmul.f32 1.442695, %v1355_v32  ;;  %v1403_v51 = vsel %vm578_vm1, %v10319_v36, 0.0 }
 0x31a   : > { %v1330_v7 = vpop.xlane.xlu0 %1329  ;;  %1404 = vadd.xlane.f32.xlu1 %v1403_v51 }
 0x31b   : > { %9335 = vpow2.f32 %v1377_v46  ;;  %v1358_v44 = vsub.f32 %v10235_v55, %v1330_v7 }
 0x31c   : > { %v10324_v34 = vpop.eup %9329 }
 0x31d   : > { %v1383_v12 = vmul.f32 1.442695, %v1358_v44  ;;  %v1412_v38 = vsel %vm578_vm1, %v10324_v34, 0.0 }
 0x31e   : > { %v10328_v42 = vpop.eup %9331  ;;  %v1327_v48 = vpop.xlane.xlu0 %1326  ;;  %1413 = vadd.xlane.f32.xlu0 %v1412_v38 }
 0x31f   : > { %9337 = vpow2.f32 %v1383_v12  ;;  %v1357_v60 = vsub.f32 %v10237_v59, %v1327_v48  ;;  %v1409_v52 = vsel %vm578_vm1, %v10328_v42, 0.0 }
 0x320   : > { %1410 = vadd.xlane.f32.xlu1 %v1409_v52 }
 0x321   : > { %v1381_v41 = vmul.f32 1.442695, %v1357_v60 }
 0x322   : > { %v1336_v45 = vpop.xlane.xlu1 %1335 }
 0x323   : > { %9339 = vpow2.f32 %v1381_v41  ;;  %v1360_v55 = vsub.f32 %v10243_v3, %v1336_v45 }
 0x324   : > { %v10334_v61 = vpop.eup %9333 }
 0x325   : > { %v1387_v20 = vmul.f32 1.442695, %v1360_v55  ;;  %v1418_v24 = vsel %vm578_vm1, %v10334_v61, 0.0 }
 0x326   : > { %v1333_v32 = vpop.xlane.xlu1 %1332  ;;  %1419 = vadd.xlane.f32.xlu1 %v1418_v24 }
 0x327   : > { %9341 = vpow2.f32 %v1387_v20  ;;  %v1359_v59 = vsub.f32 %v10245_v10, %v1333_v32 }
 0x328   : > { %v10339_v46 = vpop.eup %9335 }
 0x329   : > { %v1385_v51 = vmul.f32 1.442695, %v1359_v59  ;;  %v1415_v7 = vsel %vm578_vm1, %v10339_v46, 0.0 }
 0x32a   : > { %v1342_v44 = vpop.xlane.xlu0 %1341  ;;  %1416 = vadd.xlane.f32.xlu1 %v1415_v7 }
 0x32b   : > { %9343 = vpow2.f32 %v1385_v51  ;;  %v1362_v3 = vsub.f32 %v10251_v22, %v1342_v44 }
 0x32c   : > { %v10344_v12 = vpop.eup %9337 }
 0x32d   : > { %v1391_v38 = vmul.f32 1.442695, %v1362_v3  ;;  %v1424_v48 = vsel %vm578_vm1, %v10344_v12, 0.0 }
 0x32e   : > { %v1339_v60 = vpop.xlane.xlu0 %1338  ;;  %1425 = vadd.xlane.f32.xlu0 %v1424_v48  ;;  %v10376_v48 = vpop.permute.xlu1 %2325 }
 0x32f   : > { %9345 = vpow2.f32 %v1391_v38  ;;  %v1361_v10 = vsub.f32 %v10253_v28, %v1339_v60 }
 0x330   : > { %v10349_v52 = vpop.eup %9339 }
 0x331   : > { %v1389_v41 = vmul.f32 1.442695, %v1361_v10  ;;  %v1421_v45 = vsel %vm578_vm1, %v10349_v52, 0.0 }
 0x332   : > { %1422 = vadd.xlane.f32.xlu0 %v1421_v45  ;;  %v1348_v55 = vpop.xlane.xlu0 %1347  ;;  %v10378_v60 = vpop.permute.xlu1 %2420 }
 0x333   : > { %9347 = vpow2.f32 %v1389_v41  ;;  %v1364_v22 = vsub.f32 %v10259_v40, %v1348_v55 }
 0x334   : > { %v10354_v20 = vpop.eup %9341 }
 0x335   : > { %v1395_v24 = vmul.f32 1.442695, %v1364_v22  ;;  %v1430_v32 = vsel %vm578_vm1, %v10354_v20, 0.0 }
 0x336   : > { %1431 = vadd.xlane.f32.xlu1 %v1430_v32  ;;  %v10409_v22 = vpop.permute.xlu0 %2422 }
 0x337   : > { %9349 = vpow2.f32 %v1395_v24 }
 0x338   : > { %v10358_v28 = vpop.eup %9343 }
 0x339   : > { %v1427_v59 = vsel %vm578_vm1, %v10358_v28, 0.0 }
 0x33a   : > { %1428 = vadd.xlane.f32.xlu1 %v1427_v59  ;;  %v10415_v24 = vpop.permute.xlu0 %2327 }
 0x33c   : > { %v10362_v51 = vpop.eup %9345 }
 0x33d   : > { %v1436_v7 = vsel %vm578_vm1, %v10362_v51, 0.0 }
 0x33e   : > { %1437 = vadd.xlane.f32.xlu0 %v1436_v7  ;;  %v10419_v32 = vpop.permute.xlu0 %2513 }
 0x340   : > { %v10366_v40 = vpop.eup %9347 }
 0x341   : > { %v1433_v44 = vsel %vm578_vm1, %v10366_v40, 0.0 }
 0x342   : > { %1434 = vadd.xlane.f32.xlu0 %v1433_v44 }
 0x344   : > { %v10370_v3 = vpop.eup %9349 }
 0x345   : > { %v1442_v38 = vsel %vm578_vm1, %v10370_v3, 0.0 }
 0x346   : > { %1443 = vadd.xlane.f32.xlu0 %v1442_v38 }
 0x34b   : > { %2511 = vrot.lane.b32.xlu1 %v10051_v9, %s9736_s19 }
 0x35c   : > { %2418 = vrot.lane.b32.xlu0 %v10040_v4, %s9737_s30 }
 0x35f   : > { %v1345_v10 = vpop.xlane.xlu1 %1344 }
 0x360   : > { %v1363_v41 = vsub.f32 %v10273_v49, %v1345_v10  ;;  %2604 = vrot.lane.b32.xlu0 %v10079_v21, %s9736_s19 }
 0x362   : > { %v1393_v45 = vmul.f32 1.442695, %v1363_v41 }
 0x363   : > { %v10423_v59 = vpop.permute.xlu1 %2416 }
 0x364   : > { %9351 = vpow2.f32 %v1393_v45  ;;  %2509 = vrot.lane.b32.xlu0 %v10063_v13, %s9737_s30 }
 0x368   : > { %2695 = vrot.lane.b32.xlu0 %v10096_v29, %s9736_s19 }
 0x36c   : > { %2600 = vrot.lane.b32.xlu0 %v10079_v21, %s9737_s30 }
 0x370   : > { %2786 = vrot.lane.b32.xlu0 %v10112_v37, %s9736_s19 }
 0x371   : > { %v10393_v55 = vpop.eup %9351 }
 0x372   : > { %v1439_v49 = vsel %vm578_vm1, %v10393_v55, 0.0 }
 0x373   : > { %1440 = vadd.xlane.f32.xlu1 %v1439_v49 }
 0x374   : > { %2691 = vrot.lane.b32.xlu0 %v10096_v29, %s9737_s30 }
 0x378   : > { %2780 = vrot.lane.b32.xlu0 %v10104_v33, %s9737_s30 }
 0x37c   : > { %3081 = vrot.lane.b32.xlu0 %v9988_v43, %s9737_s30 }
 0x380   : > { %3170 = vrot.lane.b32.xlu0 %v10001_v50, %s9737_s30 }
 0x384   : > { %3350 = vrot.lane.b32.xlu0 %v10043_v6, %s9737_s30  ;;  %2507 = vrot.lane.b32.xlu1 %v10051_v9, %s9737_s30 }
 0x388   : > { %2602 = vrot.lane.b32.xlu1 %v10071_v17, %s9736_s19 }
 0x38c   : > { %2598 = vrot.lane.b32.xlu1 %v10071_v17, %s9737_s30 }
 0x390   : > { %2693 = vrot.lane.b32.xlu1 %v10087_v25, %s9736_s19 }
 0x394   : > { %2689 = vrot.lane.b32.xlu1 %v10087_v25, %s9737_s30 }
 0x397   : > { %v1402_v7 = vpop.xlane.xlu0 %1401 }
 0x398   : > { %9353 = vrcp.f32 %v1402_v7  ;;  %2784 = vrot.lane.b32.xlu1 %v10104_v33, %s9736_s19  ;;  %s11929_s19 = scalar_lea.vmem [#allocation8], %s8057_s18  ;;  %s8347_s18 = sshll.u32 %s9801_s25, 11 }
 0x399   : > { %v1399_v44 = vpop.xlane.xlu1 %1398  ;;  %s11992_s11 = scalar_lea.hbm %s12047_s5, %s8347_s18  ;;  %s7905_s25 = scalar_lea.sflag [#allocation4], %s9913_s17 }
 0x39a   : > { %9355 = vrcp.f32 %v1399_v44 }
 0x39c   : > { %2782 = vrot.lane.b32.xlu1 %v10112_v37, %s9737_s30 }
 0x39f   : > { %v1408_v38 = vpop.xlane.xlu0 %1407 }
 0x3a0   : > { %9357 = vrcp.f32 %v1408_v38  ;;  %3083 = vrot.lane.b32.xlu1 %v9996_v47, %s9737_s30 }
 0x3a3   : > { %v1405_v10 = vpop.xlane.xlu1 %1404 }
 0x3a4   : > { %9359 = vrcp.f32 %v1405_v10  ;;  %3172 = vrot.lane.b32.xlu1 %v10009_v54, %s9737_s30 }
 0x3a5   : > { %v9354_v41 = vpop.eup %9353 }
 0x3a6   : > { %v1462_v45 = vmul.f32 %v9354_v41, %v10304_v30 }
 0x3a7   : > { %v9356_v49 = vpop.eup %9355  ;;  %v1414_v7 = vpop.xlane.xlu0 %1413 }
 0x3a8   : > { %9361 = vrcp.f32 %v1414_v7  ;;  %3261 = vrot.lane.b32.xlu1 %v10028_v63, %s9737_s30  ;;  %v1461_v44 = vmul.f32 %v9356_v49, %v10309_v1  ;;  %1478 = vst.msk [vmem:[%s10437_s7 + $0x8] sm:$0xff] %vm578_vm1, %v1462_v45 }
 0x3a9   : > { %v1411_v38 = vpop.xlane.xlu1 %1410 }
 0x3aa   : > { %9363 = vrcp.f32 %v1411_v38  ;;  %1477 = vst.msk [vmem:[%s10437_s7] sm:$0xff] %vm578_vm1, %v1461_v44  ;;  %8736 = vmatprep.mubr.msk.f32.mxu1 %vm578_vm1, %v1461_v44 }
 0x3ab   : > { %8737 = vmatmul.mubr.msk.f32.vlgmr.msra.gmra.mxu1 %vm578_vm1, %v1462_v45 }
 0x3ac   : > { %8740 = vmatpush3.msra.mxu1 %v10009_v54  ;;  %3259 = vrot.lane.b32.xlu1 %v10017_v58, %s9737_s30 }
 0x3ad   : > { %v9358_v30 = vpop.eup %9357  ;;  %8741 = vmatprep.subr.mxu1 %v10001_v50 }
 0x3ae   : > { %8742 = vmatpush3.msra.mxu1 %v10001_v50  ;;  %v1464_v1 = vmul.f32 %v9358_v30, %v10314_v56 }
 0x3af   : > { %8746 = vmatprep.subr.mxu1 %v10028_v63  ;;  %v1420_v10 = vpop.xlane.xlu1 %1419 }
 0x3b0   : > { %9365 = vrcp.f32 %v1420_v10  ;;  %3348 = vrot.lane.b32.xlu1 %v10048_v8, %s9737_s30  ;;  %1480 = vst.msk [vmem:[%s10437_s7 + $0x48] sm:$0xff] %vm578_vm1, %v1464_v1 }
 0x3b1   : > { %v9360_v41 = vpop.eup %9359 }
 0x3b2   : > { %v1463_v45 = vmul.f32 %v9360_v41, %v10319_v36 }
 0x3b3   : > { %v1417_v49 = vpop.xlane.xlu1 %1416 }
 0x3b4   : > { %9367 = vrcp.f32 %v1417_v49  ;;  %1479 = vst.msk [vmem:[%s10437_s7 + $0x40] sm:$0xff] %vm578_vm1, %v1463_v45  ;;  %8743 = vmatprep.mubr.msk.f32.mxu1 %vm578_vm1, %v1463_v45  ;;  %v569_v49 = vpop.f32.mrf.mxu0 }
 0x3b5   : > { %v9362_v56 = vpop.eup %9361  ;;  %8744 = vmatmul.mubr.msk.f32.vlgmr.msra.gmra.mxu1 %vm578_vm1, %v1464_v1 }
 0x3b6   : > { %8747 = vmatpush3.msra.mxu1 %v10028_v63  ;;  %v1466_v7 = vmul.f32 %v9362_v56, %v10324_v34 }
 0x3b7   : > { %v9364_v44 = vpop.eup %9363  ;;  %8748 = vmatprep.subr.mxu1 %v10017_v58  ;;  %v1426_v38 = vpop.xlane.xlu0 %1425 }
 0x3b8   : > { %9369 = vrcp.f32 %v1426_v38  ;;  %8749 = vmatpush3.msra.mxu1 %v10017_v58  ;;  %v1465_v36 = vmul.f32 %v9364_v44, %v10328_v42  ;;  %1482 = vst.msk [vmem:[%s10437_s7 + $0x88] sm:$0xff] %vm578_vm1, %v1466_v7 }
 0x3b9   : > { %8760 = vmatprep.subr.mxu1 %v10066_v15 }
 0x3ba   : > { %1481 = vst.msk [vmem:[%s10437_s7 + $0x80] sm:$0xff] %vm578_vm1, %v1465_v36  ;;  %8750 = vmatprep.mubr.msk.f32.mxu1 %vm578_vm1, %v1465_v36 }
 0x3bb   : > { %v1423_v30 = vpop.xlane.xlu0 %1422  ;;  %8751 = vmatmul.mubr.msk.f32.vlgmr.msra.gmra.mxu1 %vm578_vm1, %v1466_v7  ;;  %v10492_v7 = vadd.f32 %v569_v49, %v9982_v39 }
 0x3bc   : > { %9371 = vrcp.f32 %v1423_v30  ;;  %8761 = vmatpush3.msra.mxu1 %v10066_v15 }
 0x3bd   : > { %v9366_v34 = vpop.eup %9365  ;;  %8762 = vmatprep.subr.mxu1 %v10056_v11 }
 0x3be   : > { %v1468_v42 = vmul.f32 %v9366_v34, %v10334_v61  ;;  %8763 = vmatpush3.msra.mxu1 %v10056_v11 }
 0x3bf   : > { %8774 = vmatprep.subr.mxu1 %v10099_v31  ;;  %v1432_v1 = vpop.xlane.xlu1 %1431 }
 0x3c0   : > { %1484 = vst.msk [vmem:[%s10437_s7 + $0xc8] sm:$0xff] %vm578_vm1, %v1468_v42  ;;  %9373 = vrcp.f32 %v1432_v1 }
 0x3c1   : > { %v9368_v10 = vpop.eup %9367 }
 0x3c2   : > { %v1467_v41 = vmul.f32 %v9368_v10, %v10339_v46 }
 0x3c3   : > { %v1429_v45 = vpop.xlane.xlu1 %1428 }
 0x3c4   : > { %9375 = vrcp.f32 %v1429_v45  ;;  %1483 = vst.msk [vmem:[%s10437_s7 + $0xc0] sm:$0xff] %vm578_vm1, %v1467_v41  ;;  %8757 = vmatprep.mubr.msk.f32.mxu0 %vm578_vm1, %v1467_v41 }
 0x3c5   : > { %v9370_v61 = vpop.eup %9369  ;;  %8758 = vmatmul.mubr.msk.f32.vlgmr.msra.gmra.mxu0 %vm578_vm1, %v1468_v42 }
 0x3c6   : > { %8768 = vmatpush3.msra.mxu0 %v10082_v23  ;;  %v1470_v56 = vmul.f32 %v9370_v61, %v10344_v12 }
 0x3c7   : > { %8769 = vmatprep.subr.mxu0 %v10074_v19  ;;  %v1438_v46 = vpop.xlane.xlu0 %1437 }
 0x3c8   : > { %9377 = vrcp.f32 %v1438_v46  ;;  %8770 = vmatpush3.msra.mxu0 %v10074_v19  ;;  %1486 = vst.msk [vmem:[%s10437_s7 + $0x108] sm:$0xff] %vm578_vm1, %v1470_v56 }
 0x3c9   : > { %v9372_v44 = vpop.eup %9371  ;;  %8781 = vmatprep.subr.mxu0 %v10492_v7 }
 0x3ca   : > { %v1469_v38 = vmul.f32 %v9372_v44, %v10349_v52 }
 0x3cb   : > { %v1435_v36 = vpop.xlane.xlu0 %1434 }
 0x3cc   : > { %9379 = vrcp.f32 %v1435_v36  ;;  %1485 = vst.msk [vmem:[%s10437_s7 + $0x100] sm:$0xff] %vm578_vm1, %v1469_v38  ;;  %8764 = vmatprep.mubr.msk.f32.mxu1 %vm578_vm1, %v1469_v38 }
 0x3cd   : > { %v9374_v39 = vpop.eup %9373  ;;  %8765 = vmatmul.mubr.msk.f32.vlgmr.msra.gmra.mxu1 %vm578_vm1, %v1470_v56 }
 0x3ce   : > { %8775 = vmatpush3.msra.mxu1 %v10099_v31  ;;  %v1472_v12 = vmul.f32 %v9374_v39, %v10354_v20 }
 0x3cf   : > { %8776 = vmatprep.subr.mxu1 %v10091_v27  ;;  %v1444_v30 = vpop.xlane.xlu0 %1443 }
 0x3d0   : > { %9381 = vrcp.f32 %v1444_v30  ;;  %8777 = vmatpush3.msra.mxu1 %v10091_v27  ;;  %1488 = vst.msk [vmem:[%s10437_s7 + $0x148] sm:$0xff] %vm578_vm1, %v1472_v12 }
 0x3d1   : > { %v9376_v52 = vpop.eup %9375  ;;  %8788 = vmatprep.subr.msk.mxu1 %vm578_vm1, %v10277_v53 }
 0x3d2   : > { %v1471_v34 = vmul.f32 %v9376_v52, %v10358_v28 }
 0x3d3   : > { %v2419_v41 = vpop.permute.xlu0 %2418 }
 0x3d4   : > { %1487 = vst.msk [vmem:[%s10437_s7 + $0x140] sm:$0xff] %vm578_vm1, %v1471_v34  ;;  %8771 = vmatprep.mubr.msk.f32.mxu0 %vm578_vm1, %v1471_v34 }
 0x3d5   : > { %v9378_v20 = vpop.eup %9377  ;;  %8772 = vmatmul.mubr.msk.f32.vlgmr.msra.gmra.mxu0 %vm578_vm1, %v1472_v12 }
 0x3d6   : > { %8782 = vmatpush3.msra.mxu0 %v10492_v7  ;;  %v1474_v42 = vmul.f32 %v9378_v20, %v10362_v51 }
 0x3d7   : > { %8783 = vmatprep.subr.mxu0 %v10107_v35 }
 0x3d8   : > { %8784 = vmatpush3.msra.mxu0 %v10107_v35  ;;  %1490 = vst.msk [vmem:[%s10437_s7 + $0x188] sm:$0xff] %vm578_vm1, %v1474_v42 }
 0x3d9   : > { %v9380_v1 = vpop.eup %9379  ;;  %8795 = vmatprep.subr.msk.mxu0 %vm578_vm1, %v10279_v57 }
 0x3da   : > { %v1473_v28 = vmul.f32 %v9380_v1, %v10366_v40 }
 0x3dc   : > { %1489 = vst.msk [vmem:[%s10437_s7 + $0x180] sm:$0xff] %vm578_vm1, %v1473_v28  ;;  %8778 = vmatprep.mubr.msk.f32.mxu1 %vm578_vm1, %v1473_v28 }
 0x3dd   : > { %v9382_v10 = vpop.eup %9381  ;;  %8779 = vmatmul.mubr.msk.f32.vlgmr.msra.gmra.mxu1 %vm578_vm1, %v1474_v42 }
 0x3de   : > { %8789 = vmatpush3.xpose.msk.msra.mxu1 %vm578_vm1, %v10277_v53  ;;  %8792 = vmatprep.mubr.msk.f32.mxu1 %vm578_vm1, %v10281_v62  ;;  %v1476_v51 = vmul.f32 %v9382_v10, %v10370_v3  ;;  %v2605_v53 = vpop.permute.xlu0 %2604 }
 0x3df   : > { %8790 = vmatprep.subr.msk.mxu1 %vm578_vm1, %v10283_v0 }
 0x3e0   : > { %1492 = vst.msk [vmem:[%s10437_s7 + $0x1c8] sm:$0xff] %vm578_vm1, %v1476_v51 }
 0x3e2   : > { %8791 = vmatpush3.xpose.msk.msra.mxu1 %vm578_vm1, %v10283_v0  ;;  %v2510_v62 = vpop.permute.xlu0 %2509  ;;  %v2512_v0 = vpop.permute.xlu1 %2511 }
 0x3e3   : > { %8802 = vmatprep.subr.msk.mxu1 %vm578_vm1, %v10293_v16 }
 0x3e5   : > { %8793 = vmatmul.mubr.msk.f32.vlgmr.msra.gmra.mxu1 %vm578_vm1, %v10289_v5 }
 0x3e6   : > { %8803 = vmatpush3.xpose.msk.msra.mxu1 %vm578_vm1, %v10293_v16  ;;  %8806 = vmatprep.mubr.msk.f32.mxu1 %vm578_vm1, %v10376_v48  ;;  %v2696_v5 = vpop.permute.xlu0 %2695 }
 0x3e7   : > { %8804 = vmatprep.subr.msk.mxu1 %vm578_vm1, %v10295_v18 }
 0x3ea   : > { %8805 = vmatpush3.xpose.msk.msra.mxu1 %vm578_vm1, %v10295_v18  ;;  %v2601_v3 = vpop.permute.xlu0 %2600 }
 0x3eb   : > { %8816 = vmatprep.subr.msk.mxu1 %vm578_vm1, %v10419_v32 }
 0x3ed   : > { %8807 = vmatmul.mubr.msk.f32.vlgmr.msra.gmra.mxu1 %vm578_vm1, %v10415_v24 }
 0x3ee   : > { %8817 = vmatpush3.xpose.msk.msra.mxu1 %vm578_vm1, %v10419_v32  ;;  %v2787_v32 = vpop.permute.xlu0 %2786 }
 0x3ef   : > { %8818 = vmatprep.subr.msk.mxu1 %vm578_vm1, %v2512_v0 }
 0x3f2   : > { %8819 = vmatpush3.xpose.msk.msra.mxu1 %vm578_vm1, %v2512_v0  ;;  %v2692_v61 = vpop.permute.xlu0 %2691 }
 0x3f3   : > { %8830 = vmatprep.subr.msk.mxu1 %vm578_vm1, %v2696_v5 }
 0x3fc   : > { %v1441_v16 = vpop.xlane.xlu1 %1440 }
 0x3fd   : > { %9383 = vrcp.f32 %v1441_v16 }
 0x400   : > { %v2508_v18 = vpop.permute.xlu1 %2507 }
 0x401   : > { %8820 = vmatprep.mubr.msk.f32.mxu1 %vm578_vm1, %v2508_v18 }
 0x402   : > { %8821 = vmatmul.mubr.msk.f32.vlgmr.msra.gmra.mxu1 %vm578_vm1, %v2510_v62 }
 0x403   : > { %8831 = vmatpush3.xpose.msk.msra.mxu1 %vm578_vm1, %v2696_v5 }
 0x404   : > { %v2603_v40 = vpop.permute.xlu1 %2602 }
 0x408   : > { %v2599_v48 = vpop.permute.xlu1 %2598 }
 0x40a   : > { %v9384_v24 = vpop.eup %9383 }
 0x40b   : > { %v1475_v45 = vmul.f32 %v9384_v24, %v10393_v55 }
 0x40c   : > { %v2694_v49 = vpop.permute.xlu1 %2693 }
 0x40d   : > { %1491 = vst.msk [vmem:[%s10437_s7 + $0x1c0] sm:$0xff] %vm578_vm1, %v1475_v45  ;;  %8785 = vmatprep.mubr.msk.f32.mxu0 %vm578_vm1, %v1475_v45  ;;  %8832 = vmatprep.subr.msk.mxu1 %vm578_vm1, %v2694_v49 }
 0x40e   : > { %8786 = vmatmul.mubr.msk.f32.vlgmr.msra.gmra.mxu0 %vm578_vm1, %v1476_v51  ;;  %8833 = vmatpush3.xpose.msk.msra.mxu1 %vm578_vm1, %v2694_v49 }
 0x40f   : > { %8796 = vmatpush3.xpose.msk.msra.mxu0 %vm578_vm1, %v10279_v57  ;;  %8799 = vmatprep.mubr.msk.f32.mxu0 %vm578_vm1, %v10291_v14  ;;  %v2781_v14 = vpop.permute.xlu0 %2780 }
 0x410   : > { %8797 = vmatprep.subr.msk.mxu0 %vm578_vm1, %v10287_v2  ;;  %v2690_v55 = vpop.permute.xlu1 %2689 }
 0x411   : > { %8834 = vmatprep.mubr.msk.f32.mxu1 %vm578_vm1, %v2690_v55 }
 0x412   : > { %8835 = vmatmul.mubr.msk.f32.vlgmr.msra.gmra.mxu1 %vm578_vm1, %v2692_v61 }
 0x413   : > { %8798 = vmatpush3.xpose.msk.msra.mxu0 %vm578_vm1, %v10287_v2 }
 0x414   : > { %8809 = vmatprep.subr.msk.mxu0 %vm578_vm1, %v10409_v22  ;;  %v2785_v56 = vpop.permute.xlu1 %2784 }
 0x416   : > { %8800 = vmatmul.mubr.msk.f32.vlgmr.msra.gmra.mxu0 %vm578_vm1, %v10297_v26  ;;  %v3082_v26 = vpop.permute.xlu0 %3081 }
 0x417   : > { %8810 = vmatpush3.xpose.msk.msra.mxu0 %vm578_vm1, %v10409_v22  ;;  %8813 = vmatprep.mubr.msk.f32.mxu0 %vm578_vm1, %v10423_v59 }
 0x418   : > { %8811 = vmatprep.subr.msk.mxu0 %vm578_vm1, %v10378_v60  ;;  %v2783_v57 = vpop.permute.xlu1 %2782 }
 0x41a   : > { %v3171_v59 = vpop.permute.xlu0 %3170 }
 0x41b   : > { %8812 = vmatpush3.xpose.msk.msra.mxu0 %vm578_vm1, %v10378_v60 }
 0x41c   : > { %8823 = vmatprep.subr.msk.mxu0 %vm578_vm1, %v2605_v53  ;;  %v3084_v2 = vpop.permute.xlu1 %3083 }
 0x41d   : > { %8844 = vmatprep.subr.mxu1 %v3084_v2 }
 0x41e   : > { %8814 = vmatmul.mubr.msk.f32.vlgmr.msra.gmra.mxu0 %vm578_vm1, %v2419_v41  ;;  %8845 = vmatpush3.msra.mxu1 %v3084_v2  ;;  %v10610_v46 = vpop.permute.xlu0 %3350 }
 0x41f   : > { %8824 = vmatpush3.xpose.msk.msra.mxu0 %vm578_vm1, %v2605_v53  ;;  %8827 = vmatprep.mubr.msk.f32.mxu0 %vm578_vm1, %v2599_v48 }
 0x420   : > { %8825 = vmatprep.subr.msk.mxu0 %vm578_vm1, %v2603_v40  ;;  %8846 = vmatprep.subr.mxu1 %v3082_v26  ;;  %v3173_v22 = vpop.permute.xlu1 %3172 }
 0x421   : > { %8847 = vmatpush3.msra.mxu1 %v3082_v26 }
 0x423   : > { %8826 = vmatpush3.xpose.msk.msra.mxu0 %vm578_vm1, %v2603_v40 }
 0x424   : > { %8837 = vmatprep.subr.msk.mxu0 %vm578_vm1, %v2787_v32  ;;  %v10601_v60 = vpop.permute.xlu1 %3261 }
 0x425   : > { %8858 = vmatprep.subr.mxu1 %v10601_v60 }
 0x426   : > { %8828 = vmatmul.mubr.msk.f32.vlgmr.msra.gmra.mxu0 %vm578_vm1, %v2601_v3 }
 0x427   : > { %8838 = vmatpush3.xpose.msk.msra.mxu0 %vm578_vm1, %v2787_v32  ;;  %8841 = vmatprep.mubr.msk.f32.mxu0 %vm578_vm1, %v2781_v14 }
 0x428   : > { %8839 = vmatprep.subr.msk.mxu0 %vm578_vm1, %v2785_v56 }
 0x42b   : > { %8840 = vmatpush3.xpose.msk.msra.mxu0 %vm578_vm1, %v2785_v56 }
 0x42c   : > { %8851 = vmatprep.subr.mxu0 %v3173_v22 }
 0x42e   : > { %8842 = vmatmul.mubr.msk.f32.vlgmr.msra.gmra.mxu0 %vm578_vm1, %v2783_v57 }
 0x42f   : > { %8852 = vmatpush3.msra.mxu0 %v3173_v22 }
 0x430   : > { %8853 = vmatprep.subr.mxu0 %v3171_v59 }
 0x431   : > { %8854 = vmatpush3.msra.mxu0 %v3171_v59 }
 0x432   : > { %8865 = vmatprep.subr.mxu0 %v10610_v46 }
 0x46b   : > { %v10613_v44 = vpop.f32.mrf.mxu1 }
 0x46d   : > { %v10615_v38 = vpop.f32.mrf.mxu1 }
 0x475   : > { %v10617_v36 = vpop.f32.mrf.mxu1 }
 0x477   : > { %v10619_v39 = vpop.f32.mrf.mxu1 }
 0x47b   : > { %v10621_v12 = vpop.f32.mrf.mxu1 }
 0x47d   : > { %v10623_v30 = vpop.f32.mrf.mxu1 }
 0x485   : > { %v10643_v62 = vpop.f32.mrf.mxu0 }
 0x486   : > { %12126 = vst [vmem:[#allocation37_spill] sm:$0xff] %v10643_v62 }
 0x487   : > { %v10645_v0 = vpop.f32.mrf.mxu0 }
 0x48d   : > { %v10625_v52 = vpop.f32.mrf.mxu1 }
 0x48e   : > { %12122 = vst [vmem:[#allocation33_spill] sm:$0xff] %v10625_v52 }
 0x48f   : > { %v10627_v34 = vpop.f32.mrf.mxu1 }
 0x490   : > { %12123 = vst [vmem:[#allocation34_spill] sm:$0xff] %v10627_v34 }
 0x495   : > { %v10647_v5 = vpop.f32.mrf.mxu0 }
 0x496   : > { %12127 = vst [vmem:[#allocation38_spill] sm:$0xff] %v10647_v5 }
 0x497   : > { %v10649_v16 = vpop.f32.mrf.mxu0 }
 0x498   : > { %12128 = vst [vmem:[#allocation39_spill] sm:$0xff] %v10649_v16 }
 0x49d   : > { %v10629_v20 = vpop.f32.mrf.mxu1 }
 0x49e   : > { %12124 = vst [vmem:[#allocation35_spill] sm:$0xff] %v10629_v20 }
 0x49f   : > { %v10631_v42 = vpop.f32.mrf.mxu1 }
 0x4a0   : > { %12125 = vst [vmem:[#allocation36_spill] sm:$0xff] %v10631_v42 }
 0x4a5   : > { %v8794_v1 = vpop.f32.mrf.mxu1 }
 0x4a6   : > { %v10633_v28 = vmul.f32 0.25, %v8794_v1 }
 0x4a7   : > { %v2225_v10 = vpop.f32.mrf.mxu1 }
 0x4a8   : > { %v10635_v51 = vmul.f32 0.25, %v2225_v10  ;;  %v2890_v41 = vsel %vm578_vm1, %v10633_v28, -inf }
 0x4a9   : > { %2891 = vmax.xlane.f32.xlu1 %v2890_v41 }
 0x4aa   : > { %v2887_v53 = vsel %vm578_vm1, %v10635_v51, -inf }
 0x4ab   : > { %2888 = vmax.xlane.f32.xlu0 %v2887_v53 }
 0x4ad   : > { %v8808_v40 = vpop.f32.mrf.mxu1 }
 0x4ae   : > { %v10657_v45 = vmul.f32 0.25, %v8808_v40 }
 0x4af   : > { %v2407_v48 = vpop.f32.mrf.mxu1 }
 0x4b0   : > { %v10659_v49 = vmul.f32 0.25, %v2407_v48  ;;  %v2902_v2 = vsel %vm578_vm1, %v10657_v45, -inf }
 0x4b2   : > { %v2899_v14 = vsel %vm578_vm1, %v10659_v49, -inf }
 0x4ba   : > { %3437 = vrot.lane.b32.xlu1 %v10056_v11, %s9737_s30 }
 0x4c2   : > { %v8822_v56 = vpop.f32.mrf.mxu1 }
 0x4c4   : > { %v2589_v22 = vpop.f32.mrf.mxu1 }
 0x4c5   : > { %v10673_v41 = vmul.f32 0.25, %v2589_v22 }
 0x4ce   : > { %v10651_v18 = vpop.f32.mrf.mxu0 }
 0x4cf   : > { %12129 = vst [vmem:[#allocation40_spill] sm:$0xff] %v10651_v18 }
 0x4d0   : > { %v10653_v3 = vpop.f32.mrf.mxu0 }
 0x4d1   : > { %12130 = vst [vmem:[#allocation41_spill] sm:$0xff] %v10653_v3 }
 0x4d2   : > { %v8836_v40 = vpop.f32.mrf.mxu1 }
 0x4d3   : > { %v10701_v18 = vmul.f32 0.25, %v8836_v40 }
 0x4d6   : > { %v8801_v24 = vpop.f32.mrf.mxu0 }
 0x4d7   : > { %v10655_v32 = vmul.f32 0.25, %v8801_v24  ;;  %v2911_v24 = vsel %vm578_vm1, %v10673_v41, -inf }
 0x4d8   : > { %v2316_v61 = vpop.f32.mrf.mxu0 }
 0x4d9   : > { %v2896_v55 = vsel %vm578_vm1, %v10655_v32, -inf  ;;  %v10663_v57 = vmul.f32 0.25, %v2316_v61 }
 0x4da   : > { %2897 = vmax.xlane.f32.xlu0 %v2896_v55  ;;  %v2771_v55 = vpop.f32.mrf.mxu1 }
 0x4db   : > { %v2893_v10 = vsel %vm578_vm1, %v10663_v57, -inf }
 0x4de   : > { %2900 = vmax.xlane.f32.xlu1 %v2899_v14  ;;  %2903 = vmax.xlane.f32.xlu0 %v2902_v2  ;;  %v8815_v26 = vpop.f32.mrf.mxu0  ;;  %v10681_v2 = vmul.f32 0.25, %v2771_v55 }
 0x4e0   : > { %v2498_v59 = vpop.f32.mrf.mxu0 }
 0x4e1   : > { %v10669_v1 = vmul.f32 0.25, %v2498_v59  ;;  %v2923_v59 = vsel %vm578_vm1, %v10681_v2, -inf }
 0x4e2   : > { %2894 = vmax.xlane.f32.xlu0 %v2893_v10  ;;  %v10691_v10 = vmul.f32 0.25, %v8815_v26 }
 0x4e3   : > { %v2905_v53 = vsel %vm578_vm1, %v10669_v1, -inf }
 0x4e4   : > { %2906 = vmax.xlane.f32.xlu1 %v2905_v53  ;;  %v10693_v53 = vmul.f32 0.25, %v8822_v56 }
 0x4e6   : > { %v8829_v48 = vpop.f32.mrf.mxu0 }
 0x4e8   : > { %2912 = vmax.xlane.f32.xlu1 %v2911_v24  ;;  %v2680_v61 = vpop.f32.mrf.mxu0  ;;  %v2908_v24 = vsel %vm578_vm1, %v10691_v10, -inf }
 0x4e9   : > { %v10679_v14 = vmul.f32 0.25, %v2680_v61  ;;  %v10697_v61 = vmul.f32 0.25, %v8829_v48 }
 0x4eb   : > { %v2917_v22 = vsel %vm578_vm1, %v10679_v14, -inf  ;;  %v2920_v26 = vsel %vm578_vm1, %v10697_v61, -inf }
 0x4ec   : > { %2918 = vmax.xlane.f32.xlu1 %v2917_v22  ;;  %v2914_v22 = vsel %vm578_vm1, %v10693_v53, -inf }
 0x4ee   : > { %v8843_v55 = vpop.f32.mrf.mxu0 }
 0x4f0   : > { %2924 = vmax.xlane.f32.xlu1 %v2923_v59  ;;  %v2862_v59 = vpop.f32.mrf.mxu0 }
 0x4f1   : > { %v10705_v56 = vmul.f32 0.25, %v2862_v59 }
 0x4f3   : > { %v2929_v48 = vsel %vm578_vm1, %v10705_v56, -inf }
 0x4f8   : > { %3439 = vrot.lane.b32.xlu0 %v10066_v15, %s9737_s30 }
 0x501   : > { %3526 = vrot.lane.b32.xlu1 %v10074_v19, %s9737_s30  ;;  %v10707_v19 = vmul.f32 0.25, %v8843_v55 }
 0x503   : > { %v2932_v40 = vsel %vm578_vm1, %v10707_v19, -inf }
 0x517   : > { %2909 = vmax.xlane.f32.xlu0 %v2908_v24  ;;  %v2926_v24 = vsel %vm578_vm1, %v10701_v18, -inf }
 0x51b   : > { %2915 = vmax.xlane.f32.xlu0 %v2914_v22  ;;  %v10717_v22 = vpop.permute.xlu1 %3259 }
 0x51f   : > { %2921 = vmax.xlane.f32.xlu0 %v2920_v26  ;;  %v10721_v59 = vpop.permute.xlu1 %3348 }
 0x523   : > { %2927 = vmax.xlane.f32.xlu0 %v2926_v24 }
 0x525   : > { %2930 = vmax.xlane.f32.xlu1 %v2929_v48 }
 0x527   : > { %2933 = vmax.xlane.f32.xlu0 %v2932_v40 }
 0x532   : > { %v2892_v24 = vpop.xlane.xlu1 %2891 }
 0x533   : > { %v2936_v40 = vsub.f32 %v10633_v28, %v2892_v24 }
 0x534   : > { %v2889_v55 = vpop.xlane.xlu0 %2888 }
 0x535   : > { %v2935_v26 = vsub.f32 %v10635_v51, %v2889_v55  ;;  %v2953_v3 = vmul.f32 1.442695, %v2936_v40 }
 0x536   : > { %3615 = vrot.lane.b32.xlu1 %v10091_v27, %s9737_s30  ;;  %v10735_v55 = vpop.permute.xlu1 %3437 }
 0x537   : > { %v2951_v48 = vmul.f32 1.442695, %v2935_v26 }
 0x539   : > { %9385 = vpow2.f32 %v2951_v48 }
 0x53a   : > { %9387 = vpow2.f32 %v2953_v3 }
 0x53d   : > { %3528 = vrot.lane.b32.xlu0 %v10082_v23, %s9737_s30 }
 0x541   : > { %3617 = vrot.lane.b32.xlu0 %v10099_v31, %s9737_s30 }
 0x546   : > { %v10727_v27 = vpop.eup %9385 }
 0x547   : > { %v2983_v23 = vsel %vm578_vm1, %v10727_v27, 0.0  ;;  %v10731_v20 = vpop.eup %9387 }
 0x548   : > { %v2986_v51 = vsel %vm578_vm1, %v10731_v20, 0.0 }
 0x55a   : > { %2984 = vadd.xlane.f32.xlu1 %v2983_v23 }
 0x560   : > { %2987 = vadd.xlane.f32.xlu0 %v2986_v51 }
 0x563   : > { %v2898_v26 = vpop.xlane.xlu0 %2897 }
 0x564   : > { %v2938_v28 = vsub.f32 %v10655_v32, %v2898_v26 }
 0x566   : > { %v2957_v24 = vmul.f32 1.442695, %v2938_v28 }
 0x567   : > { %v2904_v48 = vpop.xlane.xlu0 %2903  ;;  %v2901_v3 = vpop.xlane.xlu1 %2900 }
 0x568   : > { %9389 = vpow2.f32 %v2957_v24  ;;  %v2940_v40 = vsub.f32 %v10657_v45, %v2904_v48  ;;  %v2939_v23 = vsub.f32 %v10659_v49, %v2901_v3 }
 0x56a   : > { %v2961_v31 = vmul.f32 1.442695, %v2940_v40  ;;  %v2959_v51 = vmul.f32 1.442695, %v2939_v23 }
 0x56b   : > { %v2895_v42 = vpop.xlane.xlu0 %2894 }
 0x56c   : > { %9391 = vpow2.f32 %v2961_v31  ;;  %v2937_v5 = vsub.f32 %v10663_v57, %v2895_v42 }
 0x56d   : > { %v2907_v16 = vpop.xlane.xlu1 %2906 }
 0x56e   : > { %v2955_v52 = vmul.f32 1.442695, %v2937_v5  ;;  %v2941_v34 = vsub.f32 %v10669_v1, %v2907_v16 }
 0x570   : > { %9393 = vpow2.f32 %v2955_v52  ;;  %v2963_v26 = vmul.f32 1.442695, %v2941_v34 }
 0x571   : > { %v2913_v32 = vpop.xlane.xlu1 %2912  ;;  %9395 = vpow2.f32 %v2959_v51 }
 0x572   : > { %v2943_v28 = vsub.f32 %v10673_v41, %v2913_v32  ;;  %9397 = vpow2.f32 %v2963_v26 }
 0x574   : > { %v2967_v49 = vmul.f32 1.442695, %v2943_v28 }
 0x575   : > { %v10743_v24 = vpop.eup %9389  ;;  %v2919_v45 = vpop.xlane.xlu1 %2918 }
 0x576   : > { %v2945_v31 = vsub.f32 %v10679_v14, %v2919_v45  ;;  %v2992_v42 = vsel %vm578_vm1, %v10743_v24, 0.0  ;;  %9399 = vpow2.f32 %v2967_v49  ;;  %v10777_v49 = vpop.permute.xlu0 %3439 }
 0x577   : > { %2993 = vadd.xlane.f32.xlu0 %v2992_v42 }
 0x578   : > { %v2971_v52 = vmul.f32 1.442695, %v2945_v31 }
 0x579   : > { %v10748_v5 = vpop.eup %9391  ;;  %v2925_v16 = vpop.xlane.xlu1 %2924 }
 0x57a   : > { %v2947_v34 = vsub.f32 %v10681_v2, %v2925_v16  ;;  %v2998_v57 = vsel %vm578_vm1, %v10748_v5, 0.0  ;;  %9401 = vpow2.f32 %v2971_v52 }
 0x57b   : > { %2999 = vadd.xlane.f32.xlu0 %v2998_v57 }
 0x57c   : > { %v2975_v41 = vmul.f32 1.442695, %v2947_v34 }
 0x57d   : > { %v10753_v1 = vpop.eup %9393 }
 0x57e   : > { %v2989_v14 = vsel %vm578_vm1, %v10753_v1, 0.0  ;;  %v10757_v48 = vpop.eup %9395  ;;  %9403 = vpow2.f32 %v2975_v41 }
 0x57f   : > { %2990 = vadd.xlane.f32.xlu1 %v2989_v14  ;;  %v2995_v3 = vsel %vm578_vm1, %v10757_v48, 0.0  ;;  %v10761_v40 = vpop.eup %9397 }
 0x580   : > { %v3001_v2 = vsel %vm578_vm1, %v10761_v40, 0.0 }
 0x583   : > { %2996 = vadd.xlane.f32.xlu1 %v2995_v3  ;;  %v10765_v23 = vpop.eup %9399  ;;  %v10782_v3 = vpop.permute.xlu1 %3526 }
 0x584   : > { %v3007_v51 = vsel %vm578_vm1, %v10765_v23, 0.0 }
 0x587   : > { %3002 = vadd.xlane.f32.xlu1 %v3001_v2  ;;  %v10769_v32 = vpop.eup %9401 }
 0x588   : > { %v3013_v26 = vsel %vm578_vm1, %v10769_v32, 0.0 }
 0x58b   : > { %3008 = vadd.xlane.f32.xlu1 %v3007_v51  ;;  %v10773_v28 = vpop.eup %9403 }
 0x58c   : > { %v3019_v45 = vsel %vm578_vm1, %v10773_v28, 0.0 }
 0x58f   : > { %3014 = vadd.xlane.f32.xlu1 %v3013_v26 }
 0x593   : > { %3020 = vadd.xlane.f32.xlu1 %v3019_v45 }
 0x5a0   : > { %v2910_v31 = vpop.xlane.xlu0 %2909 }
 0x5a1   : > { %v2942_v42 = vsub.f32 %v10691_v10, %v2910_v31 }
 0x5a3   : > { %v2965_v16 = vmul.f32 1.442695, %v2942_v42 }
 0x5a4   : > { %v2916_v52 = vpop.xlane.xlu0 %2915 }
 0x5a5   : > { %9405 = vpow2.f32 %v2965_v16  ;;  %v2944_v34 = vsub.f32 %v10693_v53, %v2916_v52 }
 0x5a7   : > { %v2969_v57 = vmul.f32 1.442695, %v2944_v34 }
 0x5a8   : > { %v2922_v41 = vpop.xlane.xlu0 %2921 }
 0x5a9   : > { %9407 = vpow2.f32 %v2969_v57  ;;  %v2946_v14 = vsub.f32 %v10697_v61, %v2922_v41 }
 0x5ab   : > { %v2973_v2 = vmul.f32 1.442695, %v2946_v14 }
 0x5ac   : > { %v2928_v51 = vpop.xlane.xlu0 %2927 }
 0x5ad   : > { %9409 = vpow2.f32 %v2973_v2  ;;  %v2948_v26 = vsub.f32 %v10701_v18, %v2928_v51 }
 0x5ae   : > { %v2931_v45 = vpop.xlane.xlu1 %2930 }
 0x5af   : > { %v2977_v62 = vmul.f32 1.442695, %v2948_v26  ;;  %v2949_v10 = vsub.f32 %v10705_v56, %v2931_v45  ;;  %v12131_v26 = vld [vmem:[#allocation12_spill] sm:$0xff]  ;;  %v12132_v45 = vld [vmem:[#allocation14_spill] sm:$0xff] }
 0x5b0   : > { %v2934_v31 = vpop.xlane.xlu0 %2933 }
 0x5b1   : > { %9411 = vpow2.f32 %v2977_v62  ;;  %v2979_v42 = vmul.f32 1.442695, %v2949_v10  ;;  %v2950_v53 = vsub.f32 %v10707_v19, %v2934_v31 }
 0x5b2   : > { %v10787_v16 = vpop.eup %9405  ;;  %v10821_v10 = vpop.permute.xlu1 %3615 }
 0x5b3   : > { %9413 = vpow2.f32 %v2979_v42  ;;  %v2981_v61 = vmul.f32 1.442695, %v2950_v53  ;;  %v3004_v52 = vsel %vm578_vm1, %v10787_v16, 0.0  ;;  %v12133_v42 = vld [vmem:[#allocation19_spill] sm:$0xff]  ;;  %v12134_v53 = vld [vmem:[#allocation17_spill] sm:$0xff] }
 0x5b4   : > { %3005 = vadd.xlane.f32.xlu0 %v3004_v52  ;;  %v10823_v31 = vpop.permute.xlu0 %3528 }
 0x5b5   : > { %9415 = vpow2.f32 %v2981_v61 }
 0x5b6   : > { %v10791_v34 = vpop.eup %9407 }
 0x5b7   : > { %v3010_v18 = vsel %vm578_vm1, %v10791_v34, 0.0 }
 0x5b8   : > { %3011 = vadd.xlane.f32.xlu0 %v3010_v18  ;;  %v10831_v52 = vpop.permute.xlu0 %3617  ;;  %v12135_v18 = vld [vmem:[#allocation21_spill] sm:$0xff] }
 0x5ba   : > { %v10795_v56 = vpop.eup %9409 }
 0x5bb   : > { %v3016_v19 = vsel %vm578_vm1, %v10795_v56, 0.0 }
 0x5bc   : > { %3017 = vadd.xlane.f32.xlu0 %v3016_v19 }
 0x5be   : > { %v10799_v62 = vpop.eup %9411 }
 0x5bf   : > { %v3022_v57 = vsel %vm578_vm1, %v10799_v62, 0.0 }
 0x5c0   : > { %v10803_v41 = vpop.eup %9413  ;;  %3023 = vadd.xlane.f32.xlu0 %v3022_v57  ;;  %v12136_v57 = vld [vmem:[#allocation22_spill] sm:$0xff] }
 0x5c1   : > { %v3025_v14 = vsel %vm578_vm1, %v10803_v41, 0.0 }
 0x5c2   : > { %v10807_v2 = vpop.eup %9415  ;;  %3026 = vadd.xlane.f32.xlu1 %v3025_v14  ;;  %v12137_v14 = vld [vmem:[#allocation24_spill] sm:$0xff] }
 0x5c3   : > { %v3028_v51 = vsel %vm578_vm1, %v10807_v2, 0.0 }
 0x5c4   : > { %3029 = vadd.xlane.f32.xlu0 %v3028_v51 }
 0x5d3   : > { %3704 = vrot.lane.b32.xlu1 %v10107_v35, %s9737_s30 }
 0x5d7   : > { %4183 = vrot.lane.b32.xlu1 %v12131_v26, %s9738_s13 }
 0x5da   : > { %3706 = vrot.lane.b32.xlu0 %v10492_v7, %s9737_s30  ;;  %s7925_s30 = sshll.u32 %s11929_s19, 4  ;;  %s11994_s30 = int_to_ptr.vmem [resolvable:$true] %s7925_s30 }
 0x5db   : > { %4179 = vrot.lane.b32.xlu1 %v12131_v26, %s9739_s12  ;;  %s9657_s10 = scalar_lea.vmem %s11994_s30, 2048 }
 0x5dc   : > { %p9658_p10 = scmp.ne.s32.totalorder %s11994_s30, %s9657_s10 }
 0x5de   : > { %4185 = vrot.lane.b32.xlu0 %v12132_v45, %s9738_s13  ;;  %p9659_p2 = pnand %p9658_p10, %p12180_p1 }
 0x5df   : > { %4274 = vrot.lane.b32.xlu1 %v12133_v42, %s9738_s13 }
 0x5e0   : > { %p9660_p6 = pneg %p9659_p2 }
 0x5e2   : > { %4276 = vrot.lane.b32.xlu0 %v12134_v53, %s9738_s13 }
 0x5e3   : > { %4270 = vrot.lane.b32.xlu1 %v12133_v42, %s9739_s12  ;;  %v2985_v61 = vpop.xlane.xlu1 %2984 }
 0x5e4   : > { %9417 = vrcp.f32 %v2985_v61 }
 0x5e6   : > { %4181 = vrot.lane.b32.xlu0 %v12132_v45, %s9739_s12 }
 0x5e7   : > { %4365 = vrot.lane.b32.xlu1 %v12135_v18, %s9738_s13 }
 0x5e9   : > { %v2988_v19 = vpop.xlane.xlu0 %2987 }
 0x5ea   : > { %9419 = vrcp.f32 %v2988_v19  ;;  %4367 = vrot.lane.b32.xlu0 %v12136_v57, %s9738_s13 }
 0x5eb   : > { %4361 = vrot.lane.b32.xlu1 %v12135_v18, %s9739_s12 }
 0x5ee   : > { %4272 = vrot.lane.b32.xlu0 %v12134_v53, %s9739_s12 }
 0x5ef   : > { %4456 = vrot.lane.b32.xlu1 %v12137_v14, %s9738_s13 }
 0x5f1   : > { %v9418_v51 = vpop.eup %9417 }
 0x5f2   : > { %4458 = vrot.lane.b32.xlu0 %v10040_v4, %s9738_s13  ;;  %v3047_v61 = vmul.f32 %v9418_v51, %v10727_v27 }
 0x5f3   : > { %4452 = vrot.lane.b32.xlu1 %v12137_v14, %s9739_s12 }
 0x5f4   : > { %3063 = vst.msk [vmem:[%s10437_s7 + $0x10] sm:$0xff] %vm578_vm1, %v3047_v61  ;;  %8848 = vmatprep.mubr.msk.f32.mxu1 %vm578_vm1, %v3047_v61 }
 0x5f6   : > { %4363 = vrot.lane.b32.xlu0 %v12136_v57, %s9739_s12 }
 0x5f7   : > { %v9420_v19 = vpop.eup %9419  ;;  %4547 = vrot.lane.b32.xlu1 %v10051_v9, %s9738_s13 }
 0x5f8   : > { %v3048_v18 = vmul.f32 %v9420_v19, %v10731_v20 }
 0x5fa   : > { %4549 = vrot.lane.b32.xlu0 %v10063_v13, %s9738_s13  ;;  %3064 = vst.msk [vmem:[%s10437_s7 + $0x18] sm:$0xff] %vm578_vm1, %v3048_v18  ;;  %8849 = vmatmul.mubr.msk.f32.vlgmr.msra.gmra.mxu1 %vm578_vm1, %v3048_v18 }
 0x5fb   : > { %8859 = vmatpush3.msra.mxu1 %v10601_v60  ;;  %4543 = vrot.lane.b32.xlu1 %v10051_v9, %s9739_s12 }
 0x5fc   : > { %8860 = vmatprep.subr.mxu1 %v10717_v22 }
 0x5fd   : > { %8861 = vmatpush3.msra.mxu1 %v10717_v22 }
 0x5fe   : > { %8872 = vmatprep.subr.mxu1 %v10777_v49  ;;  %4454 = vrot.lane.b32.xlu0 %v10040_v4, %s9739_s12 }
 0x5ff   : > { %4638 = vrot.lane.b32.xlu1 %v10071_v17, %s9738_s13 }
 0x600   : > { %v2994_v27 = vpop.xlane.xlu0 %2993 }
 0x601   : > { %9421 = vrcp.f32 %v2994_v27 }
 0x602   : > { %4640 = vrot.lane.b32.xlu0 %v10079_v21, %s9738_s13 }
 0x603   : > { %4634 = vrot.lane.b32.xlu1 %v10071_v17, %s9739_s12 }
 0x604   : > { %v3000_v60 = vpop.xlane.xlu0 %2999 }
 0x605   : > { %9423 = vrcp.f32 %v3000_v60 }
 0x606   : > { %4545 = vrot.lane.b32.xlu0 %v10063_v13, %s9739_s12 }
 0x607   : > { %4729 = vrot.lane.b32.xlu1 %v10087_v25, %s9738_s13 }
 0x608   : > { %v2991_v20 = vpop.xlane.xlu1 %2990 }
 0x609   : > { %9425 = vrcp.f32 %v2991_v20 }
 0x60a   : > { %4731 = vrot.lane.b32.xlu0 %v10096_v29, %s9738_s13 }
 0x60b   : > { %4725 = vrot.lane.b32.xlu1 %v10087_v25, %s9739_s12 }
 0x60c   : > { %v2997_v22 = vpop.xlane.xlu1 %2996 }
 0x60d   : > { %9427 = vrcp.f32 %v2997_v22 }
 0x60e   : > { %v9422_v18 = vpop.eup %9421  ;;  %4636 = vrot.lane.b32.xlu0 %v10079_v21, %s9739_s12 }
 0x60f   : > { %4820 = vrot.lane.b32.xlu1 %v10104_v33, %s9738_s13  ;;  %v3050_v51 = vmul.f32 %v9422_v18, %v10743_v24 }
 0x610   : > { %v3003_v61 = vpop.xlane.xlu1 %3002 }
 0x611   : > { %9429 = vrcp.f32 %v3003_v61  ;;  %3066 = vst.msk [vmem:[%s10437_s7 + $0x58] sm:$0xff] %vm578_vm1, %v3050_v51 }
 0x612   : > { %v9424_v19 = vpop.eup %9423  ;;  %4822 = vrot.lane.b32.xlu0 %v10112_v37, %s9738_s13 }
 0x613   : > { %4818 = vrot.lane.b32.xlu1 %v10112_v37, %s9739_s12  ;;  %v3052_v27 = vmul.f32 %v9424_v19, %v10748_v5 }
 0x614   : > { %v3009_v60 = vpop.xlane.xlu1 %3008 }
 0x615   : > { %9431 = vrcp.f32 %v3009_v60  ;;  %3068 = vst.msk [vmem:[%s10437_s7 + $0x98] sm:$0xff] %vm578_vm1, %v3052_v27 }
 0x616   : > { %v9426_v20 = vpop.eup %9425  ;;  %4727 = vrot.lane.b32.xlu0 %v10096_v29, %s9739_s12 }
 0x617   : > { %5117 = vrot.lane.b32.xlu1 %v9996_v47, %s9739_s12  ;;  %v3049_v24 = vmul.f32 %v9426_v20, %v10753_v1 }
 0x618   : > { %v3015_v22 = vpop.xlane.xlu1 %3014 }
 0x619   : > { %9433 = vrcp.f32 %v3015_v22  ;;  %3065 = vst.msk [vmem:[%s10437_s7 + $0x50] sm:$0xff] %vm578_vm1, %v3049_v24  ;;  %8855 = vmatprep.mubr.msk.f32.mxu0 %vm578_vm1, %v3049_v24 }
 0x61a   : > { %v9428_v5 = vpop.eup %9427  ;;  %4816 = vrot.lane.b32.xlu0 %v10104_v33, %s9739_s12  ;;  %8856 = vmatmul.mubr.msk.f32.vlgmr.msra.gmra.mxu0 %vm578_vm1, %v3050_v51 }
 0x61b   : > { %8866 = vmatpush3.msra.mxu0 %v10610_v46  ;;  %5204 = vrot.lane.b32.xlu1 %v10009_v54, %s9739_s12  ;;  %v3051_v1 = vmul.f32 %v9428_v5, %v10757_v48 }
 0x61c   : > { %8867 = vmatprep.subr.mxu0 %v10721_v59  ;;  %v3021_v18 = vpop.xlane.xlu1 %3020 }
 0x61d   : > { %8868 = vmatpush3.msra.mxu0 %v10721_v59  ;;  %9435 = vrcp.f32 %v3021_v18  ;;  %3067 = vst.msk [vmem:[%s10437_s7 + $0x90] sm:$0xff] %vm578_vm1, %v3051_v1  ;;  %8862 = vmatprep.mubr.msk.f32.mxu1 %vm578_vm1, %v3051_v1 }
 0x61e   : > { %v9430_v61 = vpop.eup %9429  ;;  %8879 = vmatprep.subr.mxu0 %v10823_v31  ;;  %5115 = vrot.lane.b32.xlu0 %v9988_v43, %s9739_s12 }
 0x61f   : > { %8863 = vmatmul.mubr.msk.f32.vlgmr.msra.gmra.mxu1 %vm578_vm1, %v3052_v27  ;;  %5291 = vrot.lane.b32.xlu1 %v10028_v63, %s9739_s12  ;;  %v3053_v46 = vmul.f32 %v9430_v61, %v10761_v40  ;;  %v3792_v61 = vld [vmem:[#allocation7 + $0x18] sm:$0xff] }
 0x620   : > { %8873 = vmatpush3.msra.mxu1 %v10777_v49 }
 0x621   : > { %8874 = vmatprep.subr.mxu1 %v10735_v55  ;;  %3069 = vst.msk [vmem:[%s10437_s7 + $0xd0] sm:$0xff] %vm578_vm1, %v3053_v46  ;;  %8869 = vmatprep.mubr.msk.f32.mxu0 %vm578_vm1, %v3053_v46 }
 0x622   : > { %v9432_v59 = vpop.eup %9431  ;;  %8875 = vmatpush3.msra.mxu1 %v10735_v55  ;;  %5202 = vrot.lane.b32.xlu0 %v10001_v50, %s9739_s12 }
 0x623   : > { %8886 = vmatprep.subr.mxu1 %v10831_v52  ;;  %5289 = vrot.lane.b32.xlu1 %v10017_v58, %s9739_s12  ;;  %v3055_v48 = vmul.f32 %v9432_v59, %v10765_v23  ;;  %v10981_v59 = vld [vmem:[#allocation7 + $0x8] sm:$0xff] }
 0x625   : > { %3071 = vst.msk [vmem:[%s10437_s7 + $0x110] sm:$0xff] %vm578_vm1, %v3055_v48  ;;  %8876 = vmatprep.mubr.msk.f32.mxu1 %vm578_vm1, %v3055_v48 }
 0x626   : > { %v9434_v40 = vpop.eup %9433  ;;  %5378 = vrot.lane.b32.xlu0 %v10043_v6, %s9739_s12 }
 0x627   : > { %5376 = vrot.lane.b32.xlu1 %v10048_v8, %s9739_s12  ;;  %v3057_v55 = vmul.f32 %v9434_v40, %v10769_v32  ;;  %v3791_v40 = vld [vmem:[#allocation7 + $0x10] sm:$0xff] }
 0x629   : > { %3073 = vst.msk [vmem:[%s10437_s7 + $0x150] sm:$0xff] %vm578_vm1, %v3057_v55 }
 0x62a   : > { %v9436_v49 = vpop.eup %9435  ;;  %5465 = vrot.lane.b32.xlu0 %v10066_v15, %s9739_s12 }
 0x62b   : > { %5463 = vrot.lane.b32.xlu1 %v10056_v11, %s9739_s12  ;;  %v3059_v23 = vmul.f32 %v9436_v49, %v10773_v28 }
 0x62d   : > { %3075 = vst.msk [vmem:[%s10437_s7 + $0x190] sm:$0xff] %vm578_vm1, %v3059_v23 }
 0x63d   : > { %v3006_v51 = vpop.xlane.xlu0 %3005 }
 0x63e   : > { %9437 = vrcp.f32 %v3006_v51 }
 0x641   : > { %v3012_v19 = vpop.xlane.xlu0 %3011 }
 0x642   : > { %9439 = vrcp.f32 %v3012_v19  ;;  %v10995_v19 = vld [vmem:[#allocation7] sm:$0xff] }
 0x645   : > { %v3018_v27 = vpop.xlane.xlu0 %3017 }
 0x646   : > { %9441 = vrcp.f32 %v3018_v27 }
 0x649   : > { %v3024_v32 = vpop.xlane.xlu0 %3023 }
 0x64a   : > { %9443 = vrcp.f32 %v3024_v32 }
 0x64b   : > { %v9438_v60 = vpop.eup %9437  ;;  %v3027_v20 = vpop.xlane.xlu1 %3026 }
 0x64c   : > { %9445 = vrcp.f32 %v3027_v20  ;;  %v3054_v24 = vmul.f32 %v9438_v60, %v10787_v16 }
 0x64d   : > { %v3030_v22 = vpop.xlane.xlu0 %3029 }
 0x64e   : > { %9447 = vrcp.f32 %v3030_v22  ;;  %3070 = vst.msk [vmem:[%s10437_s7 + $0xd8] sm:$0xff] %vm578_vm1, %v3054_v24  ;;  %8870 = vmatmul.mubr.msk.f32.vlgmr.msra.gmra.mxu0 %vm578_vm1, %v3054_v24 }
 0x64f   : > { %v9440_v28 = vpop.eup %9439  ;;  %8880 = vmatpush3.msra.mxu0 %v10823_v31  ;;  %8883 = vmatprep.mubr.msk.f32.mxu0 %vm578_vm1, %v3057_v55  ;;  %v3705_v5 = vpop.permute.xlu1 %3704 }
 0x650   : > { %8881 = vmatprep.subr.mxu0 %v10782_v3  ;;  %v3056_v1 = vmul.f32 %v9440_v28, %v10791_v34 }
 0x651   : > { %8882 = vmatpush3.msra.mxu0 %v10782_v3  ;;  %v3707_v16 = vpop.permute.xlu0 %3706 }
 0x652   : > { %3072 = vst.msk [vmem:[%s10437_s7 + $0x118] sm:$0xff] %vm578_vm1, %v3056_v1  ;;  %8877 = vmatmul.mubr.msk.f32.vlgmr.msra.gmra.mxu1 %vm578_vm1, %v3056_v1  ;;  %8893 = vmatprep.subr.mxu0 %v3707_v16 }
 0x653   : > { %v9442_v18 = vpop.eup %9441  ;;  %8887 = vmatpush3.msra.mxu1 %v10831_v52  ;;  %8890 = vmatprep.mubr.msk.f32.mxu1 %vm578_vm1, %v3059_v23  ;;  %v10969_v31 = vpop.permute.xlu1 %4183 }
 0x654   : > { %8888 = vmatprep.subr.mxu1 %v10821_v10  ;;  %v3058_v34 = vmul.f32 %v9442_v18, %v10795_v56 }
 0x655   : > { %8889 = vmatpush3.msra.mxu1 %v10821_v10  ;;  %v10974_v3 = vpop.permute.xlu0 %4185 }
 0x656   : > { %3074 = vst.msk [vmem:[%s10437_s7 + $0x158] sm:$0xff] %vm578_vm1, %v3058_v34  ;;  %8884 = vmatmul.mubr.msk.f32.vlgmr.msra.gmra.mxu0 %vm578_vm1, %v3058_v34  ;;  %8900 = vmatprep.subr.mxu1 %v3792_v61 }
 0x657   : > { %v9444_v52 = vpop.eup %9443  ;;  %8894 = vmatpush3.msra.mxu0 %v3707_v16  ;;  %v10979_v46 = vpop.permute.xlu1 %4179 }
 0x658   : > { %8895 = vmatprep.subr.mxu0 %v3705_v5  ;;  %v3060_v56 = vmul.f32 %v9444_v52, %v10799_v62 }
 0x659   : > { %v9446_v48 = vpop.eup %9445  ;;  %8896 = vmatpush3.msra.mxu0 %v3705_v5  ;;  %v4277_v10 = vpop.permute.xlu0 %4276 }
 0x65a   : > { %3076 = vst.msk [vmem:[%s10437_s7 + $0x198] sm:$0xff] %vm578_vm1, %v3060_v56  ;;  %8891 = vmatmul.mubr.msk.f32.vlgmr.msra.gmra.mxu1 %vm578_vm1, %v3060_v56  ;;  %v3061_v55 = vmul.f32 %v9446_v48, %v10803_v41  ;;  %8928 = vmatprep.subr.mxu0 %v10981_v59 }
 0x65b   : > { %v9448_v49 = vpop.eup %9447  ;;  %v4275_v23 = vpop.permute.xlu1 %4274  ;;  %8901 = vmatpush3.msra.mxu1 %v3792_v61 }
 0x65c   : > { %3077 = vst.msk [vmem:[%s10437_s7 + $0x1d0] sm:$0xff] %vm578_vm1, %v3061_v55  ;;  %8897 = vmatprep.mubr.msk.f32.mxu0 %vm578_vm1, %v3061_v55  ;;  %v3062_v62 = vmul.f32 %v9448_v49, %v10807_v2  ;;  %8902 = vmatprep.subr.mxu1 %v3791_v40 }
 0x65d   : > { %v10993_v51 = vpop.permute.xlu0 %4181  ;;  %8903 = vmatpush3.msra.mxu1 %v3791_v40 }
 0x65e   : > { %3078 = vst.msk [vmem:[%s10437_s7 + $0x1d8] sm:$0xff] %vm578_vm1, %v3062_v62  ;;  %8898 = vmatmul.mubr.msk.f32.vlgmr.msra.gmra.mxu0 %vm578_vm1, %v3062_v62  ;;  %9236 = vmatprep.subr.mxu1 %v10981_v59 }
 0x65f   : > { %8929 = vmatpush3.msra.mxu0 %v10981_v59  ;;  %8932 = vmatprep.mubr.msk.f32.mxu0 %vm578_vm1, %v10615_v38  ;;  %v4271_v41 = vpop.permute.xlu1 %4270 }
 0x660   : > { %8930 = vmatprep.subr.mxu0 %v10995_v19 }
 0x661   : > { %8931 = vmatpush3.msra.mxu0 %v10995_v19  ;;  %v11006_v2 = vpop.permute.xlu0 %4367 }
 0x662   : > { %8963 = vmatprep.subr.msk.mxu0 %vm578_vm1, %v4277_v10  ;;  %8933 = vmatmul.mubr.msk.f32.vlgmr.msra.gmra.mxu0 %vm578_vm1, %v10613_v44 }
 0x663   : > { %8964 = vmatpush3.xpose.msk.msra.mxu0 %vm578_vm1, %v4277_v10  ;;  %8935 = vmatprep.mubr.msk.f32.mxu0 %vm578_vm1, %v10619_v39  ;;  %v11014_v27 = vpop.permute.xlu1 %4365 }
 0x664   : > { %8965 = vmatprep.subr.msk.mxu0 %vm578_vm1, %v4275_v23 }
 0x665   : > { %v4273_v38 = vpop.permute.xlu0 %4272 }
 0x666   : > { %8936 = vmatmul.mubr.msk.f32.gmra.mxu0 %vm578_vm1, %v10617_v36  ;;  %v12138_v36 = vld [vmem:[#allocation37_spill] sm:$0xff] }
 0x667   : > { %8966 = vmatpush3.xpose.msk.msra.mxu0 %vm578_vm1, %v4275_v23  ;;  %8938 = vmatprep.mubr.msk.f32.mxu0 %vm578_vm1, %v10623_v30  ;;  %v11022_v32 = vpop.permute.xlu1 %4361 }
 0x669   : > { %v4459_v44 = vpop.permute.xlu0 %4458 }
 0x66a   : > { %8939 = vmatmul.mubr.msk.f32.gmra.mxu0 %vm578_vm1, %v10621_v12  ;;  %8977 = vmatprep.subr.msk.mxu0 %vm578_vm1, %v4459_v44 }
 0x66b   : > { %8941 = vmatprep.mubr.msk.f32.mxu0 %vm578_vm1, %v10645_v0  ;;  %v4457_v39 = vpop.permute.xlu1 %4456 }
 0x66d   : > { %v11029_v60 = vpop.permute.xlu0 %4363 }
 0x66e   : > { %8942 = vmatmul.mubr.msk.f32.gmra.mxu0 %vm578_vm1, %v12138_v36 }
 0x66f   : > { %8967 = vmatprep.mubr.msk.f32.mxu0 %vm578_vm1, %v4271_v41  ;;  %v4453_v30 = vpop.permute.xlu1 %4452 }
 0x671   : > { %v11034_v20 = vpop.permute.xlu0 %4549 }
 0x672   : > { %8968 = vmatmul.mubr.msk.f32.vlgmr.msra.gmra.mxu0 %vm578_vm1, %v4273_v38 }
 0x673   : > { %8978 = vmatpush3.xpose.msk.msra.mxu0 %vm578_vm1, %v4459_v44  ;;  %8981 = vmatprep.mubr.msk.f32.mxu0 %vm578_vm1, %v4453_v30  ;;  %v11039_v12 = vpop.permute.xlu1 %4547 }
 0x674   : > { %8979 = vmatprep.subr.msk.mxu0 %vm578_vm1, %v4457_v39 }
 0x675   : > { %v4455_v0 = vpop.permute.xlu0 %4454 }
 0x677   : > { %8980 = vmatpush3.xpose.msk.msra.mxu0 %vm578_vm1, %v4457_v39  ;;  %v11043_v24 = vpop.permute.xlu1 %4543 }
 0x679   : > { %v4641_v22 = vpop.permute.xlu0 %4640 }
 0x67a   : > { %8982 = vmatmul.mubr.msk.f32.vlgmr.msra.gmra.mxu0 %vm578_vm1, %v4455_v0  ;;  %8991 = vmatprep.subr.msk.mxu0 %vm578_vm1, %v4641_v22 }
 0x67b   : > { %8992 = vmatpush3.xpose.msk.msra.mxu0 %vm578_vm1, %v4641_v22  ;;  %v4639_v28 = vpop.permute.xlu1 %4638 }
 0x67c   : > { %8993 = vmatprep.subr.msk.mxu0 %vm578_vm1, %v4639_v28 }
 0x67d   : > { %v11049_v5 = vpop.permute.xlu0 %4545 }
 0x67f   : > { %8994 = vmatpush3.xpose.msk.msra.mxu0 %vm578_vm1, %v4639_v28  ;;  %v4635_v1 = vpop.permute.xlu1 %4634 }
 0x680   : > { %8995 = vmatprep.mubr.msk.f32.mxu0 %vm578_vm1, %v4635_v1 }
 0x681   : > { %v11053_v16 = vpop.permute.xlu0 %4731 }
 0x683   : > { %v11055_v18 = vpop.permute.xlu1 %4729 }
 0x685   : > { %v4637_v61 = vpop.permute.xlu0 %4636 }
 0x686   : > { %8996 = vmatmul.mubr.msk.f32.vlgmr.msra.gmra.mxu0 %vm578_vm1, %v4637_v61 }
 0x687   : > { %v11058_v34 = vpop.permute.xlu1 %4725 }
 0x689   : > { %v4823_v52 = vpop.permute.xlu0 %4822 }
 0x68a   : > { %9005 = vmatprep.subr.msk.mxu0 %vm578_vm1, %v4823_v52 }
 0x68b   : > { %9006 = vmatpush3.xpose.msk.msra.mxu0 %vm578_vm1, %v4823_v52  ;;  %v4821_v56 = vpop.permute.xlu1 %4820 }
 0x68c   : > { %9007 = vmatprep.subr.msk.mxu0 %vm578_vm1, %v4821_v56 }
 0x68d   : > { %v11063_v48 = vpop.permute.xlu0 %4727 }
 0x68f   : > { %9008 = vmatpush3.xpose.msk.msra.mxu0 %vm578_vm1, %v4821_v56  ;;  %v4819_v10 = vpop.permute.xlu1 %4818 }
 0x691   : > { %v4817_v40 = vpop.permute.xlu0 %4816 }
 0x692   : > { %9009 = vmatprep.mubr.msk.f32.mxu0 %vm578_vm1, %v4817_v40 }
 0x693   : > { %9010 = vmatmul.mubr.msk.f32.vlgmr.msra.gmra.mxu0 %vm578_vm1, %v4819_v10  ;;  %v11068_v55 = vpop.permute.xlu1 %5117 }
 0x695   : > { %v11070_v49 = vpop.permute.xlu0 %5115 }
 0x697   : > { %v5205_v23 = vpop.permute.xlu1 %5204 }
 0x698   : > { %9019 = vmatprep.subr.mxu0 %v5205_v23 }
 0x699   : > { %v5203_v62 = vpop.permute.xlu0 %5202  ;;  %9020 = vmatpush3.msra.mxu0 %v5205_v23 }
 0x69a   : > { %9021 = vmatprep.subr.mxu0 %v5203_v62 }
 0x69b   : > { %9022 = vmatpush3.msra.mxu0 %v5203_v62  ;;  %v12139_v62 = vld [vmem:[#allocation34_spill] sm:$0xff] }
 0x69d   : > { %v11072_v41 = vpop.permute.xlu0 %5378 }
 0x69e   : > { %9033 = vmatprep.subr.mxu0 %v11072_v41 }
 0x6ba   : > { %v8850_v38 = vpop.f32.mrf.mxu1 }
 0x6bc   : > { %v3159_v44 = vpop.f32.mrf.mxu1 }
 0x6bd   : > { %8904 = vmatprep.mubr.msk.f32.mxu1 %vm578_vm1, %v3159_v44 }
 0x6be   : > { %8905 = vmatmul.mubr.msk.f32.vlgmr.msra.gmra.mxu1 %vm578_vm1, %v8850_v38 }
 0x6bf   : > { %9238 = vmatpush3.msra.mxu1 %v10981_v59 }
 0x6c0   : > { %9237 = vmatprep.subr.mxu1 %v10995_v19 }
 0x6c1   : > { %9239 = vmatpush3.msra.mxu1 %v10995_v19 }
 0x6c2   : > { %8956 = vmatprep.subr.msk.mxu1 %vm578_vm1, %v10974_v3 }
 0x6da   : > { %v8857_v39 = vpop.f32.mrf.mxu0 }
 0x6dc   : > { %v3248_v36 = vpop.f32.mrf.mxu0 }
 0x6dd   : > { %8907 = vmatprep.mubr.msk.f32.mxu1 %vm578_vm1, %v3248_v36  ;;  %v12141_v36 = vld [vmem:[#allocation39_spill] sm:$0xff] }
 0x6de   : > { %8908 = vmatmul.mubr.msk.f32.gmra.mxu1 %vm578_vm1, %v8857_v39  ;;  %v12140_v39 = vld [vmem:[#allocation33_spill] sm:$0xff] }
 0x6df   : > { %v8864_v30 = vpop.f32.mrf.mxu1 }
 0x6e1   : > { %v3337_v0 = vpop.f32.mrf.mxu1 }
 0x6e2   : > { %8910 = vmatprep.mubr.msk.f32.mxu1 %vm578_vm1, %v3337_v0 }
 0x6e3   : > { %8911 = vmatmul.mubr.msk.f32.gmra.mxu1 %vm578_vm1, %v8864_v30 }
 0x70e   : > { %v8871_v59 = vpop.f32.mrf.mxu0 }
 0x710   : > { %v3426_v22 = vpop.f32.mrf.mxu0 }
 0x711   : > { %8913 = vmatprep.mubr.msk.f32.mxu1 %vm578_vm1, %v3426_v22  ;;  %v12143_v22 = vld [vmem:[#allocation36_spill] sm:$0xff] }
 0x712   : > { %v8878_v19 = vpop.f32.mrf.mxu1  ;;  %8914 = vmatmul.mubr.msk.f32.gmra.mxu1 %vm578_vm1, %v8871_v59  ;;  %v12142_v59 = vld [vmem:[#allocation38_spill] sm:$0xff] }
 0x714   : > { %v3515_v28 = vpop.f32.mrf.mxu1 }
 0x715   : > { %8916 = vmatprep.mubr.msk.f32.mxu1 %vm578_vm1, %v3515_v28  ;;  %v12144_v28 = vld [vmem:[#allocation35_spill] sm:$0xff] }
 0x716   : > { %v8885_v1 = vpop.f32.mrf.mxu0  ;;  %8917 = vmatmul.mubr.msk.f32.gmra.mxu1 %vm578_vm1, %v8878_v19 }
 0x718   : > { %v3604_v61 = vpop.f32.mrf.mxu0 }
 0x719   : > { %8919 = vmatprep.mubr.msk.f32.mxu1 %vm578_vm1, %v3604_v61 }
 0x71a   : > { %v8892_v52 = vpop.f32.mrf.mxu1  ;;  %8920 = vmatmul.mubr.msk.f32.gmra.mxu1 %vm578_vm1, %v8885_v1  ;;  %v12145_v1 = vld [vmem:[#allocation41_spill] sm:$0xff] }
 0x71c   : > { %v3693_v56 = vpop.f32.mrf.mxu1 }
 0x71d   : > { %8922 = vmatprep.mubr.msk.f32.mxu1 %vm578_vm1, %v3693_v56 }
 0x71e   : > { %v8899_v10 = vpop.f32.mrf.mxu0  ;;  %8923 = vmatmul.mubr.msk.f32.gmra.mxu1 %vm578_vm1, %v8892_v52  ;;  %v12147_v52 = vld [vmem:[#allocation40_spill] sm:$0xff] }
 0x720   : > { %v3782_v40 = vpop.f32.mrf.mxu0 }
 0x721   : > { %8925 = vmatprep.mubr.msk.f32.mxu1 %vm578_vm1, %v3782_v40 }
 0x722   : > { %8926 = vmatmul.mubr.msk.f32.gmra.mxu1 %vm578_vm1, %v8899_v10  ;;  %v11096_v23 = vpop.f32.mrf.mxu0 }
 0x723   : > { %8944 = vmatprep.mubr.msk.f32.mxu1 %vm578_vm1, %v12139_v62 }
 0x724   : > { %v11100_v38 = vpop.f32.mrf.mxu0 }
 0x726   : > { %v11102_v44 = vpop.f32.mrf.mxu0  ;;  %8945 = vmatmul.mubr.msk.f32.vlgmr.msra.gmra.mxu1 %vm578_vm1, %v12140_v39 }
 0x727   : > { %8957 = vmatpush3.xpose.msk.msra.mxu1 %vm578_vm1, %v10974_v3  ;;  %8947 = vmatprep.mubr.msk.f32.mxu1 %vm578_vm1, %v12141_v36 }
 0x728   : > { %8958 = vmatprep.subr.msk.mxu1 %vm578_vm1, %v10969_v31  ;;  %v11112_v30 = vpop.f32.mrf.mxu0 }
 0x72a   : > { %v11114_v0 = vpop.f32.mrf.mxu0  ;;  %8948 = vmatmul.mubr.msk.f32.gmra.mxu1 %vm578_vm1, %v12142_v59 }
 0x72b   : > { %8959 = vmatpush3.xpose.msk.msra.mxu1 %vm578_vm1, %v10969_v31  ;;  %8950 = vmatprep.mubr.msk.f32.mxu1 %vm578_vm1, %v12143_v22 }
 0x72c   : > { %8970 = vmatprep.subr.msk.mxu1 %vm578_vm1, %v11006_v2  ;;  %v11124_v3 = vpop.f32.mrf.mxu0 }
 0x72e   : > { %v11126_v19 = vpop.f32.mrf.mxu0  ;;  %8951 = vmatmul.mubr.msk.f32.gmra.mxu1 %vm578_vm1, %v12144_v28 }
 0x72f   : > { %8953 = vmatprep.mubr.msk.f32.mxu1 %vm578_vm1, %v12145_v1 }
 0x730   : > { %v11132_v61 = vpop.f32.mrf.mxu0 }
 0x731   : > { %12146 = vst [vmem:[#allocation12_spill] sm:$0xff] %v11132_v61 }
 0x732   : > { %8954 = vmatmul.mubr.msk.f32.gmra.mxu1 %vm578_vm1, %v12147_v52  ;;  %v8969_v31 = vpop.f32.mrf.mxu0  ;;  %v11203_v52 = vpop.permute.xlu0 %5465 }
 0x733   : > { %v11136_v56 = vmul.f32 0.25, %v8969_v31  ;;  %8960 = vmatprep.mubr.msk.f32.mxu1 %vm578_vm1, %v10979_v46 }
 0x734   : > { %v4352_v10 = vpop.f32.mrf.mxu0 }
 0x735   : > { %v11140_v40 = vmul.f32 0.25, %v4352_v10  ;;  %v4932_v62 = vsel %vm578_vm1, %v11136_v56, -inf }
 0x736   : > { %8961 = vmatmul.mubr.msk.f32.vlgmr.msra.gmra.mxu1 %vm578_vm1, %v10993_v51  ;;  %4933 = vmax.xlane.f32.xlu0 %v4932_v62 }
 0x737   : > { %8971 = vmatpush3.xpose.msk.msra.mxu1 %vm578_vm1, %v11006_v2  ;;  %8974 = vmatprep.mubr.msk.f32.mxu1 %vm578_vm1, %v11022_v32  ;;  %v4929_v46 = vsel %vm578_vm1, %v11140_v40, -inf }
 0x738   : > { %8972 = vmatprep.subr.msk.mxu1 %vm578_vm1, %v11014_v27 }
 0x73a   : > { %v8983_v39 = vpop.f32.mrf.mxu0  ;;  %4930 = vmax.xlane.f32.xlu0 %v4929_v46 }
 0x73b   : > { %v4914_v36 = vmul.f32 0.25, %v8983_v39  ;;  %8973 = vmatpush3.xpose.msk.msra.mxu1 %vm578_vm1, %v11014_v27 }
 0x73c   : > { %v4534_v51 = vpop.f32.mrf.mxu0  ;;  %8984 = vmatprep.subr.msk.mxu1 %vm578_vm1, %v11034_v20 }
 0x73d   : > { %v4913_v2 = vmul.f32 0.25, %v4534_v51  ;;  %v4944_v59 = vsel %vm578_vm1, %v4914_v36, -inf }
 0x73e   : > { %8975 = vmatmul.mubr.msk.f32.vlgmr.msra.gmra.mxu1 %vm578_vm1, %v11029_v60  ;;  %4945 = vmax.xlane.f32.xlu0 %v4944_v59 }
 0x73f   : > { %8985 = vmatpush3.xpose.msk.msra.mxu1 %vm578_vm1, %v11034_v20  ;;  %8988 = vmatprep.mubr.msk.f32.mxu1 %vm578_vm1, %v11043_v24  ;;  %v4941_v32 = vsel %vm578_vm1, %v4913_v2, -inf }
 0x740   : > { %4942 = vmax.xlane.f32.xlu1 %v4941_v32  ;;  %8986 = vmatprep.subr.msk.mxu1 %vm578_vm1, %v11039_v12 }
 0x743   : > { %8987 = vmatpush3.xpose.msk.msra.mxu1 %vm578_vm1, %v11039_v12 }
 0x744   : > { %8998 = vmatprep.subr.msk.mxu1 %vm578_vm1, %v11053_v16 }
 0x746   : > { %8989 = vmatmul.mubr.msk.f32.vlgmr.msra.gmra.mxu1 %vm578_vm1, %v11049_v5  ;;  %v8997_v27 = vpop.f32.mrf.mxu0 }
 0x747   : > { %v4918_v60 = vmul.f32 0.25, %v8997_v27  ;;  %8999 = vmatpush3.xpose.msk.msra.mxu1 %vm578_vm1, %v11053_v16  ;;  %9002 = vmatprep.mubr.msk.f32.mxu1 %vm578_vm1, %v11058_v34  ;;  %v11189_v16 = vpop.permute.xlu1 %5291 }
 0x748   : > { %9000 = vmatprep.subr.msk.mxu1 %vm578_vm1, %v11055_v18  ;;  %v4716_v20 = vpop.f32.mrf.mxu0 }
 0x749   : > { %v4917_v24 = vmul.f32 0.25, %v4716_v20  ;;  %v4956_v12 = vsel %vm578_vm1, %v4918_v60, -inf }
 0x74a   : > { %4957 = vmax.xlane.f32.xlu0 %v4956_v12 }
 0x74b   : > { %9001 = vmatpush3.xpose.msk.msra.mxu1 %vm578_vm1, %v11055_v18  ;;  %v4953_v5 = vsel %vm578_vm1, %v4917_v24, -inf }
 0x74c   : > { %9012 = vmatprep.subr.mxu1 %v11068_v55  ;;  %4954 = vmax.xlane.f32.xlu1 %v4953_v5 }
 0x74e   : > { %9003 = vmatmul.mubr.msk.f32.vlgmr.msra.gmra.mxu1 %vm578_vm1, %v11063_v48 }
 0x74f   : > { %9013 = vmatpush3.msra.mxu1 %v11068_v55  ;;  %v11201_v55 = vpop.permute.xlu1 %5289 }
 0x750   : > { %9014 = vmatprep.subr.mxu1 %v11070_v49 }
 0x751   : > { %9015 = vmatpush3.msra.mxu1 %v11070_v49 }
 0x752   : > { %9026 = vmatprep.subr.mxu1 %v11189_v16 }
 0x753   : > { %v9011_v34 = vpop.f32.mrf.mxu0  ;;  %v11207_v31 = vpop.permute.xlu1 %5376 }
 0x754   : > { %v11193_v18 = vmul.f32 0.25, %v9011_v34 }
 0x755   : > { %v4898_v22 = vpop.f32.mrf.mxu0 }
 0x756   : > { %v11195_v28 = vmul.f32 0.25, %v4898_v22  ;;  %v4968_v1 = vsel %vm578_vm1, %v11193_v18, -inf }
 0x757   : > { %4969 = vmax.xlane.f32.xlu0 %v4968_v1  ;;  %v11215_v27 = vpop.permute.xlu1 %5463 }
 0x758   : > { %v4965_v48 = vsel %vm578_vm1, %v11195_v28, -inf }
 0x759   : > { %4966 = vmax.xlane.f32.xlu1 %v4965_v48 }
 0x77e   : > { %v11205_v49 = vpop.f32.mrf.mxu1 }
 0x780   : > { %v11210_v46 = vpop.f32.mrf.mxu1 }
 0x79e   : > { %v11212_v59 = vpop.f32.mrf.mxu1 }
 0x7a0   : > { %v11217_v5 = vpop.f32.mrf.mxu1 }
 0x7a3   : > { %v11219_v48 = vpop.f32.mrf.mxu1 }
 0x7bf   : > { %v4934_v10 = vpop.xlane.xlu0 %4933 }
 0x7c0   : > { %v4974_v62 = vsub.f32 %v11136_v56, %v4934_v10 }
 0x7c2   : > { %v4993_v39 = vmul.f32 1.442695, %v4974_v62  ;;  %v11221_v62 = vpop.f32.mrf.mxu1 }
 0x7c3   : > { %v4931_v51 = vpop.xlane.xlu0 %4930 }
 0x7c4   : > { %9449 = vpow2.f32 %v4993_v39  ;;  %v4973_v32 = vsub.f32 %v11140_v40, %v4931_v51 }
 0x7c6   : > { %v4991_v20 = vmul.f32 1.442695, %v4973_v32 }
 0x7c7   : > { %v4946_v12 = vpop.xlane.xlu0 %4945 }
 0x7c8   : > { %9451 = vpow2.f32 %v4991_v20  ;;  %v4978_v34 = vsub.f32 %v4914_v36, %v4946_v12 }
 0x7c9   : > { %v4943_v22 = vpop.xlane.xlu1 %4942 }
 0x7ca   : > { %v5001_v1 = vmul.f32 1.442695, %v4978_v34  ;;  %v4977_v56 = vsub.f32 %v4913_v2, %v4943_v22 }
 0x7cc   : > { %9453 = vpow2.f32 %v5001_v1  ;;  %v4999_v10 = vmul.f32 1.442695, %v4977_v56 }
 0x7ce   : > { %9455 = vpow2.f32 %v4999_v10 }
 0x7d1   : > { %v11223_v39 = vpop.eup %9449 }
 0x7d2   : > { %v11225_v40 = vpop.f32.mrf.mxu1  ;;  %v5028_v51 = vsel %vm578_vm1, %v11223_v39, 0.0 }
 0x7d3   : > { %v4958_v32 = vpop.xlane.xlu0 %4957  ;;  %5029 = vadd.xlane.f32.xlu0 %v5028_v51 }
 0x7d4   : > { %v4982_v36 = vsub.f32 %v4918_v60, %v4958_v32  ;;  %v11229_v20 = vpop.f32.mrf.mxu1 }
 0x7d5   : > { %12148 = vst [vmem:[#allocation14_spill] sm:$0xff] %v11229_v20  ;;  %v11231_v2 = vpop.eup %9451  ;;  %v4955_v12 = vpop.xlane.xlu1 %4954 }
 0x7d6   : > { %v5009_v34 = vmul.f32 1.442695, %v4982_v36  ;;  %v4981_v22 = vsub.f32 %v4917_v24, %v4955_v12  ;;  %v8918_v1 = vpop.f32.mrf.mxu1  ;;  %v5025_v56 = vsel %vm578_vm1, %v11231_v2, 0.0 }
 0x7d7   : > { %5026 = vadd.xlane.f32.xlu1 %v5025_v56 }
 0x7d8   : > { %9457 = vpow2.f32 %v5009_v34  ;;  %v5007_v10 = vmul.f32 1.442695, %v4981_v22  ;;  %v3947_v11 = vpop.f32.mrf.mxu1 }
 0x7d9   : > { %v11235_v8 = vpop.eup %9453 }
 0x7da   : > { %9459 = vpow2.f32 %v5007_v10  ;;  %v8921_v51 = vpop.f32.mrf.mxu1  ;;  %v5040_v60 = vsel %vm578_vm1, %v11235_v8, 0.0 }
 0x7db   : > { %v11239_v32 = vpop.eup %9455  ;;  %5041 = vadd.xlane.f32.xlu0 %v5040_v60 }
 0x7dc   : > { %v3957_v36 = vpop.f32.mrf.mxu1  ;;  %v5037_v24 = vsel %vm578_vm1, %v11239_v32, 0.0 }
 0x7dd   : > { %5038 = vadd.xlane.f32.xlu1 %v5037_v24 }
 0x7de   : > { %v8924_v12 = vpop.f32.mrf.mxu1 }
 0x7e0   : > { %v3967_v56 = vpop.f32.mrf.mxu1  ;;  %v4970_v34 = vpop.xlane.xlu0 %4969 }
 0x7e1   : > { %v4986_v22 = vsub.f32 %v11193_v18, %v4970_v34 }
 0x7e2   : > { %v8927_v15 = vpop.f32.mrf.mxu1  ;;  %v4967_v58 = vpop.xlane.xlu1 %4966 }
 0x7e3   : > { %v5017_v10 = vmul.f32 1.442695, %v4986_v22  ;;  %v4985_v6 = vsub.f32 %v11195_v28, %v4967_v58 }
 0x7e4   : > { %v3977_v63 = vpop.f32.mrf.mxu1 }
 0x7e5   : > { %v11245_v50 = vpop.eup %9457  ;;  %9461 = vpow2.f32 %v5017_v10  ;;  %v5015_v60 = vmul.f32 1.442695, %v4985_v6 }
 0x7e6   : > { %v8946_v54 = vpop.f32.mrf.mxu1  ;;  %v5052_v43 = vsel %vm578_vm1, %v11245_v50, 0.0 }
 0x7e7   : > { %v11249_v24 = vpop.eup %9459  ;;  %9463 = vpow2.f32 %v5015_v60  ;;  %v11251_v47 = vadd.f32 %v8946_v54, %v8918_v1  ;;  %5053 = vadd.xlane.f32.xlu0 %v5052_v43 }
 0x7e8   : > { %v4140_v18 = vpop.f32.mrf.mxu1  ;;  %v5049_v34 = vsel %vm578_vm1, %v11249_v24, 0.0 }
 0x7e9   : > { %12149 = vst [vmem:[#allocation19_spill] sm:$0xff] %v11251_v47  ;;  %v11255_v58 = vadd.f32 %v4140_v18, %v3947_v11  ;;  %5050 = vadd.xlane.f32.xlu1 %v5049_v34 }
 0x7ea   : > { %v8949_v28 = vpop.f32.mrf.mxu1 }
 0x7eb   : > { %v11257_v22 = vadd.f32 %v8949_v28, %v8921_v51 }
 0x7ec   : > { %v4150_v6 = vpop.f32.mrf.mxu1 }
 0x7ed   : > { %v11259_v10 = vadd.f32 %v4150_v6, %v3957_v36 }
 0x7ee   : > { %v8952_v61 = vpop.f32.mrf.mxu1 }
 0x7ef   : > { %12150 = vst [vmem:[#allocation17_spill] sm:$0xff] %v11259_v10  ;;  %v11261_v20 = vadd.f32 %v8952_v61, %v8924_v12 }
 0x7f0   : > { %v4160_v60 = vpop.f32.mrf.mxu1 }
 0x7f1   : > { %12151 = vst [vmem:[#allocation22_spill] sm:$0xff] %v11261_v20  ;;  %v11263_v54 = vadd.f32 %v4160_v60, %v3967_v56 }
 0x7f2   : > { %v11265_v43 = vpop.eup %9461  ;;  %v8955_v1 = vpop.f32.mrf.mxu1 }
 0x7f3   : > { %12152 = vst [vmem:[#allocation24_spill] sm:$0xff] %v11263_v54  ;;  %v11267_v47 = vadd.f32 %v8955_v1, %v8927_v15  ;;  %v5064_v11 = vsel %vm578_vm1, %v11265_v43, 0.0 }
 0x7f4   : > { %v11271_v18 = vpop.eup %9463  ;;  %v4170_v51 = vpop.f32.mrf.mxu1  ;;  %5065 = vadd.xlane.f32.xlu0 %v5064_v11 }
 0x7f5   : > { %12153 = vst [vmem:[#allocation37_spill] sm:$0xff] %v11267_v47  ;;  %v11273_v36 = vadd.f32 %v4170_v51, %v3977_v63  ;;  %v5061_v61 = vsel %vm578_vm1, %v11271_v18, 0.0 }
 0x7f6   : > { %v8962_v12 = vpop.f32.mrf.mxu1  ;;  %5062 = vadd.xlane.f32.xlu1 %v5061_v61 }
 0x7f7   : > { %12154 = vst [vmem:[#allocation34_spill] sm:$0xff] %v11273_v36  ;;  %v11277_v56 = vmul.f32 0.25, %v8962_v12 }
 0x7f8   : > { %v4261_v34 = vpop.f32.mrf.mxu1 }
 0x7f9   : > { %v11279_v28 = vmul.f32 0.25, %v4261_v34  ;;  %v4926_v15 = vsel %vm578_vm1, %v11277_v56, -inf }
 0x7fa   : > { %4927 = vmax.xlane.f32.xlu1 %v4926_v15 }
 0x7fb   : > { %v4923_v6 = vsel %vm578_vm1, %v11279_v28, -inf }
 0x7fc   : > { %4924 = vmax.xlane.f32.xlu0 %v4923_v6 }
 0x7fe   : > { %v8976_v63 = vpop.f32.mrf.mxu1 }
 0x7ff   : > { %v11285_v60 = vmul.f32 0.25, %v8976_v63 }
 0x800   : > { %v4443_v1 = vpop.f32.mrf.mxu1 }
 0x801   : > { %v11287_v11 = vmul.f32 0.25, %v4443_v1  ;;  %v4938_v51 = vsel %vm578_vm1, %v11285_v60, -inf }
 0x802   : > { %4939 = vmax.xlane.f32.xlu0 %v4938_v51 }
 0x803   : > { %v4935_v61 = vsel %vm578_vm1, %v11287_v11, -inf }
 0x804   : > { %4936 = vmax.xlane.f32.xlu1 %v4935_v61 }
 0x806   : > { %v8990_v12 = vpop.f32.mrf.mxu1 }
 0x807   : > { %v11293_v34 = vmul.f32 0.25, %v8990_v12 }
 0x808   : > { %v4625_v15 = vpop.f32.mrf.mxu1 }
 0x809   : > { %v11295_v36 = vmul.f32 0.25, %v4625_v15  ;;  %v4950_v6 = vsel %vm578_vm1, %v11293_v34, -inf  ;;  %v12155_v15 = vld [vmem:[#allocation29_spill] sm:$0xff] }
 0x80a   : > { %4951 = vmax.xlane.f32.xlu0 %v4950_v6  ;;  %v12156_v6 = vld [vmem:[#allocation30_spill] sm:$0xff] }
 0x80b   : > { %v4947_v63 = vsel %vm578_vm1, %v11295_v36, -inf }
 0x80c   : > { %4948 = vmax.xlane.f32.xlu1 %v4947_v63 }
 0x80e   : > { %v9004_v1 = vpop.f32.mrf.mxu1 }
 0x80f   : > { %v11301_v51 = vmul.f32 0.25, %v9004_v1 }
 0x810   : > { %v4807_v47 = vpop.f32.mrf.mxu1 }
 0x811   : > { %v11303_v54 = vmul.f32 0.25, %v4807_v47  ;;  %v4962_v61 = vsel %vm578_vm1, %v11301_v51, -inf }
 0x812   : > { %4963 = vmax.xlane.f32.xlu0 %v4962_v61 }
 0x813   : > { %v4959_v12 = vsel %vm578_vm1, %v11303_v54, -inf }
 0x814   : > { %4960 = vmax.xlane.f32.xlu1 %v4959_v12 }
 0x825   : > { %5550 = vrot.lane.b32.xlu1 %v12155_v15, %s9739_s12 }
 0x828   : > { %5552 = vrot.lane.b32.xlu0 %v12156_v6, %s9739_s12 }
 0x85c   : > { %v5030_v63 = vpop.xlane.xlu0 %5029 }
 0x85d   : > { %9465 = vrcp.f32 %v5030_v63 }
 0x860   : > { %v5027_v47 = vpop.xlane.xlu1 %5026 }
 0x861   : > { %9467 = vrcp.f32 %v5027_v47 }
 0x864   : > { %v5042_v1 = vpop.xlane.xlu0 %5041 }
 0x865   : > { %9469 = vrcp.f32 %v5042_v1 }
 0x866   : > { %v5039_v20 = vpop.xlane.xlu1 %5038 }
 0x867   : > { %9471 = vrcp.f32 %v5039_v20 }
 0x86a   : > { %v9466_v61 = vpop.eup %9465 }
 0x86b   : > { %v5086_v10 = vmul.f32 %v9466_v61, %v11223_v39 }
 0x86d   : > { %5102 = vst.msk [vmem:[%s10437_s7 + $0x68] sm:$0xff] %vm578_vm1, %v5086_v10 }
 0x86e   : > { %v9468_v12 = vpop.eup %9467 }
 0x86f   : > { %v5085_v15 = vmul.f32 %v9468_v12, %v11231_v2 }
 0x870   : > { %v5054_v6 = vpop.xlane.xlu0 %5053 }
 0x871   : > { %9473 = vrcp.f32 %v5054_v6  ;;  %5101 = vst.msk [vmem:[%s10437_s7 + $0x60] sm:$0xff] %vm578_vm1, %v5085_v15  ;;  %9023 = vmatprep.mubr.msk.f32.mxu0 %vm578_vm1, %v5085_v15 }
 0x872   : > { %v9470_v63 = vpop.eup %9469  ;;  %9024 = vmatmul.mubr.msk.f32.vlgmr.msra.gmra.mxu0 %vm578_vm1, %v5086_v10  ;;  %v5051_v20 = vpop.xlane.xlu1 %5050 }
 0x873   : > { %9034 = vmatpush3.msra.mxu0 %v11072_v41  ;;  %9475 = vrcp.f32 %v5051_v20  ;;  %v5090_v39 = vmul.f32 %v9470_v63, %v11235_v8 }
 0x874   : > { %v9472_v47 = vpop.eup %9471  ;;  %9035 = vmatprep.subr.mxu0 %v11207_v31 }
 0x875   : > { %9036 = vmatpush3.msra.mxu0 %v11207_v31  ;;  %v5089_v2 = vmul.f32 %v9472_v47, %v11239_v32  ;;  %5106 = vst.msk [vmem:[%s10437_s7 + $0xe8] sm:$0xff] %vm578_vm1, %v5090_v39 }
 0x877   : > { %5105 = vst.msk [vmem:[%s10437_s7 + $0xe0] sm:$0xff] %vm578_vm1, %v5089_v2  ;;  %9037 = vmatprep.mubr.msk.f32.mxu0 %vm578_vm1, %v5089_v2 }
 0x878   : > { %9038 = vmatmul.mubr.msk.f32.vlgmr.msra.gmra.mxu0 %vm578_vm1, %v5090_v39 }
 0x87d   : > { %v5066_v41 = vpop.xlane.xlu0 %5065 }
 0x87e   : > { %v9474_v10 = vpop.eup %9473  ;;  %9477 = vrcp.f32 %v5066_v41 }
 0x87f   : > { %v5063_v8 = vpop.xlane.xlu1 %5062  ;;  %v5094_v15 = vmul.f32 %v9474_v10, %v11245_v50 }
 0x880   : > { %v9476_v6 = vpop.eup %9475  ;;  %9479 = vrcp.f32 %v5063_v8 }
 0x881   : > { %v5093_v31 = vmul.f32 %v9476_v6, %v11249_v24  ;;  %5110 = vst.msk [vmem:[%s10437_s7 + $0x168] sm:$0xff] %vm578_vm1, %v5094_v15 }
 0x883   : > { %5109 = vst.msk [vmem:[%s10437_s7 + $0x160] sm:$0xff] %vm578_vm1, %v5093_v31  ;;  %9051 = vmatprep.mubr.msk.f32.mxu0 %vm578_vm1, %v5093_v31  ;;  %v4928_v32 = vpop.xlane.xlu1 %4927 }
 0x884   : > { %v4972_v1 = vsub.f32 %v11277_v56, %v4928_v32 }
 0x885   : > { %v4925_v61 = vpop.xlane.xlu0 %4924 }
 0x886   : > { %v4989_v12 = vmul.f32 1.442695, %v4972_v1  ;;  %v4971_v63 = vsub.f32 %v11279_v28, %v4925_v61 }
 0x888   : > { %9481 = vpow2.f32 %v4989_v12  ;;  %v4987_v50 = vmul.f32 1.442695, %v4971_v63 }
 0x88a   : > { %9483 = vpow2.f32 %v4987_v50 }
 0x88b   : > { %v9478_v20 = vpop.eup %9477  ;;  %v4940_v24 = vpop.xlane.xlu0 %4939 }
 0x88c   : > { %v4976_v39 = vsub.f32 %v11285_v60, %v4940_v24  ;;  %v11343_v47 = vmul.f32 %v9478_v20, %v11265_v43 }
 0x88d   : > { %v9480_v2 = vpop.eup %9479  ;;  %v4937_v41 = vpop.xlane.xlu1 %4936 }
 0x88e   : > { %v4997_v10 = vmul.f32 1.442695, %v4976_v39  ;;  %v4975_v56 = vsub.f32 %v11287_v11, %v4937_v41  ;;  %v5097_v8 = vmul.f32 %v9480_v2, %v11271_v18  ;;  %5114 = vst.msk [vmem:[%s10437_s7 + $0x1e8] sm:$0xff] %vm578_vm1, %v11343_v47 }
 0x890   : > { %9485 = vpow2.f32 %v4997_v10  ;;  %v4995_v28 = vmul.f32 1.442695, %v4975_v56  ;;  %5113 = vst.msk [vmem:[%s10437_s7 + $0x1e0] sm:$0xff] %vm578_vm1, %v5097_v8  ;;  %v12157_v10 = vld [vmem:[#allocation31_spill] sm:$0xff] }
 0x892   : > { %9487 = vpow2.f32 %v4995_v28  ;;  %v12158_v28 = vld [vmem:[#allocation32_spill] sm:$0xff] }
 0x893   : > { %v4952_v6 = vpop.xlane.xlu0 %4951 }
 0x894   : > { %v4980_v60 = vsub.f32 %v11293_v34, %v4952_v6 }
 0x895   : > { %v11353_v43 = vpop.eup %9481  ;;  %v4949_v1 = vpop.xlane.xlu1 %4948 }
 0x896   : > { %v5005_v31 = vmul.f32 1.442695, %v4980_v60  ;;  %v5022_v32 = vsel %vm578_vm1, %v11353_v43, 0.0  ;;  %v4979_v56 = vsub.f32 %v11295_v36, %v4949_v1  ;;  %v12159_v1 = vld [vmem:[#allocation21_spill] sm:$0xff] }
 0x897   : > { %v11357_v11 = vpop.eup %9483  ;;  %5023 = vadd.xlane.f32.xlu0 %v5022_v32 }
 0x898   : > { %9489 = vpow2.f32 %v5005_v31  ;;  %v5019_v18 = vsel %vm578_vm1, %v11357_v11, 0.0  ;;  %v5003_v6 = vmul.f32 1.442695, %v4979_v56 }
 0x899   : > { %5020 = vadd.xlane.f32.xlu1 %v5019_v18 }
 0x89a   : > { %9491 = vpow2.f32 %v5003_v6 }
 0x89b   : > { %v4964_v61 = vpop.xlane.xlu0 %4963 }
 0x89d   : > { %v11361_v12 = vpop.eup %9485  ;;  %v4961_v63 = vpop.xlane.xlu1 %4960 }
 0x89e   : > { %v5034_v34 = vsel %vm578_vm1, %v11361_v12, 0.0  ;;  %v4983_v60 = vsub.f32 %v11303_v54, %v4961_v63 }
 0x89f   : > { %v11365_v50 = vpop.eup %9487  ;;  %v5553_v20 = vpop.permute.xlu0 %5552  ;;  %5035 = vadd.xlane.f32.xlu0 %v5034_v34 }
 0x8a0   : > { %9047 = vmatprep.subr.mxu0 %v5553_v20  ;;  %v5031_v24 = vsel %vm578_vm1, %v11365_v50, 0.0  ;;  %v5011_v31 = vmul.f32 1.442695, %v4983_v60 }
 0x8a1   : > { %9048 = vmatpush3.msra.mxu0 %v5553_v20  ;;  %5032 = vadd.xlane.f32.xlu1 %v5031_v24  ;;  %v5551_v39 = vpop.permute.xlu1 %5550 }
 0x8a2   : > { %9049 = vmatprep.subr.mxu0 %v5551_v39  ;;  %9493 = vpow2.f32 %v5011_v31  ;;  %v5811_v31 = vld [vmem:[#allocation7 + $0x20] sm:$0xff] }
 0x8a3   : > { %9050 = vmatpush3.msra.mxu0 %v5551_v39 }
 0x8a4   : > { %9052 = vmatmul.mubr.msk.f32.vlgmr.msra.gmra.mxu0 %vm578_vm1, %v5094_v15  ;;  %v4984_v15 = vsub.f32 %v11301_v51, %v4964_v61 }
 0x8a5   : > { %v11370_v2 = vpop.eup %9489  ;;  %9065 = vmatprep.mubr.msk.f32.mxu0 %vm578_vm1, %v5097_v8 }
 0x8a6   : > { %v5046_v41 = vsel %vm578_vm1, %v11370_v2, 0.0  ;;  %v5013_v8 = vmul.f32 1.442695, %v4984_v15 }
 0x8a7   : > { %5047 = vadd.xlane.f32.xlu0 %v5046_v41  ;;  %v11382_v32 = vpop.eup %9491  ;;  %v5812_v41 = vld [vmem:[#allocation7 + $0x28] sm:$0xff] }
 0x8a8   : > { %9495 = vpow2.f32 %v5013_v8  ;;  %v5043_v18 = vsel %vm578_vm1, %v11382_v32, 0.0 }
 0x8af   : > { %v11386_v34 = vpop.eup %9493 }
 0x8b0   : > { %v5055_v54 = vsel %vm578_vm1, %v11386_v34, 0.0 }
 0x8b2   : > { %5637 = vrot.lane.b32.xlu1 %v12157_v10, %s9739_s12 }
 0x8b5   : > { %v11388_v36 = vpop.eup %9495 }
 0x8b6   : > { %v5058_v51 = vsel %vm578_vm1, %v11388_v36, 0.0 }
 0x8bd   : > { %5639 = vrot.lane.b32.xlu0 %v12158_v28, %s9739_s12 }
 0x8d6   : > { %5044 = vadd.xlane.f32.xlu1 %v5043_v18 }
 0x8da   : > { %5056 = vadd.xlane.f32.xlu1 %v5055_v54 }
 0x8dc   : > { %5059 = vadd.xlane.f32.xlu0 %v5058_v51 }
 0x8eb   : > { %5724 = vrot.lane.b32.xlu1 %v10107_v35, %s9739_s12 }
 0x8ef   : > { %6026 = vrot.lane.b32.xlu1 %v12131_v26, %s9740_s20 }
 0x8f2   : > { %5726 = vrot.lane.b32.xlu0 %v10492_v7, %s9739_s12 }
 0x8f3   : > { %6119 = vrot.lane.b32.xlu1 %v12134_v53, %s9740_s20 }
 0x8f6   : > { %6028 = vrot.lane.b32.xlu0 %v12132_v45, %s9740_s20 }
 0x8f7   : > { %6117 = vrot.lane.b32.xlu1 %v12133_v42, %s9740_s20 }
 0x8fa   : > { %6022 = vrot.lane.b32.xlu0 %v12131_v26, %s9741_s27 }
 0x8fb   : > { %6210 = vrot.lane.b32.xlu1 %v12136_v57, %s9740_s20 }
 0x8fe   : > { %6024 = vrot.lane.b32.xlu0 %v12132_v45, %s9741_s27 }
 0x8ff   : > { %6208 = vrot.lane.b32.xlu1 %v12159_v1, %s9740_s20 }
 0x902   : > { %6113 = vrot.lane.b32.xlu0 %v12133_v42, %s9741_s27 }
 0x903   : > { %6301 = vrot.lane.b32.xlu1 %v10040_v4, %s9740_s20 }
 0x906   : > { %6115 = vrot.lane.b32.xlu0 %v12134_v53, %s9741_s27 }
 0x907   : > { %6299 = vrot.lane.b32.xlu1 %v12137_v14, %s9740_s20 }
 0x90a   : > { %6204 = vrot.lane.b32.xlu0 %v12159_v1, %s9741_s27 }
 0x90b   : > { %6295 = vrot.lane.b32.xlu1 %v12137_v14, %s9741_s27 }
 0x90e   : > { %6206 = vrot.lane.b32.xlu0 %v12136_v57, %s9741_s27 }
 0x90f   : > { %6390 = vrot.lane.b32.xlu1 %v10051_v9, %s9740_s20 }
 0x912   : > { %6392 = vrot.lane.b32.xlu0 %v10063_v13, %s9740_s20 }
 0x913   : > { %6386 = vrot.lane.b32.xlu1 %v10051_v9, %s9741_s27 }
 0x916   : > { %6297 = vrot.lane.b32.xlu0 %v10040_v4, %s9741_s27 }
 0x917   : > { %6481 = vrot.lane.b32.xlu1 %v10071_v17, %s9740_s20 }
 0x91a   : > { %6483 = vrot.lane.b32.xlu0 %v10079_v21, %s9740_s20 }
 0x91b   : > { %6477 = vrot.lane.b32.xlu1 %v10071_v17, %s9741_s27 }
 0x91e   : > { %6388 = vrot.lane.b32.xlu0 %v10063_v13, %s9741_s27 }
 0x91f   : > { %6572 = vrot.lane.b32.xlu1 %v10087_v25, %s9740_s20 }
 0x920   : > { %v5024_v26 = vpop.xlane.xlu0 %5023 }
 0x921   : > { %9497 = vrcp.f32 %v5024_v26 }
 0x922   : > { %6574 = vrot.lane.b32.xlu0 %v10096_v29, %s9740_s20  ;;  %v5021_v4 = vpop.xlane.xlu1 %5020 }
 0x923   : > { %6568 = vrot.lane.b32.xlu1 %v10087_v25, %s9741_s27  ;;  %9499 = vrcp.f32 %v5021_v4 }
 0x926   : > { %6479 = vrot.lane.b32.xlu0 %v10079_v21, %s9741_s27 }
 0x927   : > { %6663 = vrot.lane.b32.xlu1 %v10104_v33, %s9740_s20 }
 0x928   : > { %v5036_v9 = vpop.xlane.xlu0 %5035 }
 0x929   : > { %9501 = vrcp.f32 %v5036_v9 }
 0x92a   : > { %6665 = vrot.lane.b32.xlu0 %v10112_v37, %s9740_s20  ;;  %v5033_v13 = vpop.xlane.xlu1 %5032 }
 0x92b   : > { %9503 = vrcp.f32 %v5033_v13  ;;  %6661 = vrot.lane.b32.xlu1 %v10112_v37, %s9741_s27 }
 0x92e   : > { %v9498_v17 = vpop.eup %9497  ;;  %6570 = vrot.lane.b32.xlu0 %v10096_v29, %s9741_s27 }
 0x92f   : > { %v5084_v21 = vmul.f32 %v9498_v17, %v11353_v43 }
 0x930   : > { %v9500_v25 = vpop.eup %9499  ;;  %v5048_v45 = vpop.xlane.xlu0 %5047 }
 0x931   : > { %9505 = vrcp.f32 %v5048_v45  ;;  %v5083_v42 = vmul.f32 %v9500_v25, %v11357_v11  ;;  %5100 = vst.msk [vmem:[%s10437_s7 + $0x28] sm:$0xff] %vm578_vm1, %v5084_v21 }
 0x932   : > { %6659 = vrot.lane.b32.xlu0 %v10104_v33, %s9741_s27 }
 0x933   : > { %5099 = vst.msk [vmem:[%s10437_s7 + $0x20] sm:$0xff] %vm578_vm1, %v5083_v42  ;;  %9016 = vmatprep.mubr.msk.f32.mxu1 %vm578_vm1, %v5083_v42 }
 0x934   : > { %9017 = vmatmul.mubr.msk.f32.vlgmr.msra.gmra.mxu1 %vm578_vm1, %v5084_v21  ;;  %v5640_v14 = vpop.permute.xlu0 %5639 }
 0x935   : > { %9027 = vmatpush3.msra.mxu1 %v11189_v16 }
 0x936   : > { %v9502_v29 = vpop.eup %9501  ;;  %9028 = vmatprep.subr.mxu1 %v11201_v55 }
 0x937   : > { %9029 = vmatpush3.msra.mxu1 %v11201_v55  ;;  %v5088_v37 = vmul.f32 %v9502_v29, %v11361_v12  ;;  %v5638_v55 = vpop.permute.xlu1 %5637 }
 0x938   : > { %v9504_v53 = vpop.eup %9503  ;;  %9040 = vmatprep.subr.mxu1 %v11203_v52 }
 0x939   : > { %v5087_v33 = vmul.f32 %v9504_v53, %v11365_v50  ;;  %5104 = vst.msk [vmem:[%s10437_s7 + $0xa8] sm:$0xff] %vm578_vm1, %v5088_v37 }
 0x93b   : > { %5103 = vst.msk [vmem:[%s10437_s7 + $0xa0] sm:$0xff] %vm578_vm1, %v5087_v33  ;;  %9030 = vmatprep.mubr.msk.f32.mxu1 %vm578_vm1, %v5087_v33 }
 0x93c   : > { %9031 = vmatmul.mubr.msk.f32.vlgmr.msra.gmra.mxu1 %vm578_vm1, %v5088_v37 }
 0x93d   : > { %9041 = vmatpush3.msra.mxu1 %v11203_v52 }
 0x93e   : > { %v9506_v57 = vpop.eup %9505  ;;  %9042 = vmatprep.subr.mxu1 %v11215_v27 }
 0x93f   : > { %9043 = vmatpush3.msra.mxu1 %v11215_v27  ;;  %v5092_v16 = vmul.f32 %v9506_v57, %v11370_v2 }
 0x940   : > { %9054 = vmatprep.subr.mxu1 %v5640_v14 }
 0x941   : > { %5108 = vst.msk [vmem:[%s10437_s7 + $0x128] sm:$0xff] %vm578_vm1, %v5092_v16 }
 0x95f   : > { %v5045_v43 = vpop.xlane.xlu1 %5044 }
 0x960   : > { %9507 = vrcp.f32 %v5045_v43 }
 0x963   : > { %v5057_v11 = vpop.xlane.xlu1 %5056 }
 0x964   : > { %9509 = vrcp.f32 %v5057_v11  ;;  %v9025_v11 = vpop.f32.mrf.mxu0 }
 0x965   : > { %v5060_v61 = vpop.xlane.xlu0 %5059 }
 0x966   : > { %9511 = vrcp.f32 %v5060_v61 }
 0x967   : > { %v5725_v52 = vpop.permute.xlu1 %5724 }
 0x969   : > { %v5727_v12 = vpop.permute.xlu0 %5726 }
 0x96a   : > { %9061 = vmatprep.subr.mxu0 %v5727_v12 }
 0x96b   : > { %9062 = vmatpush3.msra.mxu0 %v5727_v12  ;;  %v6027_v63 = vpop.permute.xlu1 %6026  ;;  %v5280_v12 = vpop.f32.mrf.mxu0 }
 0x96c   : > { %9063 = vmatprep.subr.mxu0 %v5725_v52 }
 0x96d   : > { %v9508_v27 = vpop.eup %9507  ;;  %v6029_v50 = vpop.permute.xlu0 %6028  ;;  %9064 = vmatpush3.msra.mxu0 %v5725_v52 }
 0x96e   : > { %9066 = vmatmul.mubr.msk.f32.vlgmr.msra.gmra.mxu0 %vm578_vm1, %v11343_v47  ;;  %9096 = vmatprep.subr.msk.mxu0 %vm578_vm1, %v6029_v50  ;;  %v5091_v20 = vmul.f32 %v9508_v27, %v11382_v32 }
 0x96f   : > { %9097 = vmatpush3.xpose.msk.msra.mxu0 %vm578_vm1, %v6029_v50  ;;  %v6120_v24 = vpop.permute.xlu1 %6119 }
 0x970   : > { %5107 = vst.msk [vmem:[%s10437_s7 + $0x120] sm:$0xff] %vm578_vm1, %v5091_v20  ;;  %9044 = vmatprep.mubr.msk.f32.mxu1 %vm578_vm1, %v5091_v20  ;;  %9098 = vmatprep.subr.msk.mxu0 %vm578_vm1, %v6027_v63 }
 0x971   : > { %v9510_v39 = vpop.eup %9509  ;;  %v6023_v2 = vpop.permute.xlu0 %6022  ;;  %9045 = vmatmul.mubr.msk.f32.vlgmr.msra.gmra.mxu1 %vm578_vm1, %v5092_v16 }
 0x972   : > { %9055 = vmatpush3.msra.mxu1 %v5640_v14  ;;  %9100 = vmatprep.mubr.msk.f32.mxu0 %vm578_vm1, %v6023_v2  ;;  %v5095_v47 = vmul.f32 %v9510_v39, %v11386_v34 }
 0x973   : > { %v9512_v56 = vpop.eup %9511  ;;  %9056 = vmatprep.subr.mxu1 %v5638_v55  ;;  %9099 = vmatpush3.xpose.msk.msra.mxu0 %vm578_vm1, %v6027_v63  ;;  %v6118_v6 = vpop.permute.xlu1 %6117 }
 0x974   : > { %9057 = vmatpush3.msra.mxu1 %v5638_v55  ;;  %5111 = vst.msk [vmem:[%s10437_s7 + $0x1a0] sm:$0xff] %vm578_vm1, %v5095_v47  ;;  %9058 = vmatprep.mubr.msk.f32.mxu1 %vm578_vm1, %v5095_v47  ;;  %v5096_v60 = vmul.f32 %v9512_v56, %v11388_v36  ;;  %v9039_v63 = vpop.f32.mrf.mxu0 }
 0x975   : > { %9103 = vmatprep.subr.msk.mxu0 %vm578_vm1, %v6120_v24  ;;  %v6025_v15 = vpop.permute.xlu0 %6024  ;;  %9068 = vmatprep.subr.mxu1 %v5812_v41 }
 0x976   : > { %5112 = vst.msk [vmem:[%s10437_s7 + $0x1a8] sm:$0xff] %vm578_vm1, %v5096_v60  ;;  %9059 = vmatmul.mubr.msk.f32.vlgmr.msra.gmra.mxu1 %vm578_vm1, %v5096_v60  ;;  %9101 = vmatmul.mubr.msk.f32.vlgmr.msra.gmra.mxu0 %vm578_vm1, %v6025_v15  ;;  %v5454_v20 = vpop.f32.mrf.mxu0 }
 0x977   : > { %9104 = vmatpush3.xpose.msk.msra.mxu0 %vm578_vm1, %v6120_v24  ;;  %v6211_v8 = vpop.permute.xlu1 %6210  ;;  %9069 = vmatpush3.msra.mxu1 %v5812_v41 }
 0x978   : > { %9105 = vmatprep.subr.msk.mxu0 %vm578_vm1, %v6118_v6  ;;  %9070 = vmatprep.subr.mxu1 %v5811_v31  ;;  %v9053_v24 = vpop.f32.mrf.mxu0 }
 0x979   : > { %v6114_v32 = vpop.permute.xlu0 %6113  ;;  %9071 = vmatpush3.msra.mxu1 %v5811_v31 }
 0x97a   : > { %9107 = vmatprep.mubr.msk.f32.mxu0 %vm578_vm1, %v6114_v32  ;;  %v5628_v39 = vpop.f32.mrf.mxu0 }
 0x97b   : > { %9106 = vmatpush3.xpose.msk.msra.mxu0 %vm578_vm1, %v6118_v6  ;;  %v6209_v18 = vpop.permute.xlu1 %6208 }
 0x97c   : > { %9110 = vmatprep.subr.msk.mxu0 %vm578_vm1, %v6211_v8 }
 0x97d   : > { %v6116_v34 = vpop.permute.xlu0 %6115 }
 0x97e   : > { %9108 = vmatmul.mubr.msk.f32.vlgmr.msra.gmra.mxu0 %vm578_vm1, %v6116_v34 }
 0x97f   : > { %9111 = vmatpush3.xpose.msk.msra.mxu0 %vm578_vm1, %v6211_v8  ;;  %v6302_v36 = vpop.permute.xlu1 %6301 }
 0x980   : > { %9112 = vmatprep.subr.msk.mxu0 %vm578_vm1, %v6209_v18 }
 0x981   : > { %v6205_v54 = vpop.permute.xlu0 %6204 }
 0x982   : > { %9114 = vmatprep.mubr.msk.f32.mxu0 %vm578_vm1, %v6205_v54 }
 0x983   : > { %9113 = vmatpush3.xpose.msk.msra.mxu0 %vm578_vm1, %v6209_v18  ;;  %v6300_v51 = vpop.permute.xlu1 %6299 }
 0x984   : > { %9117 = vmatprep.subr.msk.mxu0 %vm578_vm1, %v6302_v36 }
 0x985   : > { %v6207_v1 = vpop.permute.xlu0 %6206 }
 0x986   : > { %9115 = vmatmul.mubr.msk.f32.vlgmr.msra.gmra.mxu0 %vm578_vm1, %v6207_v1 }
 0x987   : > { %9118 = vmatpush3.xpose.msk.msra.mxu0 %vm578_vm1, %v6302_v36  ;;  %v6296_v26 = vpop.permute.xlu1 %6295 }
 0x988   : > { %9119 = vmatprep.subr.msk.mxu0 %vm578_vm1, %v6300_v51  ;;  %9121 = vmatprep.mubr.msk.f32.mxu0 %vm578_vm1, %v6296_v26 }
 0x989   : > { %v6393_v4 = vpop.permute.xlu0 %6392 }
 0x98a   : > { %9124 = vmatprep.subr.msk.mxu1 %vm578_vm1, %v6393_v4 }
 0x98b   : > { %9120 = vmatpush3.xpose.msk.msra.mxu0 %vm578_vm1, %v6300_v51  ;;  %v6391_v9 = vpop.permute.xlu1 %6390 }
 0x98d   : > { %v6298_v13 = vpop.permute.xlu0 %6297 }
 0x98e   : > { %9122 = vmatmul.mubr.msk.f32.vlgmr.msra.gmra.mxu0 %vm578_vm1, %v6298_v13 }
 0x98f   : > { %v11528_v17 = vpop.permute.xlu1 %6386 }
 0x991   : > { %v6484_v21 = vpop.permute.xlu0 %6483 }
 0x992   : > { %9131 = vmatprep.subr.msk.mxu0 %vm578_vm1, %v6484_v21 }
 0x993   : > { %9132 = vmatpush3.xpose.msk.msra.mxu0 %vm578_vm1, %v6484_v21  ;;  %v6482_v25 = vpop.permute.xlu1 %6481 }
 0x994   : > { %9133 = vmatprep.subr.msk.mxu0 %vm578_vm1, %v6482_v25 }
 0x995   : > { %v11533_v45 = vpop.permute.xlu0 %6388 }
 0x997   : > { %9134 = vmatpush3.xpose.msk.msra.mxu0 %vm578_vm1, %v6482_v25  ;;  %v6478_v42 = vpop.permute.xlu1 %6477 }
 0x998   : > { %9135 = vmatprep.mubr.msk.f32.mxu0 %vm578_vm1, %v6478_v42 }
 0x999   : > { %v11537_v29 = vpop.permute.xlu0 %6574 }
 0x99b   : > { %v11539_v37 = vpop.permute.xlu1 %6572 }
 0x99d   : > { %v6480_v53 = vpop.permute.xlu0 %6479 }
 0x99e   : > { %9136 = vmatmul.mubr.msk.f32.vlgmr.msra.gmra.mxu0 %vm578_vm1, %v6480_v53 }
 0x99f   : > { %v11542_v33 = vpop.permute.xlu1 %6568 }
 0x9a1   : > { %v6666_v57 = vpop.permute.xlu0 %6665 }
 0x9a2   : > { %9145 = vmatprep.subr.msk.mxu0 %vm578_vm1, %v6666_v57 }
 0x9a3   : > { %9146 = vmatpush3.xpose.msk.msra.mxu0 %vm578_vm1, %v6666_v57  ;;  %v6664_v14 = vpop.permute.xlu1 %6663 }
 0x9a4   : > { %9147 = vmatprep.subr.msk.mxu0 %vm578_vm1, %v6664_v14 }
 0x9a5   : > { %v11547_v16 = vpop.permute.xlu0 %6570 }
 0x9a7   : > { %9148 = vmatpush3.xpose.msk.msra.mxu0 %vm578_vm1, %v6664_v14  ;;  %v6662_v43 = vpop.permute.xlu1 %6661 }
 0x9a9   : > { %v6660_v55 = vpop.permute.xlu0 %6659 }
 0x9aa   : > { %9149 = vmatprep.mubr.msk.f32.mxu0 %vm578_vm1, %v6660_v55 }
 0x9ab   : > { %9150 = vmatmul.mubr.msk.f32.vlgmr.msra.gmra.mxu0 %vm578_vm1, %v6662_v43 }
 0x9f4   : > { %v9018_v61 = vpop.f32.mrf.mxu1 }
 0x9f6   : > { %v5193_v52 = vpop.f32.mrf.mxu1 }
 0x9f7   : > { %9072 = vmatprep.mubr.msk.f32.mxu1 %vm578_vm1, %v5193_v52 }
 0x9f8   : > { %9073 = vmatmul.mubr.msk.f32.vlgmr.msra.gmra.mxu1 %vm578_vm1, %v9018_v61 }
 0x9f9   : > { %9125 = vmatpush3.xpose.msk.msra.mxu1 %vm578_vm1, %v6393_v4  ;;  %9075 = vmatprep.mubr.msk.f32.mxu1 %vm578_vm1, %v5280_v12 }
 0x9fa   : > { %9126 = vmatprep.subr.msk.mxu1 %vm578_vm1, %v6391_v9 }
 0x9fc   : > { %v9032_v27 = vpop.f32.mrf.mxu1  ;;  %9076 = vmatmul.mubr.msk.f32.gmra.mxu1 %vm578_vm1, %v9025_v11 }
 0x9fd   : > { %9127 = vmatpush3.xpose.msk.msra.mxu1 %vm578_vm1, %v6391_v9 }
 0x9fe   : > { %v5367_v50 = vpop.f32.mrf.mxu1  ;;  %9138 = vmatprep.subr.msk.mxu1 %vm578_vm1, %v11537_v29 }
 0x9ff   : > { %9078 = vmatprep.mubr.msk.f32.mxu1 %vm578_vm1, %v5367_v50 }
 0xa00   : > { %9079 = vmatmul.mubr.msk.f32.gmra.mxu1 %vm578_vm1, %v9032_v27 }
 0xa01   : > { %9081 = vmatprep.mubr.msk.f32.mxu1 %vm578_vm1, %v5454_v20 }
 0xa04   : > { %9082 = vmatmul.mubr.msk.f32.gmra.mxu1 %vm578_vm1, %v9039_v63 }
 0xa2e   : > { %v9067_v2 = vpop.f32.mrf.mxu0 }
 0xa30   : > { %v5802_v56 = vpop.f32.mrf.mxu0 }
 0xa31   : > { %v9046_v47 = vpop.f32.mrf.mxu1 }
 0xa33   : > { %v5541_v41 = vpop.f32.mrf.mxu1 }
 0xa34   : > { %9084 = vmatprep.mubr.msk.f32.mxu1 %vm578_vm1, %v5541_v41 }
 0xa35   : > { %9085 = vmatmul.mubr.msk.f32.gmra.mxu1 %vm578_vm1, %v9046_v47 }
 0xa36   : > { %v9060_v6 = vpop.f32.mrf.mxu1  ;;  %9087 = vmatprep.mubr.msk.f32.mxu1 %vm578_vm1, %v5628_v39  ;;  %v9102_v60 = vpop.f32.mrf.mxu0 }
 0xa37   : > { %v11568_v15 = vmul.f32 0.25, %v9102_v60 }
 0xa38   : > { %v5715_v31 = vpop.f32.mrf.mxu1  ;;  %v6104_v8 = vpop.f32.mrf.mxu0 }
 0xa39   : > { %v11570_v32 = vmul.f32 0.25, %v6104_v8  ;;  %9088 = vmatmul.mubr.msk.f32.gmra.mxu1 %vm578_vm1, %v9053_v24  ;;  %v6769_v18 = vsel %vm578_vm1, %v11568_v15, -inf  ;;  %v4106_v24 = vadd.f32 %v11096_v23, %v11205_v49  ;;  %v4126_v23 = vadd.f32 %v11114_v0, %v11219_v48  ;;  %v12161_v0 = vld [vmem:[#allocation12_spill] sm:$0xff] }
 0xa3a   : > { %9090 = vmatprep.mubr.msk.f32.mxu1 %vm578_vm1, %v5715_v31  ;;  %6770 = vmax.xlane.f32.xlu1 %v6769_v18  ;;  %v4111_v31 = vadd.f32 %v11112_v30, %v11217_v5 }
 0xa3b   : > { %v6766_v34 = vsel %vm578_vm1, %v11570_v32, -inf }
 0xa3c   : > { %6767 = vmax.xlane.f32.xlu0 %v6766_v34 }
 0xa3d   : > { %9091 = vmatmul.mubr.msk.f32.gmra.mxu1 %vm578_vm1, %v9060_v6 }
 0xa3e   : > { %9093 = vmatprep.mubr.msk.f32.mxu1 %vm578_vm1, %v5802_v56  ;;  %v9109_v36 = vpop.f32.mrf.mxu0  ;;  %v4116_v56 = vadd.f32 %v11102_v44, %v11212_v59  ;;  %v4136_v59 = vadd.f32 %v11126_v19, %v11225_v40 }
 0xa3f   : > { %v11580_v54 = vmul.f32 0.25, %v9109_v36 }
 0xa40   : > { %v6195_v51 = vpop.f32.mrf.mxu0 }
 0xa41   : > { %v11582_v1 = vmul.f32 0.25, %v6195_v51  ;;  %9094 = vmatmul.mubr.msk.f32.gmra.mxu1 %vm578_vm1, %v9067_v2  ;;  %v6775_v26 = vsel %vm578_vm1, %v11580_v54, -inf  ;;  %v4101_v2 = vadd.f32 %v11100_v38, %v11210_v46  ;;  %v4121_v46 = vadd.f32 %v11124_v3, %v11221_v62 }
 0xa42   : > { %6776 = vmax.xlane.f32.xlu0 %v6775_v26  ;;  %9128 = vmatprep.mubr.msk.f32.mxu1 %vm578_vm1, %v11528_v17  ;;  %v12160_v26 = vld [vmem:[#allocation14_spill] sm:$0xff] }
 0xa43   : > { %v6772_v4 = vsel %vm578_vm1, %v11582_v1, -inf  ;;  %v4131_v48 = vadd.f32 %v12161_v0, %v12160_v26 }
 0xa45   : > { %9129 = vmatmul.mubr.msk.f32.vlgmr.msra.gmra.mxu1 %vm578_vm1, %v11533_v45 }
 0xa46   : > { %9139 = vmatpush3.xpose.msk.msra.mxu1 %vm578_vm1, %v11537_v29  ;;  %6773 = vmax.xlane.f32.xlu0 %v6772_v4  ;;  %v9116_v9 = vpop.f32.mrf.mxu0 }
 0xa47   : > { %v11595_v13 = vmul.f32 0.25, %v9116_v9  ;;  %9140 = vmatprep.subr.msk.mxu1 %vm578_vm1, %v11539_v37  ;;  %9142 = vmatprep.mubr.msk.f32.mxu1 %vm578_vm1, %v11542_v33 }
 0xa48   : > { %v6286_v17 = vpop.f32.mrf.mxu0 }
 0xa49   : > { %v11601_v21 = vmul.f32 0.25, %v6286_v17  ;;  %v6781_v25 = vsel %vm578_vm1, %v11595_v13, -inf }
 0xa4a   : > { %9141 = vmatpush3.xpose.msk.msra.mxu1 %vm578_vm1, %v11539_v37  ;;  %6782 = vmax.xlane.f32.xlu0 %v6781_v25 }
 0xa4b   : > { %v6778_v45 = vsel %vm578_vm1, %v11601_v21, -inf }
 0xa4c   : > { %6779 = vmax.xlane.f32.xlu1 %v6778_v45 }
 0xa4d   : > { %9143 = vmatmul.mubr.msk.f32.vlgmr.msra.gmra.mxu1 %vm578_vm1, %v11547_v16 }
 0xa4e   : > { %v9123_v42 = vpop.f32.mrf.mxu0 }
 0xa4f   : > { %v11611_v29 = vmul.f32 0.25, %v9123_v42 }
 0xa50   : > { %v6377_v53 = vpop.f32.mrf.mxu0 }
 0xa51   : > { %v11613_v33 = vmul.f32 0.25, %v6377_v53  ;;  %v6787_v57 = vsel %vm578_vm1, %v11611_v29, -inf }
 0xa52   : > { %6788 = vmax.xlane.f32.xlu0 %v6787_v57 }
 0xa53   : > { %v6784_v37 = vsel %vm578_vm1, %v11613_v33, -inf }
 0xa54   : > { %6785 = vmax.xlane.f32.xlu1 %v6784_v37 }
 0xa5e   : > { %v9137_v14 = vpop.f32.mrf.mxu0 }
 0xa5f   : > { %v11619_v55 = vmul.f32 0.25, %v9137_v14 }
 0xa60   : > { %v6559_v43 = vpop.f32.mrf.mxu0 }
 0xa61   : > { %v11621_v11 = vmul.f32 0.25, %v6559_v43  ;;  %v6799_v16 = vsel %vm578_vm1, %v11619_v55, -inf }
 0xa62   : > { %6800 = vmax.xlane.f32.xlu0 %v6799_v16 }
 0xa63   : > { %v6796_v61 = vsel %vm578_vm1, %v11621_v11, -inf }
 0xa64   : > { %6797 = vmax.xlane.f32.xlu1 %v6796_v61 }
 0xa6b   : > { %v9151_v52 = vpop.f32.mrf.mxu0 }
 0xa6c   : > { %v11627_v12 = vmul.f32 0.25, %v9151_v52 }
 0xa6d   : > { %v6741_v63 = vpop.f32.mrf.mxu0 }
 0xa6e   : > { %v11629_v27 = vmul.f32 0.25, %v6741_v63  ;;  %v6811_v50 = vsel %vm578_vm1, %v11627_v12, -inf }
 0xa6f   : > { %6812 = vmax.xlane.f32.xlu0 %v6811_v50 }
 0xa70   : > { %v6808_v20 = vsel %vm578_vm1, %v11629_v27, -inf }
 0xa71   : > { %6809 = vmax.xlane.f32.xlu1 %v6808_v20 }
 0xab8   : > { %v9074_v39 = vpop.f32.mrf.mxu1 }
 0xab9   : > { %v11639_v47 = vadd.f32 %v9074_v39, %v4106_v24 }
 0xaba   : > { %v5927_v41 = vpop.f32.mrf.mxu1 }
 0xabb   : > { %v11643_v6 = vadd.f32 %v5927_v41, %v4101_v2 }
 0xabc   : > { %v9077_v60 = vpop.f32.mrf.mxu1 }
 0xabd   : > { %v11647_v8 = vadd.f32 %v9077_v60, %v4116_v56 }
 0xabe   : > { %v5937_v18 = vpop.f32.mrf.mxu1 }
 0xabf   : > { %v11651_v49 = vadd.f32 %v5937_v18, %v4111_v31 }
 0xac0   : > { %v9080_v38 = vpop.f32.mrf.mxu1 }
 0xac1   : > { %v11655_v34 = vadd.f32 %v9080_v38, %v4126_v23 }
 0xac2   : > { %v5947_v44 = vpop.f32.mrf.mxu1 }
 0xac3   : > { %v11659_v36 = vadd.f32 %v5947_v44, %v4121_v46  ;;  %v6771_v30 = vpop.xlane.xlu1 %6770 }
 0xac4   : > { %v6815_v5 = vsub.f32 %v11568_v15, %v6771_v30  ;;  %v9083_v51 = vpop.f32.mrf.mxu1 }
 0xac5   : > { %v11664_v4 = vadd.f32 %v9083_v51, %v4136_v59  ;;  %v6768_v9 = vpop.xlane.xlu0 %6767 }
 0xac6   : > { %v6832_v17 = vmul.f32 1.442695, %v6815_v5  ;;  %v6814_v3 = vsub.f32 %v11570_v32, %v6768_v9  ;;  %v5957_v62 = vpop.f32.mrf.mxu1 }
 0xac7   : > { %v11667_v25 = vadd.f32 %v5957_v62, %v4131_v48  ;;  %v12162_v48 = vld [vmem:[#allocation19_spill] sm:$0xff] }
 0xac8   : > { %9513 = vpow2.f32 %v6832_v17  ;;  %v6830_v19 = vmul.f32 1.442695, %v6814_v3 }
 0xaca   : > { %9515 = vpow2.f32 %v6830_v19 }
 0xacb   : > { %v6777_v40 = vpop.xlane.xlu0 %6776 }
 0xacc   : > { %v6817_v45 = vsub.f32 %v11580_v54, %v6777_v40  ;;  %v12163_v40 = vld [vmem:[#allocation17_spill] sm:$0xff] }
 0xace   : > { %v6836_v15 = vmul.f32 1.442695, %v6817_v45 }
 0xacf   : > { %v6774_v42 = vpop.xlane.xlu0 %6773 }
 0xad0   : > { %9517 = vpow2.f32 %v6836_v15  ;;  %v6816_v53 = vsub.f32 %v11582_v1, %v6774_v42 }
 0xad2   : > { %v6834_v57 = vmul.f32 1.442695, %v6816_v53  ;;  %v12164_v53 = vld [vmem:[#allocation22_spill] sm:$0xff] }
 0xad3   : > { %v6783_v37 = vpop.xlane.xlu0 %6782 }
 0xad4   : > { %9519 = vpow2.f32 %v6834_v57  ;;  %v6819_v14 = vsub.f32 %v11595_v13, %v6783_v37 }
 0xad5   : > { %v11672_v32 = vpop.eup %9513  ;;  %v6780_v43 = vpop.xlane.xlu1 %6779 }
 0xad6   : > { %v6840_v16 = vmul.f32 1.442695, %v6819_v14  ;;  %v6818_v61 = vsub.f32 %v11601_v21, %v6780_v43  ;;  %v6865_v52 = vsel %vm578_vm1, %v11672_v32, 0.0  ;;  %v12165_v43 = vld [vmem:[#allocation24_spill] sm:$0xff] }
 0xad7   : > { %v11677_v54 = vpop.eup %9515  ;;  %6866 = vadd.xlane.f32.xlu0 %v6865_v52  ;;  %v12166_v52 = vld [vmem:[#allocation37_spill] sm:$0xff] }
 0xad8   : > { %9521 = vpow2.f32 %v6840_v16  ;;  %v6838_v63 = vmul.f32 1.442695, %v6818_v61  ;;  %v6862_v1 = vsel %vm578_vm1, %v11677_v54, 0.0 }
 0xad9   : > { %6863 = vadd.xlane.f32.xlu1 %v6862_v1 }
 0xada   : > { %9523 = vpow2.f32 %v6838_v63 }
 0xadb   : > { %v6789_v13 = vpop.xlane.xlu0 %6788 }
 0xadc   : > { %v6821_v50 = vsub.f32 %v11611_v29, %v6789_v13  ;;  %v12167_v13 = vld [vmem:[#allocation34_spill] sm:$0xff] }
 0xadd   : > { %v11682_v20 = vpop.eup %9517  ;;  %v6786_v24 = vpop.xlane.xlu1 %6785 }
 0xade   : > { %v6844_v21 = vmul.f32 1.442695, %v6821_v50  ;;  %v6820_v39 = vsub.f32 %v11613_v33, %v6786_v24  ;;  %v6871_v2 = vsel %vm578_vm1, %v11682_v20, 0.0 }
 0xadf   : > { %6872 = vadd.xlane.f32.xlu0 %v6871_v2 }
 0xae0   : > { %9525 = vpow2.f32 %v6844_v21  ;;  %v6842_v41 = vmul.f32 1.442695, %v6820_v39 }
 0xae1   : > { %v11687_v56 = vpop.eup %9519 }
 0xae2   : > { %9527 = vpow2.f32 %v6842_v41  ;;  %v6868_v60 = vsel %vm578_vm1, %v11687_v56, 0.0 }
 0xae3   : > { %6869 = vadd.xlane.f32.xlu1 %v6868_v60 }
 0xae5   : > { %v11691_v29 = vpop.eup %9521 }
 0xae6   : > { %v6877_v31 = vsel %vm578_vm1, %v11691_v29, 0.0 }
 0xae7   : > { %v11695_v18 = vpop.eup %9523  ;;  %6878 = vadd.xlane.f32.xlu0 %v6877_v31  ;;  %v12168_v31 = vld [vmem:[#allocation15_spill] sm:$0xff] }
 0xae8   : > { %v6874_v33 = vsel %vm578_vm1, %v11695_v18, 0.0 }
 0xae9   : > { %6875 = vadd.xlane.f32.xlu1 %v6874_v33  ;;  %v12169_v33 = vld [vmem:[#allocation13_spill] sm:$0xff] }
 0xaeb   : > { %v6801_v23 = vpop.xlane.xlu0 %6800 }
 0xaec   : > { %v6825_v38 = vsub.f32 %v11619_v55, %v6801_v23 }
 0xaed   : > { %v11700_v46 = vpop.eup %9525  ;;  %v6798_v44 = vpop.xlane.xlu1 %6797 }
 0xaee   : > { %v6852_v59 = vmul.f32 1.442695, %v6825_v38  ;;  %v6824_v30 = vsub.f32 %v11621_v11, %v6798_v44  ;;  %v6883_v5 = vsel %vm578_vm1, %v11700_v46, 0.0 }
 0xaef   : > { %v11705_v51 = vpop.eup %9527  ;;  %6884 = vadd.xlane.f32.xlu0 %v6883_v5 }
 0xaf0   : > { %9529 = vpow2.f32 %v6852_v59  ;;  %v6850_v26 = vmul.f32 1.442695, %v6824_v30  ;;  %v6880_v0 = vsel %vm578_vm1, %v11705_v51, 0.0 }
 0xaf1   : > { %6881 = vadd.xlane.f32.xlu1 %v6880_v0 }
 0xaf2   : > { %9531 = vpow2.f32 %v6850_v26 }
 0xaf5   : > { %v9086_v55 = vpop.f32.mrf.mxu1 }
 0xaf6   : > { %v11710_v9 = vadd.f32 %v9086_v55, %v12162_v48 }
 0xaf7   : > { %v5967_v17 = vpop.f32.mrf.mxu1 }
 0xaf8   : > { %v11713_v11 = vadd.f32 %v5967_v17, %v11255_v58  ;;  %v6813_v23 = vpop.xlane.xlu0 %6812 }
 0xaf9   : > { %v9089_v3 = vpop.f32.mrf.mxu1  ;;  %v6829_v44 = vsub.f32 %v11627_v12, %v6813_v23 }
 0xafa   : > { %v11716_v62 = vadd.f32 %v9089_v3, %v11257_v22  ;;  %v6810_v38 = vpop.xlane.xlu1 %6809 }
 0xafb   : > { %v5977_v19 = vpop.f32.mrf.mxu1  ;;  %v6828_v59 = vsub.f32 %v11629_v27, %v6810_v38  ;;  %v6860_v30 = vmul.f32 1.442695, %v6829_v44 }
 0xafc   : > { %v11719_v45 = vadd.f32 %v5977_v19, %v12163_v40 }
 0xafd   : > { %v11721_v15 = vpop.eup %9529  ;;  %v9092_v42 = vpop.f32.mrf.mxu1  ;;  %v6858_v5 = vmul.f32 1.442695, %v6828_v59  ;;  %9533 = vpow2.f32 %v6860_v30 }
 0xafe   : > { %v11724_v57 = vadd.f32 %v9092_v42, %v12164_v53  ;;  %v6895_v37 = vsel %vm578_vm1, %v11721_v15, 0.0  ;;  %v12170_v42 = vld [vmem:[#allocation18_spill] sm:$0xff]  ;;  %v12171_v53 = vld [vmem:[#allocation16_spill] sm:$0xff] }
 0xaff   : > { %v11728_v14 = vpop.eup %9531  ;;  %v5987_v58 = vpop.f32.mrf.mxu1  ;;  %6896 = vadd.xlane.f32.xlu0 %v6895_v37  ;;  %9535 = vpow2.f32 %v6858_v5  ;;  %v12172_v37 = vld [vmem:[#allocation23_spill] sm:$0xff] }
 0xb00   : > { %v11731_v22 = vadd.f32 %v5987_v58, %v12165_v43  ;;  %v6892_v16 = vsel %vm578_vm1, %v11728_v14, 0.0  ;;  %v12173_v58 = vld [vmem:[#allocation25_spill] sm:$0xff]  ;;  %v12174_v43 = vld [vmem:[#allocation20_spill] sm:$0xff] }
 0xb01   : > { %v9095_v61 = vpop.f32.mrf.mxu1  ;;  %6893 = vadd.xlane.f32.xlu1 %v6892_v16  ;;  %v12175_v16 = vld [vmem:[#allocation28_spill] sm:$0xff] }
 0xb02   : > { %v11736_v63 = vadd.f32 %v9095_v61, %v12166_v52  ;;  %v12176_v52 = vld [vmem:[#allocation26_spill] sm:$0xff] }
 0xb03   : > { %v5997_v1 = vpop.f32.mrf.mxu1 }
 0xb04   : > { %v11739_v50 = vadd.f32 %v5997_v1, %v12167_v13  ;;  %v12177_v13 = vld [vmem:[#allocation30_spill] sm:$0xff] }
 0xb05   : > { %v9130_v24 = vpop.f32.mrf.mxu1 }
 0xb06   : > { %v11741_v21 = vmul.f32 0.25, %v9130_v24  ;;  %v12178_v24 = vld [vmem:[#allocation27_spill] sm:$0xff] }
 0xb07   : > { %v6468_v39 = vpop.f32.mrf.mxu1 }
 0xb08   : > { %v11743_v2 = vmul.f32 0.25, %v6468_v39  ;;  %v6793_v41 = vsel %vm578_vm1, %v11741_v21, -inf }
 0xb09   : > { %6794 = vmax.xlane.f32.xlu0 %v6793_v41  ;;  %v12179_v41 = vld [vmem:[#allocation29_spill] sm:$0xff] }
 0xb0a   : > { %v6790_v60 = vsel %vm578_vm1, %v11743_v2, -inf  ;;  %v11761_v3 = vpop.eup %9533 }
 0xb0b   : > { %6791 = vmax.xlane.f32.xlu1 %v6790_v60  ;;  %v6907_v19 = vsel %vm578_vm1, %v11761_v3, 0.0 }
 0xb0c   : > { %v11765_v27 = vpop.eup %9535 }
 0xb0d   : > { %v9144_v26 = vpop.f32.mrf.mxu1  ;;  %v6904_v40 = vsel %vm578_vm1, %v11765_v27, 0.0 }
 0xb0e   : > { %v11755_v55 = vmul.f32 0.25, %v9144_v26 }
 0xb0f   : > { %v6650_v0 = vpop.f32.mrf.mxu1 }
 0xb10   : > { %v11757_v48 = vmul.f32 0.25, %v6650_v0  ;;  %v6805_v17 = vsel %vm578_vm1, %v11755_v55, -inf }
 0xb12   : > { %v6802_v12 = vsel %vm578_vm1, %v11757_v48, -inf }
 0xb1c   : > { %6960 = vrot.lane.b32.xlu1 %v12168_v31, %s9741_s27 }
 0xb1f   : > { %6958 = vrot.lane.b32.xlu0 %v12169_v33, %s9741_s27 }
 0xb3e   : > { %6806 = vmax.xlane.f32.xlu0 %v6805_v17 }
 0xb40   : > { %6803 = vmax.xlane.f32.xlu1 %v6802_v12 }
 0xb42   : > { %6908 = vadd.xlane.f32.xlu0 %v6907_v19 }
 0xb44   : > { %6905 = vadd.xlane.f32.xlu1 %v6904_v40 }
 0xb55   : > { %7047 = vrot.lane.b32.xlu1 %v12170_v42, %s9741_s27 }
 0xb58   : > { %7045 = vrot.lane.b32.xlu0 %v12171_v53, %s9741_s27 }
 0xb59   : > { %7134 = vrot.lane.b32.xlu1 %v12172_v37, %s9741_s27 }
 0xb5c   : > { %7221 = vrot.lane.b32.xlu0 %v12173_v58, %s9741_s27 }
 0xb5d   : > { %7132 = vrot.lane.b32.xlu1 %v12174_v43, %s9741_s27 }
 0xb60   : > { %7308 = vrot.lane.b32.xlu0 %v12175_v16, %s9741_s27  ;;  %v6867_v61 = vpop.xlane.xlu0 %6866 }
 0xb61   : > { %9537 = vrcp.f32 %v6867_v61  ;;  %7219 = vrot.lane.b32.xlu1 %v12176_v52, %s9741_s27 }
 0xb62   : > { %v6864_v1 = vpop.xlane.xlu1 %6863 }
 0xb63   : > { %9539 = vrcp.f32 %v6864_v1 }
 0xb64   : > { %7395 = vrot.lane.b32.xlu0 %v12177_v13, %s9741_s27 }
 0xb65   : > { %7306 = vrot.lane.b32.xlu1 %v12178_v24, %s9741_s27 }
 0xb68   : > { %v6873_v39 = vpop.xlane.xlu0 %6872 }
 0xb69   : > { %9541 = vrcp.f32 %v6873_v39  ;;  %7393 = vrot.lane.b32.xlu1 %v12179_v41, %s9741_s27 }
 0xb6c   : > { %v6870_v60 = vpop.xlane.xlu1 %6869 }
 0xb6d   : > { %9543 = vrcp.f32 %v6870_v60  ;;  %7480 = vrot.lane.b32.xlu1 %v12157_v10, %s9741_s27 }
 0xb6e   : > { %v9538_v31 = vpop.eup %9537 }
 0xb6f   : > { %v6927_v33 = vmul.f32 %v9538_v31, %v11672_v32 }
 0xb70   : > { %v9540_v23 = vpop.eup %9539  ;;  %v6879_v38 = vpop.xlane.xlu0 %6878 }
 0xb71   : > { %9545 = vrcp.f32 %v6879_v38  ;;  %v6926_v44 = vmul.f32 %v9540_v23, %v11677_v54  ;;  %6943 = vst.msk [vmem:[%s10437_s7 + $0x38] sm:$0xff] %vm578_vm1, %v6927_v33 }
 0xb72   : > { %v6876_v59 = vpop.xlane.xlu1 %6875 }
 0xb73   : > { %9547 = vrcp.f32 %v6876_v59  ;;  %6942 = vst.msk [vmem:[%s10437_s7 + $0x30] sm:$0xff] %vm578_vm1, %v6926_v44  ;;  %9156 = vmatprep.mubr.msk.f32.mxu1 %vm578_vm1, %v6926_v44 }
 0xb76   : > { %v9542_v10 = vpop.eup %9541 }
 0xb77   : > { %v11801_v30 = vmul.f32 %v9542_v10, %v11682_v20 }
 0xb78   : > { %v6885_v32 = vpop.xlane.xlu0 %6884 }
 0xb79   : > { %9549 = vrcp.f32 %v6885_v32  ;;  %6945 = vst.msk [vmem:[%s10437_s7 + $0x78] sm:$0xff] %vm578_vm1, %v11801_v30 }
 0xb7a   : > { %v9544_v54 = vpop.eup %9543  ;;  %v6882_v5 = vpop.xlane.xlu1 %6881 }
 0xb7b   : > { %9551 = vrcp.f32 %v6882_v5  ;;  %v6928_v26 = vmul.f32 %v9544_v54, %v11687_v56 }
 0xb7d   : > { %6944 = vst.msk [vmem:[%s10437_s7 + $0x70] sm:$0xff] %vm578_vm1, %v6928_v26 }
 0xb7e   : > { %v9546_v0 = vpop.eup %9545 }
 0xb7f   : > { %v11810_v17 = vmul.f32 %v9546_v0, %v11691_v29 }
 0xb80   : > { %v9548_v20 = vpop.eup %9547 }
 0xb81   : > { %v6930_v12 = vmul.f32 %v9548_v20, %v11695_v18  ;;  %6947 = vst.msk [vmem:[%s10437_s7 + $0xb8] sm:$0xff] %vm578_vm1, %v11810_v17 }
 0xb83   : > { %6946 = vst.msk [vmem:[%s10437_s7 + $0xb0] sm:$0xff] %vm578_vm1, %v6930_v12  ;;  %9170 = vmatprep.mubr.msk.f32.mxu0 %vm578_vm1, %v6930_v12 }
 0xb86   : > { %v9550_v19 = vpop.eup %9549 }
 0xb87   : > { %v11820_v56 = vmul.f32 %v9550_v19, %v11700_v46 }
 0xb88   : > { %v9552_v40 = vpop.eup %9551  ;;  %v6897_v42 = vpop.xlane.xlu0 %6896 }
 0xb89   : > { %9553 = vrcp.f32 %v6897_v42  ;;  %v6932_v29 = vmul.f32 %v9552_v40, %v11705_v51  ;;  %6949 = vst.msk [vmem:[%s10437_s7 + $0xf8] sm:$0xff] %vm578_vm1, %v11820_v56 }
 0xb8a   : > { %v6894_v18 = vpop.xlane.xlu1 %6893 }
 0xb8b   : > { %9555 = vrcp.f32 %v6894_v18  ;;  %6948 = vst.msk [vmem:[%s10437_s7 + $0xf0] sm:$0xff] %vm578_vm1, %v6932_v29 }
 0xb92   : > { %v6795_v53 = vpop.xlane.xlu0 %6794 }
 0xb93   : > { %v6823_v37 = vsub.f32 %v11741_v21, %v6795_v53 }
 0xb94   : > { %v6792_v58 = vpop.xlane.xlu1 %6791 }
 0xb95   : > { %v6848_v46 = vmul.f32 1.442695, %v6823_v37  ;;  %v6822_v43 = vsub.f32 %v11743_v2, %v6792_v58 }
 0xb96   : > { %v9554_v16 = vpop.eup %9553  ;;  %v6959_v21 = vpop.permute.xlu0 %6958 }
 0xb97   : > { %9557 = vpow2.f32 %v6848_v46  ;;  %v6846_v61 = vmul.f32 1.442695, %v6822_v43  ;;  %v11831_v51 = vmul.f32 %v9554_v16, %v11721_v15 }
 0xb98   : > { %v9556_v52 = vpop.eup %9555  ;;  %v6961_v1 = vpop.permute.xlu1 %6960 }
 0xb99   : > { %9559 = vpow2.f32 %v6846_v61  ;;  %9152 = vmatprep.subr.mxu1 %v6961_v1  ;;  %v11834_v13 = vmul.f32 %v9556_v52, %v11728_v14  ;;  %6953 = vst.msk [vmem:[%s10437_s7 + $0x178] sm:$0xff] %vm578_vm1, %v11831_v51 }
 0xb9a   : > { %9153 = vmatpush3.msra.mxu1 %v6961_v1 }
 0xb9b   : > { %9154 = vmatprep.subr.mxu1 %v6959_v21  ;;  %6952 = vst.msk [vmem:[%s10437_s7 + $0x170] sm:$0xff] %vm578_vm1, %v11834_v13 }
 0xb9c   : > { %9155 = vmatpush3.msra.mxu1 %v6959_v21 }
 0xb9d   : > { %9157 = vmatmul.mubr.msk.f32.vlgmr.msra.gmra.mxu1 %vm578_vm1, %v6927_v33 }
 0xb9e   : > { %9163 = vmatprep.mubr.msk.f32.mxu1 %vm578_vm1, %v6928_v26 }
 0xba4   : > { %v11844_v15 = vpop.eup %9557 }
 0xba5   : > { %v6889_v14 = vsel %vm578_vm1, %v11844_v15, 0.0 }
 0xba6   : > { %v11848_v2 = vpop.eup %9559  ;;  %6890 = vadd.xlane.f32.xlu0 %v6889_v14 }
 0xba7   : > { %v6886_v24 = vsel %vm578_vm1, %v11848_v2, 0.0 }
 0xba8   : > { %6887 = vadd.xlane.f32.xlu1 %v6886_v24 }
 0xbbc   : > { %7482 = vrot.lane.b32.xlu0 %v12158_v28, %s9741_s27 }
 0xbc7   : > { %v6807_v39 = vpop.xlane.xlu0 %6806 }
 0xbc8   : > { %v6827_v41 = vsub.f32 %v11755_v55, %v6807_v39 }
 0xbc9   : > { %v6804_v60 = vpop.xlane.xlu1 %6803 }
 0xbca   : > { %v6856_v31 = vmul.f32 1.442695, %v6827_v41  ;;  %v6826_v33 = vsub.f32 %v11757_v48, %v6804_v60 }
 0xbcb   : > { %v6909_v23 = vpop.xlane.xlu0 %6908 }
 0xbcc   : > { %9561 = vpow2.f32 %v6856_v31  ;;  %v6854_v38 = vmul.f32 1.442695, %v6826_v33 }
 0xbcd   : > { %9563 = vrcp.f32 %v6909_v23  ;;  %v6906_v44 = vpop.xlane.xlu1 %6905 }
 0xbce   : > { %9565 = vpow2.f32 %v6854_v38 }
 0xbcf   : > { %9567 = vrcp.f32 %v6906_v44  ;;  %v7046_v59 = vpop.permute.xlu0 %7045 }
 0xbd1   : > { %v7048_v10 = vpop.permute.xlu1 %7047 }
 0xbd2   : > { %9159 = vmatprep.subr.mxu1 %v7048_v10 }
 0xbd3   : > { %v7222_v32 = vpop.permute.xlu0 %7221  ;;  %9160 = vmatpush3.msra.mxu1 %v7048_v10 }
 0xbd4   : > { %9161 = vmatprep.subr.mxu1 %v7046_v59 }
 0xbd5   : > { %9162 = vmatpush3.msra.mxu1 %v7046_v59  ;;  %v7135_v28 = vpop.permute.xlu1 %7134 }
 0xbd6   : > { %9164 = vmatmul.mubr.msk.f32.vlgmr.msra.gmra.mxu1 %vm578_vm1, %v11801_v30  ;;  %9166 = vmatprep.subr.mxu0 %v7135_v28 }
 0xbd7   : > { %9173 = vmatprep.subr.mxu1 %v7222_v32  ;;  %9167 = vmatpush3.msra.mxu0 %v7135_v28  ;;  %v7309_v48 = vpop.permute.xlu0 %7308 }
 0xbd8   : > { %9174 = vmatpush3.msra.mxu1 %v7222_v32  ;;  %9177 = vmatprep.mubr.msk.f32.mxu1 %vm578_vm1, %v6932_v29 }
 0xbd9   : > { %v11859_v55 = vpop.eup %9561  ;;  %v7133_v54 = vpop.permute.xlu1 %7132 }
 0xbda   : > { %v9564_v5 = vpop.eup %9563  ;;  %9168 = vmatprep.subr.mxu0 %v7133_v54  ;;  %v6901_v26 = vsel %vm578_vm1, %v11859_v55, 0.0 }
 0xbdb   : > { %v11863_v0 = vpop.eup %9565  ;;  %6902 = vadd.xlane.f32.xlu0 %v6901_v26  ;;  %9169 = vmatpush3.msra.mxu0 %v7133_v54  ;;  %v6941_v30 = vmul.f32 %v9564_v5, %v11761_v3  ;;  %v7396_v42 = vpop.permute.xlu0 %7395 }
 0xbdc   : > { %v9568_v20 = vpop.eup %9567  ;;  %9171 = vmatmul.mubr.msk.f32.vlgmr.msra.gmra.mxu0 %vm578_vm1, %v11810_v17  ;;  %9180 = vmatprep.subr.mxu0 %v7309_v48  ;;  %v6898_v12 = vsel %vm578_vm1, %v11863_v0, 0.0 }
 0xbdd   : > { %6899 = vadd.xlane.f32.xlu1 %v6898_v12  ;;  %9181 = vmatpush3.msra.mxu0 %v7309_v48  ;;  %v7220_v19 = vpop.permute.xlu1 %7219  ;;  %v6940_v40 = vmul.f32 %v9568_v20, %v11765_v27  ;;  %6957 = vst.msk [vmem:[%s10437_s7 + $0x1f8] sm:$0xff] %vm578_vm1, %v6941_v30  ;;  %v11919_v48 = vld [vmem:[%s12046_s4] ss:$0 sm:$0xff] }
 0xbde   : > { %9175 = vmatprep.subr.mxu1 %v7220_v19 }
 0xbdf   : > { %9176 = vmatpush3.msra.mxu1 %v7220_v19  ;;  %6956 = vst.msk [vmem:[%s10437_s7 + $0x1f0] sm:$0xff] %vm578_vm1, %v6940_v40 }
 0xbe0   : > { %9178 = vmatmul.mubr.msk.f32.vlgmr.msra.gmra.mxu1 %vm578_vm1, %v11820_v56  ;;  %9187 = vmatprep.subr.mxu1 %v7396_v42 }
 0xbe1   : > { %9188 = vmatpush3.msra.mxu1 %v7396_v42  ;;  %9191 = vmatprep.mubr.msk.f32.mxu1 %vm578_vm1, %v11834_v13  ;;  %v7307_v3 = vpop.permute.xlu1 %7306 }
 0xbe2   : > { %9182 = vmatprep.subr.mxu0 %v7307_v3 }
 0xbe3   : > { %9183 = vmatpush3.msra.mxu0 %v7307_v3 }
 0xbe5   : > { %v7394_v17 = vpop.permute.xlu1 %7393 }
 0xbe6   : > { %9189 = vmatprep.subr.mxu1 %v7394_v17 }
 0xbe7   : > { %9190 = vmatpush3.msra.mxu1 %v7394_v17 }
 0xbe8   : > { %9192 = vmatmul.mubr.msk.f32.vlgmr.msra.gmra.mxu1 %vm578_vm1, %v11831_v51 }
 0xbe9   : > { %9205 = vmatprep.mubr.msk.f32.mxu1 %vm578_vm1, %v6940_v40  ;;  %v7481_v27 = vpop.permute.xlu1 %7480 }
 0xbee   : > { %7567 = vrot.lane.b32.xlu1 %v10107_v35, %s9741_s27  ;;  %v7655_v35 = vld [vmem:[#allocation7 + $0x38] sm:$0xff] }
 0xbf1   : > { %7569 = vrot.lane.b32.xlu0 %v10492_v7, %s9741_s27 }
 0xc2f   : > { %v6891_v56 = vpop.xlane.xlu0 %6890 }
 0xc30   : > { %9569 = vrcp.f32 %v6891_v56 }
 0xc31   : > { %v6888_v29 = vpop.xlane.xlu1 %6887 }
 0xc32   : > { %9571 = vrcp.f32 %v6888_v29 }
 0xc33   : > { %v7483_v18 = vpop.permute.xlu0 %7482 }
 0xc34   : > { %9194 = vmatprep.subr.mxu0 %v7483_v18 }
 0xc3d   : > { %v9570_v53 = vpop.eup %9569 }
 0xc3e   : > { %v6935_v37 = vmul.f32 %v9570_v53, %v11844_v15  ;;  %v7654_v15 = vld [vmem:[#allocation7 + $0x30] sm:$0xff] }
 0xc3f   : > { %v9572_v58 = vpop.eup %9571 }
 0xc40   : > { %v6934_v46 = vmul.f32 %v9572_v58, %v11848_v2  ;;  %6951 = vst.msk [vmem:[%s10437_s7 + $0x138] sm:$0xff] %vm578_vm1, %v6935_v37 }
 0xc42   : > { %6950 = vst.msk [vmem:[%s10437_s7 + $0x130] sm:$0xff] %vm578_vm1, %v6934_v46  ;;  %9184 = vmatprep.mubr.msk.f32.mxu0 %vm578_vm1, %v6934_v46 }
 0xc43   : > { %9185 = vmatmul.mubr.msk.f32.vlgmr.msra.gmra.mxu0 %vm578_vm1, %v6935_v37 }
 0xc44   : > { %9195 = vmatpush3.msra.mxu0 %v7483_v18 }
 0xc45   : > { %9196 = vmatprep.subr.mxu0 %v7481_v27 }
 0xc46   : > { %9197 = vmatpush3.msra.mxu0 %v7481_v27 }
 0xc47   : > { %9208 = vmatprep.subr.mxu0 %v7655_v35 }
 0xc5d   : > { %v9158_v13 = vpop.f32.mrf.mxu1 }
 0xc5f   : > { %v7036_v14 = vpop.f32.mrf.mxu1 }
 0xc64   : > { %v6903_v7 = vpop.xlane.xlu0 %6902 }
 0xc65   : > { %9573 = vrcp.f32 %v6903_v7 }
 0xc66   : > { %v6900_v43 = vpop.xlane.xlu1 %6899 }
 0xc67   : > { %9575 = vrcp.f32 %v6900_v43 }
 0xc68   : > { %v7570_v16 = vpop.permute.xlu0 %7569 }
 0xc69   : > { %9201 = vmatprep.subr.mxu1 %v7570_v16 }
 0xc6a   : > { %9202 = vmatpush3.msra.mxu1 %v7570_v16  ;;  %v7568_v61 = vpop.permute.xlu1 %7567 }
 0xc6b   : > { %9203 = vmatprep.subr.mxu1 %v7568_v61 }
 0xc6c   : > { %9204 = vmatpush3.msra.mxu1 %v7568_v61 }
 0xc6d   : > { %9206 = vmatmul.mubr.msk.f32.vlgmr.msra.gmra.mxu1 %vm578_vm1, %v6941_v30 }
 0xc72   : > { %v9574_v51 = vpop.eup %9573 }
 0xc73   : > { %v6939_v52 = vmul.f32 %v9574_v51, %v11859_v55 }
 0xc74   : > { %v9576_v1 = vpop.eup %9575 }
 0xc75   : > { %v6938_v21 = vmul.f32 %v9576_v1, %v11863_v0  ;;  %6955 = vst.msk [vmem:[%s10437_s7 + $0x1b8] sm:$0xff] %vm578_vm1, %v6939_v52 }
 0xc77   : > { %6954 = vst.msk [vmem:[%s10437_s7 + $0x1b0] sm:$0xff] %vm578_vm1, %v6938_v21  ;;  %9198 = vmatprep.mubr.msk.f32.mxu0 %vm578_vm1, %v6938_v21  ;;  %s9742_s7 = smov [#allocation8]  }
 0xc78   : > { %9199 = vmatmul.mubr.msk.f32.vlgmr.msra.gmra.mxu0 %vm578_vm1, %v6939_v52  ;;  %s9661_s13 = sshll.u32 %s9742_s7, 4  ;;  %s9662_s13 = int_to_ptr.vmem [resolvable:$false] %s9661_s13 }
 0xc79   : > { %9209 = vmatpush3.msra.mxu0 %v7655_v35  ;;  %9212 = vmatprep.mubr.msk.f32.mxu0 %vm578_vm1, %v7036_v14  ;;  %s9663_s12 = scalar_lea.vmem %s9662_s13, 4096  ;;  %p9664_p12 = scmp.lt.s32.totalorder %s11994_s30, %s9662_s13 }
 0xc7a   : > { %9210 = vmatprep.subr.mxu0 %v7654_v15  ;;  %p9665_p3 = scmp.lt.s32.totalorder %s9663_s12, %s9657_s10 }
 0xc7b   : > { %9211 = vmatpush3.msra.mxu0 %v7654_v15 }
 0xc7c   : > { %9213 = vmatmul.mubr.msk.f32.vlgmr.msra.gmra.mxu0 %vm578_vm1, %v9158_v13  ;;  %p9666_p9 = por %p9665_p3, %p9664_p12 }
 0xc7e   : > { %p9667_p13 = pnand %p9666_p9, %p9660_p6 }
 0xc96   : > { %v9165_v2 = vpop.f32.mrf.mxu1 }
 0xc98   : > { %v7123_v24 = vpop.f32.mrf.mxu1 }
 0xc99   : > { %9215 = vmatprep.mubr.msk.f32.mxu0 %vm578_vm1, %v7123_v24 }
 0xc9a   : > { %9216 = vmatmul.mubr.msk.f32.gmra.mxu0 %vm578_vm1, %v9165_v2 }
 0xc9c   : > { %v9172_v39 = vpop.f32.mrf.mxu0 }
 0xc9e   : > { %v7210_v41 = vpop.f32.mrf.mxu0 }
 0xc9f   : > { %9218 = vmatprep.mubr.msk.f32.mxu0 %vm578_vm1, %v7210_v41 }
 0xca0   : > { %v9179_v60 = vpop.f32.mrf.mxu1  ;;  %9219 = vmatmul.mubr.msk.f32.gmra.mxu0 %vm578_vm1, %v9172_v39 }
 0xca2   : > { %v7297_v31 = vpop.f32.mrf.mxu1 }
 0xca3   : > { %9221 = vmatprep.mubr.msk.f32.mxu0 %vm578_vm1, %v7297_v31 }
 0xca4   : > { %9222 = vmatmul.mubr.msk.f32.gmra.mxu0 %vm578_vm1, %v9179_v60 }
 0xca8   : > { %v9193_v33 = vpop.f32.mrf.mxu1 }
 0xcaa   : > { %v7471_v44 = vpop.f32.mrf.mxu1 }
 0xd03   : > { %v9186_v23 = vpop.f32.mrf.mxu0 }
 0xd05   : > { %v7384_v38 = vpop.f32.mrf.mxu0 }
 0xd06   : > { %9224 = vmatprep.mubr.msk.f32.mxu0 %vm578_vm1, %v7384_v38 }
 0xd07   : > { %9225 = vmatmul.mubr.msk.f32.gmra.mxu0 %vm578_vm1, %v9186_v23 }
 0xd08   : > { %9227 = vmatprep.mubr.msk.f32.mxu0 %vm578_vm1, %v7471_v44 }
 0xd0b   : > { %9228 = vmatmul.mubr.msk.f32.gmra.mxu0 %vm578_vm1, %v9193_v33 }
 0xd2d   : > { %v9207_v59 = vpop.f32.mrf.mxu1 }
 0xd2f   : > { %v7645_v28 = vpop.f32.mrf.mxu1 }
 0xd38   : > { %v9200_v10 = vpop.f32.mrf.mxu0 }
 0xd3a   : > { %v7558_v32 = vpop.f32.mrf.mxu0 }
 0xd3b   : > { %9230 = vmatprep.mubr.msk.f32.mxu0 %vm578_vm1, %v7558_v32 }
 0xd3c   : > { %v9214_v55 = vpop.f32.mrf.mxu0  ;;  %9231 = vmatmul.mubr.msk.f32.gmra.mxu0 %vm578_vm1, %v9200_v10 }
 0xd3d   : > { %v7850_v54 = vadd.f32 %v9214_v55, %v11639_v47  ;;  %9233 = vmatprep.mubr.msk.f32.mxu0 %vm578_vm1, %v7645_v28 }
 0xd3e   : > { %v7770_v5 = vpop.f32.mrf.mxu0 }
 0xd3f   : > { %v7873_v26 = vadd.f32 %v11919_v48, %v7850_v54  ;;  %v7849_v0 = vadd.f32 %v7770_v5, %v11643_v6 }
 0xd40   : > { %9234 = vmatmul.mubr.msk.f32.gmra.mxu0 %vm578_vm1, %v9207_v59 }
 0xd41   : > { %7889 = vst.msk [vmem:[%s11929_s19 + $0x8] sm:$0xff] %vm362_vm0, %v7873_v26  ;;  %v7872_v47 = vadd.f32 %v11919_v48, %v7849_v0 }
 0xd43   : > { %7888 = vst.msk [vmem:[%s11929_s19] sm:$0xff] %vm362_vm0, %v7872_v47 }
 0xd5a   : > { %v9217_v30 = vpop.f32.mrf.mxu0 }
 0xd5b   : > { %v7852_v20 = vadd.f32 %v9217_v30, %v11647_v8 }
 0xd5c   : > { %v7780_v6 = vpop.f32.mrf.mxu0 }
 0xd5d   : > { %v7875_v12 = vadd.f32 %v11919_v48, %v7852_v20  ;;  %v7851_v19 = vadd.f32 %v7780_v6, %v11651_v49 }
 0xd5f   : > { %7891 = vst.msk [vmem:[%s11929_s19 + $0x18] sm:$0xff] %vm362_vm0, %v7875_v12  ;;  %v7874_v40 = vadd.f32 %v11919_v48, %v7851_v19 }
 0xd60   : > { %v9220_v42 = vpop.f32.mrf.mxu0 }
 0xd61   : > { %7890 = vst.msk [vmem:[%s11929_s19 + $0x10] sm:$0xff] %vm362_vm0, %v7874_v40  ;;  %v7854_v3 = vadd.f32 %v9220_v42, %v11655_v34 }
 0xd62   : > { %v7790_v17 = vpop.f32.mrf.mxu0 }
 0xd63   : > { %v7877_v8 = vadd.f32 %v11919_v48, %v7854_v3  ;;  %v7853_v27 = vadd.f32 %v7790_v17, %v11659_v36 }
 0xd64   : > { %v9223_v56 = vpop.f32.mrf.mxu0 }
 0xd65   : > { %7893 = vst.msk [vmem:[%s11929_s19 + $0x28] sm:$0xff] %vm362_vm0, %v7877_v8  ;;  %v7876_v49 = vadd.f32 %v11919_v48, %v7853_v27  ;;  %v7856_v29 = vadd.f32 %v9223_v56, %v11664_v4 }
 0xd66   : > { %v7800_v18 = vpop.f32.mrf.mxu0 }
 0xd67   : > { %7892 = vst.msk [vmem:[%s11929_s19 + $0x20] sm:$0xff] %vm362_vm0, %v7876_v49  ;;  %v7879_v53 = vadd.f32 %v11919_v48, %v7856_v29  ;;  %v7855_v34 = vadd.f32 %v7800_v18, %v11667_v25 }
 0xd69   : > { %7895 = vst.msk [vmem:[%s11929_s19 + $0x38] sm:$0xff] %vm362_vm0, %v7879_v53  ;;  %v7878_v36 = vadd.f32 %v11919_v48, %v7855_v34 }
 0xd6b   : > { %7894 = vst.msk [vmem:[%s11929_s19 + $0x30] sm:$0xff] %vm362_vm0, %v7878_v36 }
 0xdc7   : > { %v9226_v37 = vpop.f32.mrf.mxu0 }
 0xdc8   : > { %v7858_v58 = vadd.f32 %v9226_v37, %v11710_v9 }
 0xdc9   : > { %v7810_v4 = vpop.f32.mrf.mxu0 }
 0xdca   : > { %v7881_v46 = vadd.f32 %v11919_v48, %v7858_v58  ;;  %v7857_v35 = vadd.f32 %v7810_v4, %v11713_v11 }
 0xdcb   : > { %v9229_v7 = vpop.f32.mrf.mxu0 }
 0xdcc   : > { %7897 = vst.msk [vmem:[%s11929_s19 + $0x48] sm:$0xff] %vm362_vm0, %v7881_v46  ;;  %v7880_v25 = vadd.f32 %v11919_v48, %v7857_v35  ;;  %v7860_v43 = vadd.f32 %v9229_v7, %v11716_v62 }
 0xdcd   : > { %v7820_v16 = vpop.f32.mrf.mxu0 }
 0xdce   : > { %7896 = vst.msk [vmem:[%s11929_s19 + $0x40] sm:$0xff] %vm362_vm0, %v7880_v25  ;;  %v7883_v9 = vadd.f32 %v11919_v48, %v7860_v43  ;;  %v7859_v61 = vadd.f32 %v7820_v16, %v11719_v45 }
 0xdd0   : > { %7899 = vst.msk [vmem:[%s11929_s19 + $0x58] sm:$0xff] %vm362_vm0, %v7883_v9  ;;  %v7882_v11 = vadd.f32 %v11919_v48, %v7859_v61 }
 0xdd2   : > { %7898 = vst.msk [vmem:[%s11929_s19 + $0x50] sm:$0xff] %vm362_vm0, %v7882_v11 }
 0xdfc   : > { %v9232_v51 = vpop.f32.mrf.mxu0 }
 0xdfd   : > { %v7862_v52 = vadd.f32 %v9232_v51, %v11724_v57 }
 0xdfe   : > { %v7830_v62 = vpop.f32.mrf.mxu0 }
 0xdff   : > { %v7885_v1 = vadd.f32 %v11919_v48, %v7862_v52  ;;  %v7861_v13 = vadd.f32 %v7830_v62, %v11731_v22 }
 0xe00   : > { %v9235_v21 = vpop.f32.mrf.mxu0 }
 0xe01   : > { %7901 = vst.msk [vmem:[%s11929_s19 + $0x68] sm:$0xff] %vm362_vm0, %v7885_v1  ;;  %v7884_v45 = vadd.f32 %v11919_v48, %v7861_v13  ;;  %v7864_v15 = vadd.f32 %v9235_v21, %v11736_v63 }
 0xe02   : > { %v7840_v14 = vpop.f32.mrf.mxu0 }
 0xe03   : > { %7900 = vst.msk [vmem:[%s11929_s19 + $0x60] sm:$0xff] %vm362_vm0, %v7884_v45  ;;  %v7887_v57 = vadd.f32 %v11919_v48, %v7864_v15  ;;  %v7863_v2 = vadd.f32 %v7840_v14, %v11739_v50 }
 0xe05   : > { %7903 = vst.msk [vmem:[%s11929_s19 + $0x78] sm:$0xff] %vm362_vm0, %v7887_v57  ;;  %v7886_v22 = vadd.f32 %v11919_v48, %v7863_v2 }
 0xe07   : > { %7902 = vst.msk [vmem:[%s11929_s19 + $0x70] sm:$0xff] %vm362_vm0, %v7886_v22 }
 0xe08   : > { %9670 = shalt.err (!%p9667_p13)
}
 0xe09   : > { %s9671_s20 = scalar_lea.hbm %s11992_s11, 2048  ;;  %s9675_s15 = scalar_lea.hbm %s12047_s5, 4096 }
 0xe0a   : > { %p9672_p5 = scmp.ne.s32.totalorder %s11992_s11, %s9671_s20  ;;  %p9676_p8 = scmp.lt.s32.totalorder %s11992_s11, %s12047_s5 }
 0xe0b   : > { %p9677_p7 = scmp.lt.s32.totalorder %s9675_s15, %s9671_s20 }
 0xe0c   : > { %p9673_p0 = pnand %p9672_p5, %p12180_p1 }
 0xe0d   : > { %p9678_p11 = por %p9677_p7, %p9676_p8 }
 0xe0e   : > { %p9674_p4 = pneg %p9673_p0 }
 0xe10   : > { %p9679_p10 = pnand %p9678_p11, %p9674_p4 }
 0xe12   : > { %9682 = shalt.err (!%p9679_p10)
}
 0xe13   : > { %s9743_s14 = smov 128   ;;  %s9744_s16 = smov 8  }
 0xe14   : > { %9250 = dma.vmem_to_hbm [thread:$0]  (%p12180_p1), %s11994_s30, 2048, %s11992_s11, %s7905_s25, %s9743_s14, %s9743_s14, %s9744_s16  }
 0xe15 PF: > { %s7944_s10 = sand.u32 1, %s9713_s21   ;;  %p12181_p2 = scmp.ne.s32.totalorder %s12089_s28, 0 }
 0xe16   : > { %p12182_p6 = scmp.ge.s32.totalorder %s9725_s24, 2  ;;  %s7945_s7 = scalar_lea.sflag [#allocation4], %s7944_s10 }
 0xe18   : > { %p9264_p12 = pnand %p12182_p6, %p12181_p2 }
 0xe1a   : > { %p9265_p3 = pneg %p9264_p12 }
 0xe1c   : > { %9708 = dma.done.wait (%p9265_p3), %s7945_s7, 2048  }
 0xe1d   : > { %9710 = vsyncadd (%p9265_p3), %s7945_s7, 4294965248  ;;  %p21_p9 = scmp.ge.s32.totalorder %s9855_s26, 4   ;;  %s12183_s21 = smov %s9717_s22 }
 0xe1e   : > { %s12184_s22 = smov %s9721_s23  ;;  %s12185_s23 = smov %s9864_s9 }
 0xe1f   : > { %s12186_s24 = smov %s9855_s26  ;;  %23 = sbr.rel (!%p21_p9) target bundleno = 6 (0x6), region = 105 }
 0xe24   :  { %7959 = vsyncpa [#allocation3], 1 }
 0xe25   :  { %7961 = vsyncpa [#allocation3 + $0x1], 1 }
 0xe26   :  { %7962 = vsyncpa [#allocation6], 1 }
 0xe27   :  { %7963 = vsyncpa [#allocation4], 1 }
 0xe28   :  { %7965 = vsyncpa [#allocation4 + $0x1], 1 }

</bundles_post_ra>
